<compile_context>
chip_gen: v6e
topology: v6e:2x2x1
jax: 0.10.0
libtpu: 0.0.40
codegen_flags: <defaults>
</compile_context>

<pallas_src>
import jax
import jax.numpy as jnp
from jax import lax
from jax.experimental import pallas as pl
from jax.experimental.pallas import tpu as pltpu


# ----------------------------------------------------------------------------
# Wrapper-side weight preprocessing: 3x3x3 conv weight -> per-kd block-Toeplitz.
# Row index = kh*(W*Ci) + win*Ci + ci ; col index = wo*Co + co.
# 'SAME' W-padding is handled by zero rows (no lane halo in the activations).
# ----------------------------------------------------------------------------
def conv_to_toeplitz(w, W):
    """w: (3,3,3,Ci,Co) DHWIO conv weight -> (3, 3*W*Ci, W*Co)."""
    Ci, Co = w.shape[3], w.shape[4]
    win = jnp.arange(W)[:, None]                  # input w position
    wo = jnp.arange(W)[None, :]                   # output w position
    kw = win - wo + 1                             # kernel tap index
    valid = (kw >= 0) & (kw <= 2)
    t = w[:, :, jnp.clip(kw, 0, 2), :, :]         # (3,3,W,W,Ci,Co) [kd,kh,win,wo,ci,co]
    t = jnp.where(valid[None, None, :, :, None, None], t, 0.0)
    t = jnp.transpose(t, (0, 1, 2, 4, 3, 5))      # (kd,kh,win,ci,wo,co)
    return t.reshape(3, 3 * W * Ci, W * Co)


# ----------------------------------------------------------------------------
# Fused forward: one pallas_call, grid = (N,).
# ----------------------------------------------------------------------------
@jax.jit
def classifier_forward(x_ncdhw, info, params):
    N, Ci0, D0, H0, W0 = x_ncdhw.shape
    x = jnp.transpose(x_ncdhw, (0, 2, 3, 4, 1)).astype(jnp.float32)  # NDHWC
    x2 = x.reshape(N, D0, H0, W0 * Ci0)                              # W,C merged into lanes
    info3 = info.astype(jnp.float32).reshape(N, 1, 1)

    conv_ws = [params["enc0_w"], params["enc1_w"], params["enc2_w"], params["last_w"]]
    conv_bs = [params["enc0_b"], params["enc1_b"], params["enc2_b"], params["last_b"]]
    n_layers = len(conv_ws)

    # per-layer (D, H, W, Cin, Cout); encoder layers are followed by MaxPool3d(2)
    dims = []
    D, H, W, ci = D0, H0, W0, Ci0
    for i, w in enumerate(conv_ws):
        co = w.shape[-1]
        dims.append((D, H, W, ci, co))
        if i < n_layers - 1:
            D, H, W = D // 2, H // 2, W // 2
        ci = co

    # bf16 Toeplitz conv weights (MXU operands) + f32 lane-tiled biases
    t_list = [conv_to_toeplitz(w, d[2]).astype(jnp.bfloat16)
              for w, d in zip(conv_ws, dims)]
    cb_list = [jnp.tile(b, d[2]).reshape(1, d[2] * w.shape[-1])
               for b, w, d in zip(conv_bs, conv_ws, dims)]

    # ---- fused head: avgpool -> cat(info) -> fc -> Linear(256,64) -> BN(eval) -> ReLU
    # (no nonlinearity between fc and tri_pathway[0] in eval => exact algebraic fusion)
    nf = conv_ws[-1].shape[-1]
    Dl, Hl, Wl, _, Cl = dims[-1]
    eps = 1e-5
    bn_scale = params["bn_gamma"] / jnp.sqrt(params["bn_var"] + eps)
    bn_shift = params["bn_beta"] - params["bn_mean"] * bn_scale
    w_full = jnp.dot(params["fc_w"], params["tri0_w"],
                     precision=lax.Precision.HIGHEST) * bn_scale[None, :]   # (nf+1, 64)
    b_full = (jnp.dot(params["fc_b"], params["tri0_w"],
                      precision=lax.Precision.HIGHEST)
              + params["tri0_b"]) * bn_scale + bn_shift                     # (64,)
    # fold the AdaptiveAvgPool3d(1) mean and per-W lane layout into the weight
    w_head = jnp.tile(w_full[:nf], (Wl, 1)) * (1.0 / float(Dl * Hl * Wl))   # (Wl*Cl, 64)
    w_info = w_full[nf:nf + 1]                                              # (1, 64)
    b_head = b_full.reshape(1, -1)                                          # (1, 64)
    hidden = w_full.shape[1]

    def kernel(x_ref, info_ref, t0, b0, t1, b1, t2, b2, t3, b3,
               whd_ref, whi_ref, bhd_ref, o_ref, xp0, xp1, xp2, xp3):
        xps = (xp0, xp1, xp2, xp3)
        ts = (t0, t1, t2, t3)
        bs = (b0, b1, b2, b3)

        # Zero only the padding halo each grid step (interiors are fully
        # overwritten below; scratch persists across grid steps / cores).
        for xp in xps:
            Dp, Hp, L = xp.shape
            xp[0:1, :, :] = jnp.zeros((1, Hp, L), jnp.float32)
            xp[Dp - 1:Dp, :, :] = jnp.zeros((1, Hp, L), jnp.float32)
            xp[:, 0:1, :] = jnp.zeros((Dp, 1, L), jnp.float32)
            xp[:, Hp - 1:Hp, :] = jnp.zeros((Dp, 1, L), jnp.float32)

        # Stage the input into the first padded scratch (lane offset 0, no W halo).
        Din, Hin, _, _, _ = dims[0]
        xp0[1:1 + Din, 1:1 + Hin, :] = x_ref[...]

        y = None
        for i, (Dd, Hh, Ww, cin, cout) in enumerate(dims):
            L = Ww * cin
            xp = xps[i]
            # K-concat the 3 kh-shifted windows along lanes; one slab per kd.
            xk = jnp.concatenate(
                [xp[:, kh:kh + Hh, :] for kh in range(3)], axis=2)     # (Dd+2, Hh, 3L)
            xk = xk.reshape((Dd + 2) * Hh, 3 * L).astype(jnp.bfloat16)
            y = None
            for kd in range(3):
                slab = xk[kd * Hh:(kd + Dd) * Hh, :]                   # (Dd*Hh, 3L)
                p = jnp.dot(slab, ts[i][kd],
                            preferred_element_type=jnp.float32)
                y = p if y is None else y + p
            y = y + bs[i][...]
            y = jnp.where(y > 0, y, 0.2 * y)                           # LeakyReLU(0.2)

            if i < n_layers - 1:
                # fused MaxPool3d(2,2): D/H via leading-dim regroup + maxima,
                # W via lane-pair maxima, written straight into next scratch.
                D2, H2, W2 = Dd // 2, Hh // 2, Ww // 2
                WC = Ww * cout
                yd = y.reshape(D2, 2, Hh, WC)
                m = jnp.maximum(yd[:, 0], yd[:, 1])                    # (D2, Hh, WC)
                m = m.reshape(D2, H2, 2, WC)
                m = jnp.maximum(m[:, :, 0], m[:, :, 1])                # (D2, H2, WC)
                m = jnp.concatenate(
                    [jnp.maximum(m[..., (2 * w) * cout:(2 * w + 1) * cout],
                                 m[..., (2 * w + 1) * cout:(2 * w + 2) * cout])
                     for w in range(W2)], axis=-1)                     # (D2, H2, W2*C)
                xps[i + 1][1:1 + D2, 1:1 + H2, :] = m

        # fused head: spatial sum -> one tiny matmul (+ info column + bias) -> ReLU
        s = jnp.sum(y, axis=0, keepdims=True)                          # (1, Wl*Cl)
        g = jnp.dot(s, whd_ref[...], preferred_element_type=jnp.float32)
        g = g + info_ref[...] * whi_ref[...] + bhd_ref[...]
        o_ref[...] = jnp.maximum(g, 0.0)                               # ReLU

    # --- specs ---
    in_specs = [
        pl.BlockSpec((None, D0, H0, W0 * Ci0), lambda n: (n, 0, 0, 0)),
        pl.BlockSpec((None, 1, 1), lambda n: (n, 0, 0)),
    ]
    args = [x2, info3]
    for t, cb in zip(t_list, cb_list):
        in_specs.append(pl.BlockSpec(t.shape, lambda n: (0, 0, 0)))
        in_specs.append(pl.BlockSpec(cb.shape, lambda n: (0, 0)))
        args += [t, cb]
    for arr in (w_head, w_info, b_head):
        in_specs.append(pl.BlockSpec(arr.shape, lambda n: (0, 0)))
        args.append(arr)

    scratch_shapes = [
        pltpu.VMEM((Dd + 2, Hh + 2, Ww * cin), jnp.float32)
        for (Dd, Hh, Ww, cin, cout) in dims
    ]

    out = pl.pallas_call(
        kernel,
        out_shape=jax.ShapeDtypeStruct((N, 1, hidden), jnp.float32),
        grid=(N,),
        in_specs=in_specs,
        out_specs=pl.BlockSpec((None, 1, hidden), lambda n: (n, 0, 0)),
        scratch_shapes=scratch_shapes,
        compiler_params=pltpu.CompilerParams(
            dimension_semantics=("parallel",)),
    )(*args)
    return out.reshape(N, hidden)


# ----------------------------------------------------------------------------
# Pure-JAX reference (f32, HIGHEST precision) for a sanity check.
# ----------------------------------------------------------------------------
def reference_forward(x_ncdhw, info, params):
    dn = ("NDHWC", "DHWIO", "NDHWC")
    x = jnp.transpose(x_ncdhw, (0, 2, 3, 4, 1)).astype(jnp.float32)

    def conv(h, w, b):
        h = lax.conv_general_dilated(h, w, (1, 1, 1), "SAME",
                                     dimension_numbers=dn,
                                     precision=lax.Precision.HIGHEST) + b
        return jnp.where(h > 0, h, 0.2 * h)

    def pool(h):
        N, D, H, W, C = h.shape
        return h.reshape(N, D // 2, 2, H // 2, 2, W // 2, 2, C).max(axis=(2, 4, 6))

    for i in range(3):
        x = pool(conv(x, params[f"enc{i}_w"], params[f"enc{i}_b"]))
    x = conv(x, params["last_w"], params["last_b"])
    pooled = x.mean(axis=(1, 2, 3))                                   # (N, C)
    z = jnp.concatenate([pooled, info.astype(jnp.float32)], axis=1)
    z = jnp.dot(z, params["fc_w"], precision=lax.Precision.HIGHEST) + params["fc_b"]
    g = jnp.dot(z, params["tri0_w"], precision=lax.Precision.HIGHEST) + params["tri0_b"]
    eps = 1e-5
    scale = params["bn_gamma"] / jnp.sqrt(params["bn_var"] + eps)
    shift = params["bn_beta"] - params["bn_mean"] * scale
    g = g * scale + shift
    return jnp.maximum(g, 0.0)


# ----------------------------------------------------------------------------
# Deterministic parameter init + run.
# ----------------------------------------------------------------------------
def init_params(key, in_planes, nf_enc):
    keys = jax.random.split(key, 8)
    p = {}

    def conv_init(k, ci, co):
        kw, kb = jax.random.split(k)
        w = jax.random.normal(kw, (3, 3, 3, ci, co), jnp.float32) * (2.0 / (27 * ci)) ** 0.5
        b = jax.random.normal(kb, (co,), jnp.float32) * 0.01
        return w, b

    prev = in_planes
    for i, nf in enumerate(nf_enc):
        p[f"enc{i}_w"], p[f"enc{i}_b"] = conv_init(keys[i], prev, nf)
        prev = nf
    p["last_w"], p["last_b"] = conv_init(keys[3], prev, prev)

    nf = nf_enc[-1]
    p["fc_w"] = jax.random.normal(keys[4], (nf + 1, 256), jnp.float32) * (1.0 / (nf + 1)) ** 0.5
    p["fc_b"] = jax.random.normal(keys[5], (256,), jnp.float32) * 0.01
    p["tri0_w"] = jax.random.normal(keys[6], (256, 64), jnp.float32) * (1.0 / 256.0) ** 0.5
    p["tri0_b"] = jax.random.normal(keys[7], (64,), jnp.float32) * 0.01
    # BatchNorm1d(64) eval-mode running stats / affine (default init)
    p["bn_gamma"] = jnp.ones((64,), jnp.float32)
    p["bn_beta"] = jnp.zeros((64,), jnp.float32)
    p["bn_mean"] = jnp.zeros((64,), jnp.float32)
    p["bn_var"] = jnp.ones((64,), jnp.float32)
    return p


if __name__ == "__main__":
    key = jax.random.PRNGKey(0)
    k_x, k_info, k_p = jax.random.split(key, 3)

    in_planes = 4
    nf_enc = (8, 16, 32)
    # PyTorch NCDHW layout; spatial 16^3 so three MaxPool3d(2) give 2^3.
    x = jax.random.normal(k_x, (2, in_planes, 16, 16, 16), jnp.float32)
    info = jax.random.normal(k_info, (2, 1), jnp.float32)

    params = init_params(k_p, in_planes, nf_enc)

    out = jax.block_until_ready(classifier_forward(x, info, params))
    ref = jax.block_until_ready(reference_forward(x, info, params))

    # bf16 MXU operands in the kernel vs f32/HIGHEST reference => loosened tolerance.
    if not jnp.allclose(out, ref, rtol=5e-2, atol=1e-1):
        raise AssertionError(
            f"Pallas output mismatch vs reference: max abs diff "
            f"{float(jnp.max(jnp.abs(out - ref)))}")

    print("KERNEL_OK")
</pallas_src>

<mosaic_0001>
module attributes {stable_mosaic.version = 11 : i64} {
  func.func @kernel(%arg0: i32, %arg1: memref<1x16x16x64xf32, #tpu.memory_space<vmem>>, %arg2: memref<1x1x1xf32, #tpu.memory_space<vmem>>, %arg3: memref<3x192x128xbf16, #tpu.memory_space<vmem>>, %arg4: memref<1x128xf32, #tpu.memory_space<vmem>>, %arg5: memref<3x192x128xbf16, #tpu.memory_space<vmem>>, %arg6: memref<1x128xf32, #tpu.memory_space<vmem>>, %arg7: memref<3x192x128xbf16, #tpu.memory_space<vmem>>, %arg8: memref<1x128xf32, #tpu.memory_space<vmem>>, %arg9: memref<3x192x64xbf16, #tpu.memory_space<vmem>>, %arg10: memref<1x64xf32, #tpu.memory_space<vmem>>, %arg11: memref<64x64xf32, #tpu.memory_space<vmem>>, %arg12: memref<1x64xf32, #tpu.memory_space<vmem>>, %arg13: memref<1x64xf32, #tpu.memory_space<vmem>>, %arg14: memref<1x1x64xf32, #tpu.memory_space<vmem>>, %arg15: memref<18x18x64xf32, #tpu.memory_space<vmem>>, %arg16: memref<10x10x64xf32, #tpu.memory_space<vmem>>, %arg17: memref<6x6x64xf32, #tpu.memory_space<vmem>>, %arg18: memref<4x4x64xf32, #tpu.memory_space<vmem>>) attributes {dimension_semantics = [#tpu.dimension_semantics<parallel>], iteration_bounds = array<i64: 2>, scalar_prefetch = 0 : i64, scratch_operands = 4 : i64, tpu.core_type = #tpu.core_type<tc>, window_params = [{transform_indices = @transform_0, window_bounds = array<i64: 1, 16, 16, 64>}, {transform_indices = @transform_1, window_bounds = array<i64: 1, 1, 1>}, {pipeline_mode = #tpu.pipeline_mode<synchronous>, transform_indices = @transform_2, window_bounds = array<i64: 3, 192, 128>}, {pipeline_mode = #tpu.pipeline_mode<synchronous>, transform_indices = @transform_3, window_bounds = array<i64: 1, 128>}, {pipeline_mode = #tpu.pipeline_mode<synchronous>, transform_indices = @transform_4, window_bounds = array<i64: 3, 192, 128>}, {pipeline_mode = #tpu.pipeline_mode<synchronous>, transform_indices = @transform_5, window_bounds = array<i64: 1, 128>}, {pipeline_mode = #tpu.pipeline_mode<synchronous>, transform_indices = @transform_6, window_bounds = array<i64: 3, 192, 128>}, {pipeline_mode = #tpu.pipeline_mode<synchronous>, transform_indices = @transform_7, window_bounds = array<i64: 1, 128>}, {pipeline_mode = #tpu.pipeline_mode<synchronous>, transform_indices = @transform_8, window_bounds = array<i64: 3, 192, 64>}, {pipeline_mode = #tpu.pipeline_mode<synchronous>, transform_indices = @transform_9, window_bounds = array<i64: 1, 64>}, {pipeline_mode = #tpu.pipeline_mode<synchronous>, transform_indices = @transform_10, window_bounds = array<i64: 64, 64>}, {pipeline_mode = #tpu.pipeline_mode<synchronous>, transform_indices = @transform_11, window_bounds = array<i64: 1, 64>}, {pipeline_mode = #tpu.pipeline_mode<synchronous>, transform_indices = @transform_12, window_bounds = array<i64: 1, 64>}, {transform_indices = @transform_13, window_bounds = array<i64: 1, 1, 64>}]} {
    %cst = arith.constant 0.000000e+00 : f32
    %0 = vector.broadcast %cst : f32 to vector<1x18x64xf32>
    %c0 = arith.constant 0 : index
    %c0_0 = arith.constant 0 : index
    %c0_1 = arith.constant 0 : index
    %1 = vector.load %arg15[%c0, %c0_0, %c0_1] : memref<18x18x64xf32, #tpu.memory_space<vmem>>, vector<1x18x64xf32>
    tpu.vector_store %arg15[%c0, %c0_0, %c0_1], %0 {strides = array<i32>} : memref<18x18x64xf32, #tpu.memory_space<vmem>>, vector<1x18x64xf32>,
    %cst_2 = arith.constant 0.000000e+00 : f32
    %2 = vector.broadcast %cst_2 : f32 to vector<1x18x64xf32>
    %c17 = arith.constant 17 : index
    %c0_3 = arith.constant 0 : index
    %c0_4 = arith.constant 0 : index
    %3 = vector.load %arg15[%c17, %c0_3, %c0_4] : memref<18x18x64xf32, #tpu.memory_space<vmem>>, vector<1x18x64xf32>
    tpu.vector_store %arg15[%c17, %c0_3, %c0_4], %2 {strides = array<i32>} : memref<18x18x64xf32, #tpu.memory_space<vmem>>, vector<1x18x64xf32>,
    %cst_5 = arith.constant 0.000000e+00 : f32
    %4 = vector.broadcast %cst_5 : f32 to vector<18x1x64xf32>
    %c0_6 = arith.constant 0 : index
    %c0_7 = arith.constant 0 : index
    %c0_8 = arith.constant 0 : index
    %5 = vector.load %arg15[%c0_6, %c0_7, %c0_8] : memref<18x18x64xf32, #tpu.memory_space<vmem>>, vector<18x1x64xf32>
    tpu.vector_store %arg15[%c0_6, %c0_7, %c0_8], %4 {strides = array<i32>} : memref<18x18x64xf32, #tpu.memory_space<vmem>>, vector<18x1x64xf32>,
    %cst_9 = arith.constant 0.000000e+00 : f32
    %6 = vector.broadcast %cst_9 : f32 to vector<18x1x64xf32>
    %c0_10 = arith.constant 0 : index
    %c17_11 = arith.constant 17 : index
    %c0_12 = arith.constant 0 : index
    %7 = vector.load %arg15[%c0_10, %c17_11, %c0_12] : memref<18x18x64xf32, #tpu.memory_space<vmem>>, vector<18x1x64xf32>
    tpu.vector_store %arg15[%c0_10, %c17_11, %c0_12], %6 {strides = array<i32>} : memref<18x18x64xf32, #tpu.memory_space<vmem>>, vector<18x1x64xf32>,
    %cst_13 = arith.constant 0.000000e+00 : f32
    %8 = vector.broadcast %cst_13 : f32 to vector<1x10x64xf32>
    %c0_14 = arith.constant 0 : index
    %c0_15 = arith.constant 0 : index
    %c0_16 = arith.constant 0 : index
    %9 = vector.load %arg16[%c0_14, %c0_15, %c0_16] : memref<10x10x64xf32, #tpu.memory_space<vmem>>, vector<1x10x64xf32>
    tpu.vector_store %arg16[%c0_14, %c0_15, %c0_16], %8 {strides = array<i32>} : memref<10x10x64xf32, #tpu.memory_space<vmem>>, vector<1x10x64xf32>,
    %cst_17 = arith.constant 0.000000e+00 : f32
    %10 = vector.broadcast %cst_17 : f32 to vector<1x10x64xf32>
    %c9 = arith.constant 9 : index
    %c0_18 = arith.constant 0 : index
    %c0_19 = arith.constant 0 : index
    %11 = vector.load %arg16[%c9, %c0_18, %c0_19] : memref<10x10x64xf32, #tpu.memory_space<vmem>>, vector<1x10x64xf32>
    tpu.vector_store %arg16[%c9, %c0_18, %c0_19], %10 {strides = array<i32>} : memref<10x10x64xf32, #tpu.memory_space<vmem>>, vector<1x10x64xf32>,
    %cst_20 = arith.constant 0.000000e+00 : f32
    %12 = vector.broadcast %cst_20 : f32 to vector<10x1x64xf32>
    %c0_21 = arith.constant 0 : index
    %c0_22 = arith.constant 0 : index
    %c0_23 = arith.constant 0 : index
    %13 = vector.load %arg16[%c0_21, %c0_22, %c0_23] : memref<10x10x64xf32, #tpu.memory_space<vmem>>, vector<10x1x64xf32>
    tpu.vector_store %arg16[%c0_21, %c0_22, %c0_23], %12 {strides = array<i32>} : memref<10x10x64xf32, #tpu.memory_space<vmem>>, vector<10x1x64xf32>,
    %cst_24 = arith.constant 0.000000e+00 : f32
    %14 = vector.broadcast %cst_24 : f32 to vector<10x1x64xf32>
    %c0_25 = arith.constant 0 : index
    %c9_26 = arith.constant 9 : index
    %c0_27 = arith.constant 0 : index
    %15 = vector.load %arg16[%c0_25, %c9_26, %c0_27] : memref<10x10x64xf32, #tpu.memory_space<vmem>>, vector<10x1x64xf32>
    tpu.vector_store %arg16[%c0_25, %c9_26, %c0_27], %14 {strides = array<i32>} : memref<10x10x64xf32, #tpu.memory_space<vmem>>, vector<10x1x64xf32>,
    %cst_28 = arith.constant 0.000000e+00 : f32
    %16 = vector.broadcast %cst_28 : f32 to vector<1x6x64xf32>
    %c0_29 = arith.constant 0 : index
    %c0_30 = arith.constant 0 : index
    %c0_31 = arith.constant 0 : index
    %17 = vector.load %arg17[%c0_29, %c0_30, %c0_31] : memref<6x6x64xf32, #tpu.memory_space<vmem>>, vector<1x6x64xf32>
    tpu.vector_store %arg17[%c0_29, %c0_30, %c0_31], %16 {strides = array<i32>} : memref<6x6x64xf32, #tpu.memory_space<vmem>>, vector<1x6x64xf32>,
    %cst_32 = arith.constant 0.000000e+00 : f32
    %18 = vector.broadcast %cst_32 : f32 to vector<1x6x64xf32>
    %c5 = arith.constant 5 : index
    %c0_33 = arith.constant 0 : index
    %c0_34 = arith.constant 0 : index
    %19 = vector.load %arg17[%c5, %c0_33, %c0_34] : memref<6x6x64xf32, #tpu.memory_space<vmem>>, vector<1x6x64xf32>
    tpu.vector_store %arg17[%c5, %c0_33, %c0_34], %18 {strides = array<i32>} : memref<6x6x64xf32, #tpu.memory_space<vmem>>, vector<1x6x64xf32>,
    %cst_35 = arith.constant 0.000000e+00 : f32
    %20 = vector.broadcast %cst_35 : f32 to vector<6x1x64xf32>
    %c0_36 = arith.constant 0 : index
    %c0_37 = arith.constant 0 : index
    %c0_38 = arith.constant 0 : index
    %21 = vector.load %arg17[%c0_36, %c0_37, %c0_38] : memref<6x6x64xf32, #tpu.memory_space<vmem>>, vector<6x1x64xf32>
    tpu.vector_store %arg17[%c0_36, %c0_37, %c0_38], %20 {strides = array<i32>} : memref<6x6x64xf32, #tpu.memory_space<vmem>>, vector<6x1x64xf32>,
    %cst_39 = arith.constant 0.000000e+00 : f32
    %22 = vector.broadcast %cst_39 : f32 to vector<6x1x64xf32>
    %c0_40 = arith.constant 0 : index
    %c5_41 = arith.constant 5 : index
    %c0_42 = arith.constant 0 : index
    %23 = vector.load %arg17[%c0_40, %c5_41, %c0_42] : memref<6x6x64xf32, #tpu.memory_space<vmem>>, vector<6x1x64xf32>
    tpu.vector_store %arg17[%c0_40, %c5_41, %c0_42], %22 {strides = array<i32>} : memref<6x6x64xf32, #tpu.memory_space<vmem>>, vector<6x1x64xf32>,
    %cst_43 = arith.constant 0.000000e+00 : f32
    %24 = vector.broadcast %cst_43 : f32 to vector<1x4x64xf32>
    %c0_44 = arith.constant 0 : index
    %c0_45 = arith.constant 0 : index
    %c0_46 = arith.constant 0 : index
    %25 = vector.load %arg18[%c0_44, %c0_45, %c0_46] : memref<4x4x64xf32, #tpu.memory_space<vmem>>, vector<1x4x64xf32>
    tpu.vector_store %arg18[%c0_44, %c0_45, %c0_46], %24 {strides = array<i32>} : memref<4x4x64xf32, #tpu.memory_space<vmem>>, vector<1x4x64xf32>,
    %cst_47 = arith.constant 0.000000e+00 : f32
    %26 = vector.broadcast %cst_47 : f32 to vector<1x4x64xf32>
    %c3 = arith.constant 3 : index
    %c0_48 = arith.constant 0 : index
    %c0_49 = arith.constant 0 : index
    %27 = vector.load %arg18[%c3, %c0_48, %c0_49] : memref<4x4x64xf32, #tpu.memory_space<vmem>>, vector<1x4x64xf32>
    tpu.vector_store %arg18[%c3, %c0_48, %c0_49], %26 {strides = array<i32>} : memref<4x4x64xf32, #tpu.memory_space<vmem>>, vector<1x4x64xf32>,
    %cst_50 = arith.constant 0.000000e+00 : f32
    %28 = vector.broadcast %cst_50 : f32 to vector<4x1x64xf32>
    %c0_51 = arith.constant 0 : index
    %c0_52 = arith.constant 0 : index
    %c0_53 = arith.constant 0 : index
    %29 = vector.load %arg18[%c0_51, %c0_52, %c0_53] : memref<4x4x64xf32, #tpu.memory_space<vmem>>, vector<4x1x64xf32>
    tpu.vector_store %arg18[%c0_51, %c0_52, %c0_53], %28 {strides = array<i32>} : memref<4x4x64xf32, #tpu.memory_space<vmem>>, vector<4x1x64xf32>,
    %cst_54 = arith.constant 0.000000e+00 : f32
    %30 = vector.broadcast %cst_54 : f32 to vector<4x1x64xf32>
    %c0_55 = arith.constant 0 : index
    %c3_56 = arith.constant 3 : index
    %c0_57 = arith.constant 0 : index
    %31 = vector.load %arg18[%c0_55, %c3_56, %c0_57] : memref<4x4x64xf32, #tpu.memory_space<vmem>>, vector<4x1x64xf32>
    tpu.vector_store %arg18[%c0_55, %c3_56, %c0_57], %30 {strides = array<i32>} : memref<4x4x64xf32, #tpu.memory_space<vmem>>, vector<4x1x64xf32>,
    %c0_58 = arith.constant 0 : index
    %c0_59 = arith.constant 0 : index
    %c0_60 = arith.constant 0 : index
    %c0_61 = arith.constant 0 : index
    %32 = vector.load %arg1[%c0_58, %c0_59, %c0_60, %c0_61] : memref<1x16x16x64xf32, #tpu.memory_space<vmem>>, vector<1x16x16x64xf32>
    %33 = vector.shape_cast %32 : vector<1x16x16x64xf32> to vector<16x16x64xf32>
    %c1 = arith.constant 1 : index
    %c1_62 = arith.constant 1 : index
    %c0_63 = arith.constant 0 : index
    %34 = vector.load %arg15[%c1, %c1_62, %c0_63] : memref<18x18x64xf32, #tpu.memory_space<vmem>>, vector<16x16x64xf32>
    tpu.vector_store %arg15[%c1, %c1_62, %c0_63], %33 {strides = array<i32>} : memref<18x18x64xf32, #tpu.memory_space<vmem>>, vector<16x16x64xf32>,
    %c0_64 = arith.constant 0 : index
    %c0_65 = arith.constant 0 : index
    %c0_66 = arith.constant 0 : index
    %35 = vector.load %arg15[%c0_64, %c0_65, %c0_66] : memref<18x18x64xf32, #tpu.memory_space<vmem>>, vector<18x16x64xf32>
    %c0_67 = arith.constant 0 : index
    %c1_68 = arith.constant 1 : index
    %c0_69 = arith.constant 0 : index
    %36 = vector.load %arg15[%c0_67, %c1_68, %c0_69] : memref<18x18x64xf32, #tpu.memory_space<vmem>>, vector<18x16x64xf32>
    %c0_70 = arith.constant 0 : index
    %c2 = arith.constant 2 : index
    %c0_71 = arith.constant 0 : index
    %37 = vector.load %arg15[%c0_70, %c2, %c0_71] : memref<18x18x64xf32, #tpu.memory_space<vmem>>, vector<18x16x64xf32>
    %38 = tpu.concatenate %35, %36, %37 in 2 : vector<18x16x64xf32>, vector<18x16x64xf32>, vector<18x16x64xf32> -> vector<18x16x192xf32>
    %39 = vector.shape_cast %38 : vector<18x16x192xf32> to vector<288x192xf32>
    %40 = arith.truncf %39 : vector<288x192xf32> to vector<288x192xbf16>
    %41 = vector.extract_strided_slice %40 {offsets = [0, 0], sizes = [256, 192], strides = [1, 1]} : vector<288x192xbf16> to vector<256x192xbf16>
    %c0_72 = arith.constant 0 : index
    %c0_73 = arith.constant 0 : index
    %c0_74 = arith.constant 0 : index
    %42 = vector.load %arg3[%c0_72, %c0_73, %c0_74] : memref<3x192x128xbf16, #tpu.memory_space<vmem>>, vector<1x192x128xbf16>
    %43 = vector.shape_cast %42 : vector<1x192x128xbf16> to vector<192x128xbf16>
    %cst_75 = arith.constant dense<0.000000e+00> : vector<256x128xf32>
    %44 = tpu.matmul %41, %43, %cst_75 {dimension_numbers = #tpu.dot_dimension_numbers<[1], [0], [0], [1], [0, 0, 1, 1], [], []>} : vector<256x192xbf16>, vector<192x128xbf16>, vector<256x128xf32> -> vector<256x128xf32>
    %45 = vector.extract_strided_slice %40 {offsets = [16, 0], sizes = [256, 192], strides = [1, 1]} : vector<288x192xbf16> to vector<256x192xbf16>
    %c1_76 = arith.constant 1 : index
    %c0_77 = arith.constant 0 : index
    %c0_78 = arith.constant 0 : index
    %46 = vector.load %arg3[%c1_76, %c0_77, %c0_78] : memref<3x192x128xbf16, #tpu.memory_space<vmem>>, vector<1x192x128xbf16>
    %47 = vector.shape_cast %46 : vector<1x192x128xbf16> to vector<192x128xbf16>
    %cst_79 = arith.constant dense<0.000000e+00> : vector<256x128xf32>
    %48 = tpu.matmul %45, %47, %cst_79 {dimension_numbers = #tpu.dot_dimension_numbers<[1], [0], [0], [1], [0, 0, 1, 1], [], []>} : vector<256x192xbf16>, vector<192x128xbf16>, vector<256x128xf32> -> vector<256x128xf32>
    %49 = arith.addf %44, %48 : vector<256x128xf32>
    %50 = vector.extract_strided_slice %40 {offsets = [32, 0], sizes = [256, 192], strides = [1, 1]} : vector<288x192xbf16> to vector<256x192xbf16>
    %c2_80 = arith.constant 2 : index
    %c0_81 = arith.constant 0 : index
    %c0_82 = arith.constant 0 : index
    %51 = vector.load %arg3[%c2_80, %c0_81, %c0_82] : memref<3x192x128xbf16, #tpu.memory_space<vmem>>, vector<1x192x128xbf16>
    %52 = vector.shape_cast %51 : vector<1x192x128xbf16> to vector<192x128xbf16>
    %cst_83 = arith.constant dense<0.000000e+00> : vector<256x128xf32>
    %53 = tpu.matmul %50, %52, %cst_83 {dimension_numbers = #tpu.dot_dimension_numbers<[1], [0], [0], [1], [0, 0, 1, 1], [], []>} : vector<256x192xbf16>, vector<192x128xbf16>, vector<256x128xf32> -> vector<256x128xf32>
    %54 = arith.addf %49, %53 : vector<256x128xf32>
    %c0_84 = arith.constant 0 : index
    %c0_85 = arith.constant 0 : index
    %55 = vector.load %arg4[%c0_84, %c0_85] : memref<1x128xf32, #tpu.memory_space<vmem>>, vector<1x128xf32>
    %56 = vector.broadcast %55 : vector<1x128xf32> to vector<256x128xf32>
    %57 = arith.addf %54, %56 : vector<256x128xf32>
    %cst_86 = arith.constant 0.000000e+00 : f32
    %58 = vector.broadcast %cst_86 : f32 to vector<256x128xf32>
    %59 = arith.cmpf ogt, %57, %58 : vector<256x128xf32>
    %cst_87 = arith.constant 2.000000e-01 : f32
    %60 = vector.broadcast %cst_87 : f32 to vector<256x128xf32>
    %61 = arith.mulf %60, %57 : vector<256x128xf32>
    %62 = arith.select %59, %57, %61 : vector<256x128xi1>, vector<256x128xf32>
    %63 = vector.shape_cast %62 : vector<256x128xf32> to vector<8x2x16x128xf32>
    %64 = vector.extract_strided_slice %63 {offsets = [0, 0, 0, 0], sizes = [8, 1, 16, 128], strides = [1, 1, 1, 1]} : vector<8x2x16x128xf32> to vector<8x1x16x128xf32>
    %65 = vector.shape_cast %64 : vector<8x1x16x128xf32> to vector<8x16x128xf32>
    %66 = vector.extract_strided_slice %63 {offsets = [0, 1, 0, 0], sizes = [8, 1, 16, 128], strides = [1, 1, 1, 1]} : vector<8x2x16x128xf32> to vector<8x1x16x128xf32>
    %67 = vector.shape_cast %66 : vector<8x1x16x128xf32> to vector<8x16x128xf32>
    %68 = arith.maximumf %65, %67 : vector<8x16x128xf32>
    %69 = vector.shape_cast %68 : vector<8x16x128xf32> to vector<8x8x2x128xf32>
    %70 = vector.extract_strided_slice %69 {offsets = [0, 0, 0, 0], sizes = [8, 8, 1, 128], strides = [1, 1, 1, 1]} : vector<8x8x2x128xf32> to vector<8x8x1x128xf32>
    %71 = vector.shape_cast %70 : vector<8x8x1x128xf32> to vector<8x8x128xf32>
    %72 = vector.extract_strided_slice %69 {offsets = [0, 0, 1, 0], sizes = [8, 8, 1, 128], strides = [1, 1, 1, 1]} : vector<8x8x2x128xf32> to vector<8x8x1x128xf32>
    %73 = vector.shape_cast %72 : vector<8x8x1x128xf32> to vector<8x8x128xf32>
    %74 = arith.maximumf %71, %73 : vector<8x8x128xf32>
    %75 = vector.extract_strided_slice %74 {offsets = [0, 0, 0], sizes = [8, 8, 8], strides = [1, 1, 1]} : vector<8x8x128xf32> to vector<8x8x8xf32>
    %76 = vector.extract_strided_slice %74 {offsets = [0, 0, 8], sizes = [8, 8, 8], strides = [1, 1, 1]} : vector<8x8x128xf32> to vector<8x8x8xf32>
    %77 = arith.maximumf %75, %76 : vector<8x8x8xf32>
    %78 = vector.extract_strided_slice %74 {offsets = [0, 0, 16], sizes = [8, 8, 8], strides = [1, 1, 1]} : vector<8x8x128xf32> to vector<8x8x8xf32>
    %79 = vector.extract_strided_slice %74 {offsets = [0, 0, 24], sizes = [8, 8, 8], strides = [1, 1, 1]} : vector<8x8x128xf32> to vector<8x8x8xf32>
    %80 = arith.maximumf %78, %79 : vector<8x8x8xf32>
    %81 = vector.extract_strided_slice %74 {offsets = [0, 0, 32], sizes = [8, 8, 8], strides = [1, 1, 1]} : vector<8x8x128xf32> to vector<8x8x8xf32>
    %82 = vector.extract_strided_slice %74 {offsets = [0, 0, 40], sizes = [8, 8, 8], strides = [1, 1, 1]} : vector<8x8x128xf32> to vector<8x8x8xf32>
    %83 = arith.maximumf %81, %82 : vector<8x8x8xf32>
    %84 = vector.extract_strided_slice %74 {offsets = [0, 0, 48], sizes = [8, 8, 8], strides = [1, 1, 1]} : vector<8x8x128xf32> to vector<8x8x8xf32>
    %85 = vector.extract_strided_slice %74 {offsets = [0, 0, 56], sizes = [8, 8, 8], strides = [1, 1, 1]} : vector<8x8x128xf32> to vector<8x8x8xf32>
    %86 = arith.maximumf %84, %85 : vector<8x8x8xf32>
    %87 = vector.extract_strided_slice %74 {offsets = [0, 0, 64], sizes = [8, 8, 8], strides = [1, 1, 1]} : vector<8x8x128xf32> to vector<8x8x8xf32>
    %88 = vector.extract_strided_slice %74 {offsets = [0, 0, 72], sizes = [8, 8, 8], strides = [1, 1, 1]} : vector<8x8x128xf32> to vector<8x8x8xf32>
    %89 = arith.maximumf %87, %88 : vector<8x8x8xf32>
    %90 = vector.extract_strided_slice %74 {offsets = [0, 0, 80], sizes = [8, 8, 8], strides = [1, 1, 1]} : vector<8x8x128xf32> to vector<8x8x8xf32>
    %91 = vector.extract_strided_slice %74 {offsets = [0, 0, 88], sizes = [8, 8, 8], strides = [1, 1, 1]} : vector<8x8x128xf32> to vector<8x8x8xf32>
    %92 = arith.maximumf %90, %91 : vector<8x8x8xf32>
    %93 = vector.extract_strided_slice %74 {offsets = [0, 0, 96], sizes = [8, 8, 8], strides = [1, 1, 1]} : vector<8x8x128xf32> to vector<8x8x8xf32>
    %94 = vector.extract_strided_slice %74 {offsets = [0, 0, 104], sizes = [8, 8, 8], strides = [1, 1, 1]} : vector<8x8x128xf32> to vector<8x8x8xf32>
    %95 = arith.maximumf %93, %94 : vector<8x8x8xf32>
    %96 = vector.extract_strided_slice %74 {offsets = [0, 0, 112], sizes = [8, 8, 8], strides = [1, 1, 1]} : vector<8x8x128xf32> to vector<8x8x8xf32>
    %97 = vector.extract_strided_slice %74 {offsets = [0, 0, 120], sizes = [8, 8, 8], strides = [1, 1, 1]} : vector<8x8x128xf32> to vector<8x8x8xf32>
    %98 = arith.maximumf %96, %97 : vector<8x8x8xf32>
    %99 = tpu.concatenate %77, %80, %83, %86, %89, %92, %95, %98 in 2 : vector<8x8x8xf32>, vector<8x8x8xf32>, vector<8x8x8xf32>, vector<8x8x8xf32>, vector<8x8x8xf32>, vector<8x8x8xf32>, vector<8x8x8xf32>, vector<8x8x8xf32> -> vector<8x8x64xf32>
    %c1_88 = arith.constant 1 : index
    %c1_89 = arith.constant 1 : index
    %c0_90 = arith.constant 0 : index
    %100 = vector.load %arg16[%c1_88, %c1_89, %c0_90] : memref<10x10x64xf32, #tpu.memory_space<vmem>>, vector<8x8x64xf32>
    tpu.vector_store %arg16[%c1_88, %c1_89, %c0_90], %99 {strides = array<i32>} : memref<10x10x64xf32, #tpu.memory_space<vmem>>, vector<8x8x64xf32>,
    %c0_91 = arith.constant 0 : index
    %c0_92 = arith.constant 0 : index
    %c0_93 = arith.constant 0 : index
    %101 = vector.load %arg16[%c0_91, %c0_92, %c0_93] : memref<10x10x64xf32, #tpu.memory_space<vmem>>, vector<10x8x64xf32>
    %c0_94 = arith.constant 0 : index
    %c1_95 = arith.constant 1 : index
    %c0_96 = arith.constant 0 : index
    %102 = vector.load %arg16[%c0_94, %c1_95, %c0_96] : memref<10x10x64xf32, #tpu.memory_space<vmem>>, vector<10x8x64xf32>
    %c0_97 = arith.constant 0 : index
    %c2_98 = arith.constant 2 : index
    %c0_99 = arith.constant 0 : index
    %103 = vector.load %arg16[%c0_97, %c2_98, %c0_99] : memref<10x10x64xf32, #tpu.memory_space<vmem>>, vector<10x8x64xf32>
    %104 = tpu.concatenate %101, %102, %103 in 2 : vector<10x8x64xf32>, vector<10x8x64xf32>, vector<10x8x64xf32> -> vector<10x8x192xf32>
    %105 = vector.shape_cast %104 : vector<10x8x192xf32> to vector<80x192xf32>
    %106 = arith.truncf %105 : vector<80x192xf32> to vector<80x192xbf16>
    %107 = vector.extract_strided_slice %106 {offsets = [0, 0], sizes = [64, 192], strides = [1, 1]} : vector<80x192xbf16> to vector<64x192xbf16>
    %c0_100 = arith.constant 0 : index
    %c0_101 = arith.constant 0 : index
    %c0_102 = arith.constant 0 : index
    %108 = vector.load %arg5[%c0_100, %c0_101, %c0_102] : memref<3x192x128xbf16, #tpu.memory_space<vmem>>, vector<1x192x128xbf16>
    %109 = vector.shape_cast %108 : vector<1x192x128xbf16> to vector<192x128xbf16>
    %cst_103 = arith.constant dense<0.000000e+00> : vector<64x128xf32>
    %110 = tpu.matmul %107, %109, %cst_103 {dimension_numbers = #tpu.dot_dimension_numbers<[1], [0], [0], [1], [0, 0, 1, 1], [], []>} : vector<64x192xbf16>, vector<192x128xbf16>, vector<64x128xf32> -> vector<64x128xf32>
    %111 = vector.extract_strided_slice %106 {offsets = [8, 0], sizes = [64, 192], strides = [1, 1]} : vector<80x192xbf16> to vector<64x192xbf16>
    %c1_104 = arith.constant 1 : index
    %c0_105 = arith.constant 0 : index
    %c0_106 = arith.constant 0 : index
    %112 = vector.load %arg5[%c1_104, %c0_105, %c0_106] : memref<3x192x128xbf16, #tpu.memory_space<vmem>>, vector<1x192x128xbf16>
    %113 = vector.shape_cast %112 : vector<1x192x128xbf16> to vector<192x128xbf16>
    %cst_107 = arith.constant dense<0.000000e+00> : vector<64x128xf32>
    %114 = tpu.matmul %111, %113, %cst_107 {dimension_numbers = #tpu.dot_dimension_numbers<[1], [0], [0], [1], [0, 0, 1, 1], [], []>} : vector<64x192xbf16>, vector<192x128xbf16>, vector<64x128xf32> -> vector<64x128xf32>
    %115 = arith.addf %110, %114 : vector<64x128xf32>
    %116 = vector.extract_strided_slice %106 {offsets = [16, 0], sizes = [64, 192], strides = [1, 1]} : vector<80x192xbf16> to vector<64x192xbf16>
    %c2_108 = arith.constant 2 : index
    %c0_109 = arith.constant 0 : index
    %c0_110 = arith.constant 0 : index
    %117 = vector.load %arg5[%c2_108, %c0_109, %c0_110] : memref<3x192x128xbf16, #tpu.memory_space<vmem>>, vector<1x192x128xbf16>
    %118 = vector.shape_cast %117 : vector<1x192x128xbf16> to vector<192x128xbf16>
    %cst_111 = arith.constant dense<0.000000e+00> : vector<64x128xf32>
    %119 = tpu.matmul %116, %118, %cst_111 {dimension_numbers = #tpu.dot_dimension_numbers<[1], [0], [0], [1], [0, 0, 1, 1], [], []>} : vector<64x192xbf16>, vector<192x128xbf16>, vector<64x128xf32> -> vector<64x128xf32>
    %120 = arith.addf %115, %119 : vector<64x128xf32>
    %c0_112 = arith.constant 0 : index
    %c0_113 = arith.constant 0 : index
    %121 = vector.load %arg6[%c0_112, %c0_113] : memref<1x128xf32, #tpu.memory_space<vmem>>, vector<1x128xf32>
    %122 = vector.broadcast %121 : vector<1x128xf32> to vector<64x128xf32>
    %123 = arith.addf %120, %122 : vector<64x128xf32>
    %cst_114 = arith.constant 0.000000e+00 : f32
    %124 = vector.broadcast %cst_114 : f32 to vector<64x128xf32>
    %125 = arith.cmpf ogt, %123, %124 : vector<64x128xf32>
    %cst_115 = arith.constant 2.000000e-01 : f32
    %126 = vector.broadcast %cst_115 : f32 to vector<64x128xf32>
    %127 = arith.mulf %126, %123 : vector<64x128xf32>
    %128 = arith.select %125, %123, %127 : vector<64x128xi1>, vector<64x128xf32>
    %129 = vector.shape_cast %128 : vector<64x128xf32> to vector<4x2x8x128xf32>
    %130 = vector.extract_strided_slice %129 {offsets = [0, 0, 0, 0], sizes = [4, 1, 8, 128], strides = [1, 1, 1, 1]} : vector<4x2x8x128xf32> to vector<4x1x8x128xf32>
    %131 = vector.shape_cast %130 : vector<4x1x8x128xf32> to vector<4x8x128xf32>
    %132 = vector.extract_strided_slice %129 {offsets = [0, 1, 0, 0], sizes = [4, 1, 8, 128], strides = [1, 1, 1, 1]} : vector<4x2x8x128xf32> to vector<4x1x8x128xf32>
    %133 = vector.shape_cast %132 : vector<4x1x8x128xf32> to vector<4x8x128xf32>
    %134 = arith.maximumf %131, %133 : vector<4x8x128xf32>
    %135 = vector.shape_cast %134 : vector<4x8x128xf32> to vector<4x4x2x128xf32>
    %136 = vector.extract_strided_slice %135 {offsets = [0, 0, 0, 0], sizes = [4, 4, 1, 128], strides = [1, 1, 1, 1]} : vector<4x4x2x128xf32> to vector<4x4x1x128xf32>
    %137 = vector.shape_cast %136 : vector<4x4x1x128xf32> to vector<4x4x128xf32>
    %138 = vector.extract_strided_slice %135 {offsets = [0, 0, 1, 0], sizes = [4, 4, 1, 128], strides = [1, 1, 1, 1]} : vector<4x4x2x128xf32> to vector<4x4x1x128xf32>
    %139 = vector.shape_cast %138 : vector<4x4x1x128xf32> to vector<4x4x128xf32>
    %140 = arith.maximumf %137, %139 : vector<4x4x128xf32>
    %141 = vector.extract_strided_slice %140 {offsets = [0, 0, 0], sizes = [4, 4, 16], strides = [1, 1, 1]} : vector<4x4x128xf32> to vector<4x4x16xf32>
    %142 = vector.extract_strided_slice %140 {offsets = [0, 0, 16], sizes = [4, 4, 16], strides = [1, 1, 1]} : vector<4x4x128xf32> to vector<4x4x16xf32>
    %143 = arith.maximumf %141, %142 : vector<4x4x16xf32>
    %144 = vector.extract_strided_slice %140 {offsets = [0, 0, 32], sizes = [4, 4, 16], strides = [1, 1, 1]} : vector<4x4x128xf32> to vector<4x4x16xf32>
    %145 = vector.extract_strided_slice %140 {offsets = [0, 0, 48], sizes = [4, 4, 16], strides = [1, 1, 1]} : vector<4x4x128xf32> to vector<4x4x16xf32>
    %146 = arith.maximumf %144, %145 : vector<4x4x16xf32>
    %147 = vector.extract_strided_slice %140 {offsets = [0, 0, 64], sizes = [4, 4, 16], strides = [1, 1, 1]} : vector<4x4x128xf32> to vector<4x4x16xf32>
    %148 = vector.extract_strided_slice %140 {offsets = [0, 0, 80], sizes = [4, 4, 16], strides = [1, 1, 1]} : vector<4x4x128xf32> to vector<4x4x16xf32>
    %149 = arith.maximumf %147, %148 : vector<4x4x16xf32>
    %150 = vector.extract_strided_slice %140 {offsets = [0, 0, 96], sizes = [4, 4, 16], strides = [1, 1, 1]} : vector<4x4x128xf32> to vector<4x4x16xf32>
    %151 = vector.extract_strided_slice %140 {offsets = [0, 0, 112], sizes = [4, 4, 16], strides = [1, 1, 1]} : vector<4x4x128xf32> to vector<4x4x16xf32>
    %152 = arith.maximumf %150, %151 : vector<4x4x16xf32>
    %153 = tpu.concatenate %143, %146, %149, %152 in 2 : vector<4x4x16xf32>, vector<4x4x16xf32>, vector<4x4x16xf32>, vector<4x4x16xf32> -> vector<4x4x64xf32>
    %c1_116 = arith.constant 1 : index
    %c1_117 = arith.constant 1 : index
    %c0_118 = arith.constant 0 : index
    %154 = vector.load %arg17[%c1_116, %c1_117, %c0_118] : memref<6x6x64xf32, #tpu.memory_space<vmem>>, vector<4x4x64xf32>
    tpu.vector_store %arg17[%c1_116, %c1_117, %c0_118], %153 {strides = array<i32>} : memref<6x6x64xf32, #tpu.memory_space<vmem>>, vector<4x4x64xf32>,
    %c0_119 = arith.constant 0 : index
    %c0_120 = arith.constant 0 : index
    %c0_121 = arith.constant 0 : index
    %155 = vector.load %arg17[%c0_119, %c0_120, %c0_121] : memref<6x6x64xf32, #tpu.memory_space<vmem>>, vector<6x4x64xf32>
    %c0_122 = arith.constant 0 : index
    %c1_123 = arith.constant 1 : index
    %c0_124 = arith.constant 0 : index
    %156 = vector.load %arg17[%c0_122, %c1_123, %c0_124] : memref<6x6x64xf32, #tpu.memory_space<vmem>>, vector<6x4x64xf32>
    %c0_125 = arith.constant 0 : index
    %c2_126 = arith.constant 2 : index
    %c0_127 = arith.constant 0 : index
    %157 = vector.load %arg17[%c0_125, %c2_126, %c0_127] : memref<6x6x64xf32, #tpu.memory_space<vmem>>, vector<6x4x64xf32>
    %158 = tpu.concatenate %155, %156, %157 in 2 : vector<6x4x64xf32>, vector<6x4x64xf32>, vector<6x4x64xf32> -> vector<6x4x192xf32>
    %159 = vector.shape_cast %158 : vector<6x4x192xf32> to vector<24x192xf32>
    %160 = arith.truncf %159 : vector<24x192xf32> to vector<24x192xbf16>
    %161 = vector.extract_strided_slice %160 {offsets = [0, 0], sizes = [16, 192], strides = [1, 1]} : vector<24x192xbf16> to vector<16x192xbf16>
    %c0_128 = arith.constant 0 : index
    %c0_129 = arith.constant 0 : index
    %c0_130 = arith.constant 0 : index
    %162 = vector.load %arg7[%c0_128, %c0_129, %c0_130] : memref<3x192x128xbf16, #tpu.memory_space<vmem>>, vector<1x192x128xbf16>
    %163 = vector.shape_cast %162 : vector<1x192x128xbf16> to vector<192x128xbf16>
    %cst_131 = arith.constant dense<0.000000e+00> : vector<16x128xf32>
    %164 = tpu.matmul %161, %163, %cst_131 {dimension_numbers = #tpu.dot_dimension_numbers<[1], [0], [0], [1], [0, 0, 1, 1], [], []>} : vector<16x192xbf16>, vector<192x128xbf16>, vector<16x128xf32> -> vector<16x128xf32>
    %165 = vector.extract_strided_slice %160 {offsets = [4, 0], sizes = [16, 192], strides = [1, 1]} : vector<24x192xbf16> to vector<16x192xbf16>
    %c1_132 = arith.constant 1 : index
    %c0_133 = arith.constant 0 : index
    %c0_134 = arith.constant 0 : index
    %166 = vector.load %arg7[%c1_132, %c0_133, %c0_134] : memref<3x192x128xbf16, #tpu.memory_space<vmem>>, vector<1x192x128xbf16>
    %167 = vector.shape_cast %166 : vector<1x192x128xbf16> to vector<192x128xbf16>
    %cst_135 = arith.constant dense<0.000000e+00> : vector<16x128xf32>
    %168 = tpu.matmul %165, %167, %cst_135 {dimension_numbers = #tpu.dot_dimension_numbers<[1], [0], [0], [1], [0, 0, 1, 1], [], []>} : vector<16x192xbf16>, vector<192x128xbf16>, vector<16x128xf32> -> vector<16x128xf32>
    %169 = arith.addf %164, %168 : vector<16x128xf32>
    %170 = vector.extract_strided_slice %160 {offsets = [8, 0], sizes = [16, 192], strides = [1, 1]} : vector<24x192xbf16> to vector<16x192xbf16>
    %c2_136 = arith.constant 2 : index
    %c0_137 = arith.constant 0 : index
    %c0_138 = arith.constant 0 : index
    %171 = vector.load %arg7[%c2_136, %c0_137, %c0_138] : memref<3x192x128xbf16, #tpu.memory_space<vmem>>, vector<1x192x128xbf16>
    %172 = vector.shape_cast %171 : vector<1x192x128xbf16> to vector<192x128xbf16>
    %cst_139 = arith.constant dense<0.000000e+00> : vector<16x128xf32>
    %173 = tpu.matmul %170, %172, %cst_139 {dimension_numbers = #tpu.dot_dimension_numbers<[1], [0], [0], [1], [0, 0, 1, 1], [], []>} : vector<16x192xbf16>, vector<192x128xbf16>, vector<16x128xf32> -> vector<16x128xf32>
    %174 = arith.addf %169, %173 : vector<16x128xf32>
    %c0_140 = arith.constant 0 : index
    %c0_141 = arith.constant 0 : index
    %175 = vector.load %arg8[%c0_140, %c0_141] : memref<1x128xf32, #tpu.memory_space<vmem>>, vector<1x128xf32>
    %176 = vector.broadcast %175 : vector<1x128xf32> to vector<16x128xf32>
    %177 = arith.addf %174, %176 : vector<16x128xf32>
    %cst_142 = arith.constant 0.000000e+00 : f32
    %178 = vector.broadcast %cst_142 : f32 to vector<16x128xf32>
    %179 = arith.cmpf ogt, %177, %178 : vector<16x128xf32>
    %cst_143 = arith.constant 2.000000e-01 : f32
    %180 = vector.broadcast %cst_143 : f32 to vector<16x128xf32>
    %181 = arith.mulf %180, %177 : vector<16x128xf32>
    %182 = arith.select %179, %177, %181 : vector<16x128xi1>, vector<16x128xf32>
    %183 = vector.shape_cast %182 : vector<16x128xf32> to vector<2x2x4x128xf32>
    %184 = vector.extract_strided_slice %183 {offsets = [0, 0, 0, 0], sizes = [2, 1, 4, 128], strides = [1, 1, 1, 1]} : vector<2x2x4x128xf32> to vector<2x1x4x128xf32>
    %185 = vector.shape_cast %184 : vector<2x1x4x128xf32> to vector<2x4x128xf32>
    %186 = vector.extract_strided_slice %183 {offsets = [0, 1, 0, 0], sizes = [2, 1, 4, 128], strides = [1, 1, 1, 1]} : vector<2x2x4x128xf32> to vector<2x1x4x128xf32>
    %187 = vector.shape_cast %186 : vector<2x1x4x128xf32> to vector<2x4x128xf32>
    %188 = arith.maximumf %185, %187 : vector<2x4x128xf32>
    %189 = vector.shape_cast %188 : vector<2x4x128xf32> to vector<2x2x2x128xf32>
    %190 = vector.extract_strided_slice %189 {offsets = [0, 0, 0, 0], sizes = [2, 2, 1, 128], strides = [1, 1, 1, 1]} : vector<2x2x2x128xf32> to vector<2x2x1x128xf32>
    %191 = vector.shape_cast %190 : vector<2x2x1x128xf32> to vector<2x2x128xf32>
    %192 = vector.extract_strided_slice %189 {offsets = [0, 0, 1, 0], sizes = [2, 2, 1, 128], strides = [1, 1, 1, 1]} : vector<2x2x2x128xf32> to vector<2x2x1x128xf32>
    %193 = vector.shape_cast %192 : vector<2x2x1x128xf32> to vector<2x2x128xf32>
    %194 = arith.maximumf %191, %193 : vector<2x2x128xf32>
    %195 = vector.extract_strided_slice %194 {offsets = [0, 0, 0], sizes = [2, 2, 32], strides = [1, 1, 1]} : vector<2x2x128xf32> to vector<2x2x32xf32>
    %196 = vector.extract_strided_slice %194 {offsets = [0, 0, 32], sizes = [2, 2, 32], strides = [1, 1, 1]} : vector<2x2x128xf32> to vector<2x2x32xf32>
    %197 = arith.maximumf %195, %196 : vector<2x2x32xf32>
    %198 = vector.extract_strided_slice %194 {offsets = [0, 0, 64], sizes = [2, 2, 32], strides = [1, 1, 1]} : vector<2x2x128xf32> to vector<2x2x32xf32>
    %199 = vector.extract_strided_slice %194 {offsets = [0, 0, 96], sizes = [2, 2, 32], strides = [1, 1, 1]} : vector<2x2x128xf32> to vector<2x2x32xf32>
    %200 = arith.maximumf %198, %199 : vector<2x2x32xf32>
    %201 = tpu.concatenate %197, %200 in 2 : vector<2x2x32xf32>, vector<2x2x32xf32> -> vector<2x2x64xf32>
    %c1_144 = arith.constant 1 : index
    %c1_145 = arith.constant 1 : index
    %c0_146 = arith.constant 0 : index
    %202 = vector.load %arg18[%c1_144, %c1_145, %c0_146] : memref<4x4x64xf32, #tpu.memory_space<vmem>>, vector<2x2x64xf32>
    tpu.vector_store %arg18[%c1_144, %c1_145, %c0_146], %201 {strides = array<i32>} : memref<4x4x64xf32, #tpu.memory_space<vmem>>, vector<2x2x64xf32>,
    %c0_147 = arith.constant 0 : index
    %c0_148 = arith.constant 0 : index
    %c0_149 = arith.constant 0 : index
    %203 = vector.load %arg18[%c0_147, %c0_148, %c0_149] : memref<4x4x64xf32, #tpu.memory_space<vmem>>, vector<4x2x64xf32>
    %c0_150 = arith.constant 0 : index
    %c1_151 = arith.constant 1 : index
    %c0_152 = arith.constant 0 : index
    %204 = vector.load %arg18[%c0_150, %c1_151, %c0_152] : memref<4x4x64xf32, #tpu.memory_space<vmem>>, vector<4x2x64xf32>
    %c0_153 = arith.constant 0 : index
    %c2_154 = arith.constant 2 : index
    %c0_155 = arith.constant 0 : index
    %205 = vector.load %arg18[%c0_153, %c2_154, %c0_155] : memref<4x4x64xf32, #tpu.memory_space<vmem>>, vector<4x2x64xf32>
    %206 = tpu.concatenate %203, %204, %205 in 2 : vector<4x2x64xf32>, vector<4x2x64xf32>, vector<4x2x64xf32> -> vector<4x2x192xf32>
    %207 = vector.shape_cast %206 : vector<4x2x192xf32> to vector<8x192xf32>
    %208 = arith.truncf %207 : vector<8x192xf32> to vector<8x192xbf16>
    %209 = vector.extract_strided_slice %208 {offsets = [0, 0], sizes = [4, 192], strides = [1, 1]} : vector<8x192xbf16> to vector<4x192xbf16>
    %c0_156 = arith.constant 0 : index
    %c0_157 = arith.constant 0 : index
    %c0_158 = arith.constant 0 : index
    %210 = vector.load %arg9[%c0_156, %c0_157, %c0_158] : memref<3x192x64xbf16, #tpu.memory_space<vmem>>, vector<1x192x64xbf16>
    %211 = vector.shape_cast %210 : vector<1x192x64xbf16> to vector<192x64xbf16>
    %cst_159 = arith.constant dense<0.000000e+00> : vector<4x64xf32>
    %212 = tpu.matmul %209, %211, %cst_159 {dimension_numbers = #tpu.dot_dimension_numbers<[1], [0], [0], [1], [0, 0, 1, 1], [], []>} : vector<4x192xbf16>, vector<192x64xbf16>, vector<4x64xf32> -> vector<4x64xf32>
    %213 = vector.extract_strided_slice %208 {offsets = [2, 0], sizes = [4, 192], strides = [1, 1]} : vector<8x192xbf16> to vector<4x192xbf16>
    %c1_160 = arith.constant 1 : index
    %c0_161 = arith.constant 0 : index
    %c0_162 = arith.constant 0 : index
    %214 = vector.load %arg9[%c1_160, %c0_161, %c0_162] : memref<3x192x64xbf16, #tpu.memory_space<vmem>>, vector<1x192x64xbf16>
    %215 = vector.shape_cast %214 : vector<1x192x64xbf16> to vector<192x64xbf16>
    %cst_163 = arith.constant dense<0.000000e+00> : vector<4x64xf32>
    %216 = tpu.matmul %213, %215, %cst_163 {dimension_numbers = #tpu.dot_dimension_numbers<[1], [0], [0], [1], [0, 0, 1, 1], [], []>} : vector<4x192xbf16>, vector<192x64xbf16>, vector<4x64xf32> -> vector<4x64xf32>
    %217 = arith.addf %212, %216 : vector<4x64xf32>
    %218 = vector.extract_strided_slice %208 {offsets = [4, 0], sizes = [4, 192], strides = [1, 1]} : vector<8x192xbf16> to vector<4x192xbf16>
    %c2_164 = arith.constant 2 : index
    %c0_165 = arith.constant 0 : index
    %c0_166 = arith.constant 0 : index
    %219 = vector.load %arg9[%c2_164, %c0_165, %c0_166] : memref<3x192x64xbf16, #tpu.memory_space<vmem>>, vector<1x192x64xbf16>
    %220 = vector.shape_cast %219 : vector<1x192x64xbf16> to vector<192x64xbf16>
    %cst_167 = arith.constant dense<0.000000e+00> : vector<4x64xf32>
    %221 = tpu.matmul %218, %220, %cst_167 {dimension_numbers = #tpu.dot_dimension_numbers<[1], [0], [0], [1], [0, 0, 1, 1], [], []>} : vector<4x192xbf16>, vector<192x64xbf16>, vector<4x64xf32> -> vector<4x64xf32>
    %222 = arith.addf %217, %221 : vector<4x64xf32>
    %c0_168 = arith.constant 0 : index
    %c0_169 = arith.constant 0 : index
    %223 = vector.load %arg10[%c0_168, %c0_169] : memref<1x64xf32, #tpu.memory_space<vmem>>, vector<1x64xf32>
    %224 = vector.broadcast %223 : vector<1x64xf32> to vector<4x64xf32>
    %225 = arith.addf %222, %224 : vector<4x64xf32>
    %cst_170 = arith.constant 0.000000e+00 : f32
    %226 = vector.broadcast %cst_170 : f32 to vector<4x64xf32>
    %227 = arith.cmpf ogt, %225, %226 : vector<4x64xf32>
    %cst_171 = arith.constant 2.000000e-01 : f32
    %228 = vector.broadcast %cst_171 : f32 to vector<4x64xf32>
    %229 = arith.mulf %228, %225 : vector<4x64xf32>
    %230 = arith.select %227, %225, %229 : vector<4x64xi1>, vector<4x64xf32>
    %cst_172 = arith.constant dense<0.000000e+00> : vector<64xf32>
    %231 = vector.multi_reduction <add>, %230, %cst_172 [0] : vector<4x64xf32> to vector<64xf32>
    %232 = vector.shape_cast %231 : vector<64xf32> to vector<1x64xf32>
    %c0_173 = arith.constant 0 : index
    %c0_174 = arith.constant 0 : index
    %233 = vector.load %arg11[%c0_173, %c0_174] : memref<64x64xf32, #tpu.memory_space<vmem>>, vector<64x64xf32>
    %cst_175 = arith.constant dense<0.000000e+00> : vector<1x64xf32>
    %234 = tpu.matmul %232, %233, %cst_175 {dimension_numbers = #tpu.dot_dimension_numbers<[1], [0], [0], [1], [0, 0, 1, 1], [], []>} : vector<1x64xf32>, vector<64x64xf32>, vector<1x64xf32> -> vector<1x64xf32>
    %c0_176 = arith.constant 0 : index
    %c0_177 = arith.constant 0 : index
    %c0_178 = arith.constant 0 : index
    %235 = vector.load %arg2[%c0_176, %c0_177, %c0_178] : memref<1x1x1xf32, #tpu.memory_space<vmem>>, vector<1x1x1xf32>
    %236 = vector.shape_cast %235 : vector<1x1x1xf32> to vector<1x1xf32>
    %c0_179 = arith.constant 0 : index
    %c0_180 = arith.constant 0 : index
    %237 = vector.load %arg12[%c0_179, %c0_180] : memref<1x64xf32, #tpu.memory_space<vmem>>, vector<1x64xf32>
    %238 = vector.broadcast %236 : vector<1x1xf32> to vector<1x64xf32>
    %239 = arith.mulf %238, %237 : vector<1x64xf32>
    %240 = arith.addf %234, %239 : vector<1x64xf32>
    %c0_181 = arith.constant 0 : index
    %c0_182 = arith.constant 0 : index
    %241 = vector.load %arg13[%c0_181, %c0_182] : memref<1x64xf32, #tpu.memory_space<vmem>>, vector<1x64xf32>
    %242 = arith.addf %240, %241 : vector<1x64xf32>
    %cst_183 = arith.constant 0.000000e+00 : f32
    %243 = vector.broadcast %cst_183 : f32 to vector<1x64xf32>
    %244 = arith.maximumf %242, %243 : vector<1x64xf32>
    %c0_184 = arith.constant 0 : index
    %c0_185 = arith.constant 0 : index
    %c0_186 = arith.constant 0 : index
    %245 = vector.load %arg14[%c0_184, %c0_185, %c0_186] : memref<1x1x64xf32, #tpu.memory_space<vmem>>, vector<1x1x64xf32>
    %246 = vector.shape_cast %245 : vector<1x1x64xf32> to vector<1x64xf32>
    %247 = vector.shape_cast %244 : vector<1x64xf32> to vector<1x1x64xf32>
    tpu.vector_store %arg14[%c0_184, %c0_185, %c0_186], %247 {strides = array<i32>} : memref<1x1x64xf32, #tpu.memory_space<vmem>>, vector<1x1x64xf32>,
    return
  }
  func.func @transform_0(%arg0: i32) -> (i32, i32, i32, i32) {
    %c0_i32 = arith.constant 0 : i32
    %c0_i32_0 = arith.constant 0 : i32
    %c0_i32_1 = arith.constant 0 : i32
    %c0_i32_2 = arith.constant 0 : i32
    return %arg0, %c0_i32, %c0_i32_0, %c0_i32_1 : i32, i32, i32, i32
  }
  func.func @transform_1(%arg0: i32) -> (i32, i32, i32) {
    %c0_i32 = arith.constant 0 : i32
    %c0_i32_0 = arith.constant 0 : i32
    %c0_i32_1 = arith.constant 0 : i32
    return %arg0, %c0_i32, %c0_i32_0 : i32, i32, i32
  }
  func.func @transform_2(%arg0: i32) -> (i32, i32, i32) {
    %c0_i32 = arith.constant 0 : i32
    %c0_i32_0 = arith.constant 0 : i32
    %c0_i32_1 = arith.constant 0 : i32
    %c0_i32_2 = arith.constant 0 : i32
    return %c0_i32, %c0_i32_0, %c0_i32_1 : i32, i32, i32
  }
  func.func @transform_3(%arg0: i32) -> (i32, i32) {
    %c0_i32 = arith.constant 0 : i32
    %c0_i32_0 = arith.constant 0 : i32
    %c0_i32_1 = arith.constant 0 : i32
    return %c0_i32, %c0_i32_0 : i32, i32
  }
  func.func @transform_4(%arg0: i32) -> (i32, i32, i32) {
    %c0_i32 = arith.constant 0 : i32
    %c0_i32_0 = arith.constant 0 : i32
    %c0_i32_1 = arith.constant 0 : i32
    %c0_i32_2 = arith.constant 0 : i32
    return %c0_i32, %c0_i32_0, %c0_i32_1 : i32, i32, i32
  }
  func.func @transform_5(%arg0: i32) -> (i32, i32) {
    %c0_i32 = arith.constant 0 : i32
    %c0_i32_0 = arith.constant 0 : i32
    %c0_i32_1 = arith.constant 0 : i32
    return %c0_i32, %c0_i32_0 : i32, i32
  }
  func.func @transform_6(%arg0: i32) -> (i32, i32, i32) {
    %c0_i32 = arith.constant 0 : i32
    %c0_i32_0 = arith.constant 0 : i32
    %c0_i32_1 = arith.constant 0 : i32
    %c0_i32_2 = arith.constant 0 : i32
    return %c0_i32, %c0_i32_0, %c0_i32_1 : i32, i32, i32
  }
  func.func @transform_7(%arg0: i32) -> (i32, i32) {
    %c0_i32 = arith.constant 0 : i32
    %c0_i32_0 = arith.constant 0 : i32
    %c0_i32_1 = arith.constant 0 : i32
    return %c0_i32, %c0_i32_0 : i32, i32
  }
  func.func @transform_8(%arg0: i32) -> (i32, i32, i32) {
    %c0_i32 = arith.constant 0 : i32
    %c0_i32_0 = arith.constant 0 : i32
    %c0_i32_1 = arith.constant 0 : i32
    %c0_i32_2 = arith.constant 0 : i32
    return %c0_i32, %c0_i32_0, %c0_i32_1 : i32, i32, i32
  }
  func.func @transform_9(%arg0: i32) -> (i32, i32) {
    %c0_i32 = arith.constant 0 : i32
    %c0_i32_0 = arith.constant 0 : i32
    %c0_i32_1 = arith.constant 0 : i32
    return %c0_i32, %c0_i32_0 : i32, i32
  }
  func.func @transform_10(%arg0: i32) -> (i32, i32) {
    %c0_i32 = arith.constant 0 : i32
    %c0_i32_0 = arith.constant 0 : i32
    %c0_i32_1 = arith.constant 0 : i32
    return %c0_i32, %c0_i32_0 : i32, i32
  }
  func.func @transform_11(%arg0: i32) -> (i32, i32) {
    %c0_i32 = arith.constant 0 : i32
    %c0_i32_0 = arith.constant 0 : i32
    %c0_i32_1 = arith.constant 0 : i32
    return %c0_i32, %c0_i32_0 : i32, i32
  }
  func.func @transform_12(%arg0: i32) -> (i32, i32) {
    %c0_i32 = arith.constant 0 : i32
    %c0_i32_0 = arith.constant 0 : i32
    %c0_i32_1 = arith.constant 0 : i32
    return %c0_i32, %c0_i32_0 : i32, i32
  }
  func.func @transform_13(%arg0: i32) -> (i32, i32, i32) {
    %c0_i32 = arith.constant 0 : i32
    %c0_i32_0 = arith.constant 0 : i32
    %c0_i32_1 = arith.constant 0 : i32
    return %arg0, %c0_i32, %c0_i32_0 : i32, i32, i32
  }
}

</mosaic_0001>

<bundles_post_ra>
// kernel: tile.28
= control target key start
LH: loop header
LB: loop body
LE: loop exit
PB: predicated region body
PF: predicated region fallthrough
CT: control target
= control target key end

     0   :  { %s28_s0 = inlined_call_operand.vmem [shape: f32[8], index: 0, kind: input, shape index: {}]   ;;  %s29_s1 = inlined_call_operand.vmem [shape: f32[16,8], index: 1, kind: output, shape index: {}]  }
   0x1   :  { %v4_v0 = vld [vmem:[%s28_s0] ss:$0 sm:$0xff] }
   0x2   :  { %5 = vst [vmem:[%s29_s1] sm:$0xff] %v4_v0  ;;  %8 = vst [vmem:[%s29_s1 + $0x8] sm:$0xff] %v4_v0 }

// kernel: tile.29
= control target key start
LH: loop header
LB: loop body
LE: loop exit
PB: predicated region body
PF: predicated region fallthrough
CT: control target
= control target key end

     0   :  { %s133_s10 = smov 120   ;;  %s134_s11 = smov 104   ;;  %vm3_vm0 = vcmask 64512   ;;  %vm9_vm1 = vcmask 1048512   ;;  %vm15_vm2 = vcmask 982912   ;;  %vm21_vm3 = vcmask 917312   ;;  %s209_s0 = inlined_call_operand.vmem [shape: f32[16,8], index: 0, kind: input, shape index: {}]   ;;  %s210_s1 = inlined_call_operand.vmem [shape: f32[1,128], index: 1, kind: output, shape index: {}]  }
   0x1   :  { %v103_v0 = vld [vmem:[%s209_s0 + $0xf] sm:$0x1]   ;;  %v105_v1 = vld [vmem:[%s209_s0 + $0xd] sm:$0x1]   ;;  %v104_v2 = vld [vmem:[%s209_s0 + $0xe] sm:$0x1]  }
   0x2   :  { %7 = vrot.lane.b32.xlu0 %v103_v0, %s133_s10  ;;  %19 = vrot.lane.b32.xlu1 %v105_v1, %s134_s11  ;;  %v106_v3 = vld [vmem:[%s209_s0 + $0xc] sm:$0x1]   ;;  %s135_s16 = smov 112   ;;  %s136_s17 = smov 96   ;;  %v107_v4 = vld [vmem:[%s209_s0 + $0xb] sm:$0x1]  }
   0x3   :  { %v108_v5 = vld [vmem:[%s209_s0 + $0xa] sm:$0x1]   ;;  %v2_v6 = vld [vmem:[%s209_s0] sm:$0x1]   ;;  %s137_s24 = smov 88   ;;  %s138_s25 = smov 80  }
   0x4   :  { %4 = vst.msk [vmem:[#allocation0] sm:$0x1] %vm3_vm0, %v2_v6   ;;  %v109_v7 = vld [vmem:[%s209_s0 + $0x9] sm:$0x1]   ;;  %v110_v8 = vld [vmem:[%s209_s0 + $0x8] sm:$0x1]  }
   0x5   :  { %s139_s30 = smov 72   ;;  %s140_s2 = smov 64   ;;  %v111_v9 = vld [vmem:[%s209_s0 + $0x7] sm:$0x1]   ;;  %v112_v10 = vld [vmem:[%s209_s0 + $0x6] sm:$0x1]  }
   0x6   :  { %13 = vrot.lane.b32.xlu0 %v104_v2, %s135_s16  ;;  %25 = vrot.lane.b32.xlu1 %v106_v3, %s136_s17  ;;  %s141_s7 = smov 56   ;;  %s142_s8 = smov 48   ;;  %v113_v11 = vld [vmem:[%s209_s0 + $0x5] sm:$0x1]   ;;  %v114_v12 = vld [vmem:[%s209_s0 + $0x4] sm:$0x1]  }
   0x7   :  { %s143_s13 = smov 40   ;;  %s144_s14 = smov 32   ;;  %v115_v13 = vld [vmem:[%s209_s0 + $0x3] sm:$0x1]   ;;  %v116_v14 = vld [vmem:[%s209_s0 + $0x2] sm:$0x1]  }
   0x8   :  { %s145_s19 = smov 24   ;;  %s146_s20 = smov 16   ;;  %v117_v15 = vld [vmem:[%s209_s0 + $0x1] sm:$0x1]   ;;  %vm27_vm4 = vcmask 851712   ;;  %vm33_vm5 = vcmask 786112  }
   0x9   :  { %s147_s0 = smov 8   ;;  %vm39_vm6 = vcmask 720512   ;;  %vm45_vm7 = vcmask 654912   ;;  %vm51_vm8 = vcmask 589312   ;;  %vm57_vm9 = vcmask 523712  }
   0xa   :  { %31 = vrot.lane.b32.xlu0 %v107_v4, %s137_s24  ;;  %37 = vrot.lane.b32.xlu1 %v108_v5, %s138_s25  ;;  %vm63_vm10 = vcmask 458112   ;;  %vm69_vm11 = vcmask 392512   ;;  %vm75_vm12 = vcmask 326912   ;;  %vm81_vm13 = vcmask 261312  }
   0xb   :  { %vm87_vm14 = vcmask 195712   ;;  %vm93_vm15 = vcmask 130112  }
   0xe   :  { %43 = vrot.lane.b32.xlu0 %v109_v7, %s139_s30  ;;  %49 = vrot.lane.b32.xlu1 %v110_v8, %s140_s2 }
  0x12   :  { %55 = vrot.lane.b32.xlu0 %v111_v9, %s141_s7  ;;  %61 = vrot.lane.b32.xlu1 %v112_v10, %s142_s8 }
  0x16   :  { %67 = vrot.lane.b32.xlu0 %v113_v11, %s143_s13  ;;  %73 = vrot.lane.b32.xlu1 %v114_v12, %s144_s14 }
  0x1a   :  { %79 = vrot.lane.b32.xlu0 %v115_v13, %s145_s19  ;;  %85 = vrot.lane.b32.xlu1 %v116_v14, %s146_s20 }
  0x1e   :  { %91 = vrot.lane.b32.xlu0 %v117_v15, %s147_s0 }
  0x74   :  { %v8_v16 = vpop.permute.xlu0 %7   ;;  %v20_v17 = vpop.permute.xlu1 %19  }
  0x75   :  { %10 = vst.msk [vmem:[#allocation0] sm:$0x1] %vm9_vm1, %v8_v16  }
  0x78   :  { %v14_v18 = vpop.permute.xlu0 %13   ;;  %v26_v19 = vpop.permute.xlu1 %25  }
  0x79   :  { %16 = vst.msk [vmem:[#allocation0] sm:$0x1] %vm15_vm2, %v14_v18  }
  0x7a   :  { %22 = vst.msk [vmem:[#allocation0] sm:$0x1] %vm21_vm3, %v20_v17  }
  0x7b   :  { %28 = vst.msk [vmem:[#allocation0] sm:$0x1] %vm27_vm4, %v26_v19  }
  0x7c   :  { %v32_v20 = vpop.permute.xlu0 %31   ;;  %v38_v21 = vpop.permute.xlu1 %37  }
  0x7d   :  { %34 = vst.msk [vmem:[#allocation0] sm:$0x1] %vm33_vm5, %v32_v20  }
  0x7e   :  { %40 = vst.msk [vmem:[#allocation0] sm:$0x1] %vm39_vm6, %v38_v21  }
  0x80   :  { %v44_v22 = vpop.permute.xlu0 %43   ;;  %v50_v23 = vpop.permute.xlu1 %49  }
  0x81   :  { %46 = vst.msk [vmem:[#allocation0] sm:$0x1] %vm45_vm7, %v44_v22  }
  0x82   :  { %52 = vst.msk [vmem:[#allocation0] sm:$0x1] %vm51_vm8, %v50_v23  }
  0x84   :  { %v56_v24 = vpop.permute.xlu0 %55   ;;  %v62_v25 = vpop.permute.xlu1 %61  }
  0x85   :  { %58 = vst.msk [vmem:[#allocation0] sm:$0x1] %vm57_vm9, %v56_v24  }
  0x86   :  { %64 = vst.msk [vmem:[#allocation0] sm:$0x1] %vm63_vm10, %v62_v25  }
  0x88   :  { %v68_v26 = vpop.permute.xlu0 %67   ;;  %v74_v27 = vpop.permute.xlu1 %73  }
  0x89   :  { %70 = vst.msk [vmem:[#allocation0] sm:$0x1] %vm69_vm11, %v68_v26  }
  0x8a   :  { %76 = vst.msk [vmem:[#allocation0] sm:$0x1] %vm75_vm12, %v74_v27  }
  0x8c   :  { %v80_v28 = vpop.permute.xlu0 %79   ;;  %v86_v29 = vpop.permute.xlu1 %85  }
  0x8d   :  { %82 = vst.msk [vmem:[#allocation0] sm:$0x1] %vm81_vm13, %v80_v28  }
  0x8e   :  { %88 = vst.msk [vmem:[#allocation0] sm:$0x1] %vm87_vm14, %v86_v29  }
  0x90   :  { %v92_v30 = vpop.permute.xlu0 %91  }
  0x91   :  { %94 = vst.msk [vmem:[#allocation0] sm:$0x1] %vm93_vm15, %v92_v30  }
  0x98   :  { %v99_v31 = vld [vmem:[#allocation0] sm:$0x1] }
  0x99   :  { %102 = vst [vmem:[%s210_s1] sm:$0x1] %v99_v31 }

// kernel: tile.33
= control target key start
LH: loop header
LB: loop body
LE: loop exit
PB: predicated region body
PF: predicated region fallthrough
CT: control target
= control target key end

     0   :  { %s22_s0 = inlined_call_operand.vmem [shape: f32[16], index: 0, kind: input, shape index: {}]   ;;  %s23_s1 = inlined_call_operand.vmem [shape: f32[8,16], index: 1, kind: output, shape index: {}]  }
   0x1   :  { %v4_v0 = vld [vmem:[%s22_s0] ss:$0 sm:$0xff] }
   0x2   :  { %5 = vst [vmem:[%s23_s1] sm:$0xff] %v4_v0 }

// kernel: tile.34
= control target key start
LH: loop header
LB: loop body
LE: loop exit
PB: predicated region body
PF: predicated region fallthrough
CT: control target
= control target key end

     0   :  { %s69_s10 = smov 112   ;;  %s70_s11 = smov 80   ;;  %vm3_vm0 = vcmask 130048   ;;  %vm9_vm1 = vcmask 1048448   ;;  %vm15_vm2 = vcmask 917248   ;;  %vm21_vm3 = vcmask 786048   ;;  %s113_s0 = inlined_call_operand.vmem [shape: f32[8,16], index: 0, kind: input, shape index: {}]   ;;  %s114_s1 = inlined_call_operand.vmem [shape: f32[1,128], index: 1, kind: output, shape index: {}]  }
   0x1   :  { %v55_v0 = vld [vmem:[%s113_s0 + $0x7] sm:$0x1]   ;;  %v57_v1 = vld [vmem:[%s113_s0 + $0x5] sm:$0x1]   ;;  %v56_v2 = vld [vmem:[%s113_s0 + $0x6] sm:$0x1]  }
   0x2   :  { %7 = vrot.lane.b32.xlu0 %v55_v0, %s69_s10  ;;  %19 = vrot.lane.b32.xlu1 %v57_v1, %s70_s11  ;;  %v58_v3 = vld [vmem:[%s113_s0 + $0x4] sm:$0x1]   ;;  %v2_v4 = vld [vmem:[%s113_s0] sm:$0x1]   ;;  %s71_s18 = smov 96   ;;  %s72_s19 = smov 64  }
   0x3   :  { %4 = vst.msk [vmem:[#allocation0] sm:$0x1] %vm3_vm0, %v2_v4   ;;  %v59_v5 = vld [vmem:[%s113_s0 + $0x3] sm:$0x1]   ;;  %v60_v6 = vld [vmem:[%s113_s0 + $0x2] sm:$0x1]  }
   0x4   :  { %s73_s24 = smov 48   ;;  %s74_s25 = smov 32   ;;  %v61_v7 = vld [vmem:[%s113_s0 + $0x1] sm:$0x1]   ;;  %vm27_vm4 = vcmask 654848   ;;  %vm33_vm5 = vcmask 523648  }
   0x5   :  { %s75_s0 = smov 16   ;;  %vm39_vm6 = vcmask 392448   ;;  %vm45_vm7 = vcmask 261248  }
   0x6   :  { %13 = vrot.lane.b32.xlu0 %v56_v2, %s71_s18  ;;  %25 = vrot.lane.b32.xlu1 %v58_v3, %s72_s19 }
   0xa   :  { %31 = vrot.lane.b32.xlu0 %v59_v5, %s73_s24  ;;  %37 = vrot.lane.b32.xlu1 %v60_v6, %s74_s25 }
   0xe   :  { %43 = vrot.lane.b32.xlu0 %v61_v7, %s75_s0 }
  0x74   :  { %v8_v8 = vpop.permute.xlu0 %7   ;;  %v20_v9 = vpop.permute.xlu1 %19  }
  0x75   :  { %10 = vst.msk [vmem:[#allocation0] sm:$0x1] %vm9_vm1, %v8_v8  }
  0x78   :  { %v14_v10 = vpop.permute.xlu0 %13   ;;  %v26_v11 = vpop.permute.xlu1 %25  }
  0x79   :  { %16 = vst.msk [vmem:[#allocation0] sm:$0x1] %vm15_vm2, %v14_v10  }
  0x7a   :  { %22 = vst.msk [vmem:[#allocation0] sm:$0x1] %vm21_vm3, %v20_v9  }
  0x7b   :  { %28 = vst.msk [vmem:[#allocation0] sm:$0x1] %vm27_vm4, %v26_v11  }
  0x7c   :  { %v32_v12 = vpop.permute.xlu0 %31   ;;  %v38_v13 = vpop.permute.xlu1 %37  }
  0x7d   :  { %34 = vst.msk [vmem:[#allocation0] sm:$0x1] %vm33_vm5, %v32_v12  }
  0x7e   :  { %40 = vst.msk [vmem:[#allocation0] sm:$0x1] %vm39_vm6, %v38_v13  }
  0x80   :  { %v44_v14 = vpop.permute.xlu0 %43  }
  0x81   :  { %46 = vst.msk [vmem:[#allocation0] sm:$0x1] %vm45_vm7, %v44_v14  }
  0x88   :  { %v51_v15 = vld [vmem:[#allocation0] sm:$0x1] }
  0x89   :  { %54 = vst [vmem:[%s114_s1] sm:$0x1] %v51_v15 }

// kernel: tile.38
= control target key start
LH: loop header
LB: loop body
LE: loop exit
PB: predicated region body
PF: predicated region fallthrough
CT: control target
= control target key end

     0   :  { %s22_s0 = inlined_call_operand.vmem [shape: f32[32], index: 0, kind: input, shape index: {}]   ;;  %s23_s1 = inlined_call_operand.vmem [shape: f32[4,32], index: 1, kind: output, shape index: {}]  }
   0x1   :  { %v4_v0 = vld [vmem:[%s22_s0] ss:$0 sm:$0xff] }
   0x2   :  { %5 = vst [vmem:[%s23_s1] sm:$0xf] %v4_v0 }

// kernel: tile.39
= control target key start
LH: loop header
LB: loop body
LE: loop exit
PB: predicated region body
PF: predicated region fallthrough
CT: control target
= control target key end

     0   :  { %vm8_vm0 = vcmask 261120   ;;  %s40_s8 = smov 32   ;;  %s41_s9 = smov 64   ;;  %vm14_vm1 = vcmask 1048320   ;;  %vm20_vm2 = vcmask 785920   ;;  %vm26_vm3 = vcmask 523520   ;;  %s58_s0 = inlined_call_operand.vmem [shape: f32[4,32], index: 0, kind: input, shape index: {}]   ;;  %s59_s1 = inlined_call_operand.vmem [shape: f32[1,128], index: 1, kind: output, shape index: {}]  }
   0x1   :  { %v5_v0 = vld [vmem:[%s58_s0] sm:$0xf]  ;;  %s39_s0 = smov 96  }
   0x2   :  { %6 = vst [vmem:[#allocation1] sm:$0xf] %v5_v0 }
   0x9   :  { %v11_v1 = vld [vmem:[#allocation1 + $0x3] sm:$0x1]   ;;  %v23_v2 = vld [vmem:[#allocation1 + $0x1] sm:$0x1]   ;;  %v7_v3 = vld [vmem:[#allocation1] sm:$0x1]  }
   0xa   :  { %12 = vrot.lane.b32.xlu0 %v11_v1, %s39_s0  ;;  %24 = vrot.lane.b32.xlu1 %v23_v2, %s40_s8  ;;  %v17_v4 = vld [vmem:[#allocation1 + $0x2] sm:$0x1]   ;;  %9 = vst.msk [vmem:[#allocation0] sm:$0x1] %vm8_vm0, %v7_v3  }
   0xe   :  { %18 = vrot.lane.b32.xlu0 %v17_v4, %s41_s9 }
  0x7c   :  { %v13_v5 = vpop.permute.xlu0 %12   ;;  %v25_v6 = vpop.permute.xlu1 %24  }
  0x7d   :  { %15 = vst.msk [vmem:[#allocation0] sm:$0x1] %vm14_vm1, %v13_v5  }
  0x80   :  { %v19_v7 = vpop.permute.xlu0 %18  }
  0x81   :  { %21 = vst.msk [vmem:[#allocation0] sm:$0x1] %vm20_vm2, %v19_v7  }
  0x82   :  { %27 = vst.msk [vmem:[#allocation0] sm:$0x1] %vm26_vm3, %v25_v6  }
  0x89   :  { %v32_v8 = vld [vmem:[#allocation0] sm:$0x1] }
  0x8a   :  { %35 = vst [vmem:[%s59_s1] sm:$0x1] %v32_v8 }

// kernel: tile.43
= control target key start
LH: loop header
LB: loop body
LE: loop exit
PB: predicated region body
PF: predicated region fallthrough
CT: control target
= control target key end

     0   :  { %s22_s0 = inlined_call_operand.vmem [shape: f32[32], index: 0, kind: input, shape index: {}]   ;;  %s23_s1 = inlined_call_operand.vmem [shape: f32[2,32], index: 1, kind: output, shape index: {}]  }
   0x1   :  { %v4_v0 = vld [vmem:[%s22_s0] ss:$0 sm:$0xff] }
   0x2   :  { %5 = vst [vmem:[%s23_s1] sm:$0x3] %v4_v0 }

// kernel: tile.44
= control target key start
LH: loop header
LB: loop body
LE: loop exit
PB: predicated region body
PF: predicated region fallthrough
CT: control target
= control target key end

     0   :  { %vm8_vm0 = vcmask 261120   ;;  %vm14_vm1 = vcmask 523520   ;;  %s42_s0 = inlined_call_operand.vmem [shape: f32[2,32], index: 0, kind: input, shape index: {}]   ;;  %s43_s1 = inlined_call_operand.vmem [shape: f32[1,64], index: 1, kind: output, shape index: {}]  }
   0x1   :  { %v5_v0 = vld [vmem:[%s42_s0] sm:$0x3]  ;;  %s25_s0 = smov 32  }
   0x2   :  { %6 = vst [vmem:[#allocation1] sm:$0x3] %v5_v0 }
   0x9   :  { %v11_v1 = vld [vmem:[#allocation1 + $0x1] sm:$0x1]   ;;  %v7_v2 = vld [vmem:[#allocation1] sm:$0x1]  }
   0xa   :  { %12 = vrot.lane.b32.xlu0 %v11_v1, %s25_s0  ;;  %9 = vst.msk [vmem:[#allocation0] sm:$0x1] %vm8_vm0, %v7_v2  }
  0x7c   :  { %v13_v3 = vpop.permute.xlu0 %12  }
  0x7d   :  { %15 = vst.msk [vmem:[#allocation0] sm:$0x1] %vm14_vm1, %v13_v3  }
  0x84   :  { %v20_v4 = vld [vmem:[#allocation0] sm:$0x1] }
  0x85   :  { %23 = vst [vmem:[%s43_s1] sm:$0x1] %v20_v4 }

// kernel: classifier_forward.1
= control target key start
LH: loop header
LB: loop body
LE: loop exit
PB: predicated region body
PF: predicated region fallthrough
CT: control target
= control target key end

     0   :  { %s9345_s0 = inlined_call_operand.vmem [shape: f32[2,16,16,64], index: 0, kind: input, shape index: {}]   ;;  %s9346_s1 = inlined_call_operand.vmem [shape: f32[2,1,1], index: 1, kind: input, shape index: {}]   ;;  %s9347_s2 = inlined_call_operand.vmem [shape: bf16[3,192,128], index: 2, kind: input, shape index: {}]   ;;  %s9348_s3 = inlined_call_operand.vmem [shape: f32[1,128], index: 3, kind: input, shape index: {}]   ;;  %s9349_s4 = inlined_call_operand.vmem [shape: bf16[3,192,128], index: 4, kind: input, shape index: {}]   ;;  %s9350_s5 = inlined_call_operand.vmem [shape: f32[1,128], index: 5, kind: input, shape index: {}]   ;;  %s9351_s6 = inlined_call_operand.vmem [shape: bf16[3,192,128], index: 6, kind: input, shape index: {}]   ;;  %s9352_s7 = inlined_call_operand.vmem [shape: f32[1,128], index: 7, kind: input, shape index: {}]   ;;  %s9353_s8 = inlined_call_operand.vmem [shape: bf16[3,192,64], index: 8, kind: input, shape index: {}]   ;;  %s9354_s9 = inlined_call_operand.vmem [shape: f32[1,64], index: 9, kind: input, shape index: {}]   ;;  %s9355_s10 = inlined_call_operand.vmem [shape: f32[64,64], index: 10, kind: input, shape index: {}]   ;;  %s9356_s11 = inlined_call_operand.vmem [shape: f32[1,64], index: 11, kind: input, shape index: {}]   ;;  %s9357_s12 = inlined_call_operand.vmem [shape: f32[1,64], index: 12, kind: input, shape index: {}]   ;;  %s9358_s13 = inlined_call_operand.hbm [shape: f32[2,1,64], index: 13, kind: output, shape index: {}]  }
   0x1   :  { %9387 = sst [smem:[#allocation24_spill]] %s9345_s0 }
   0x2   :  { %9388 = sst [smem:[#allocation25_spill]] %s9347_s2 }
   0x3   :  { %9389 = sst [smem:[#allocation26_spill]] %s9348_s3 }
   0x4   :  { %18 = vsyncpa [#allocation7], 0 }
   0x5   :  { %20 = vsyncpa [#allocation7 + $0x1], 0  ;;  %s6927_s25 = smov 0   ;;  %s6929_s26 = smov 0  }
   0x6   :  { %s6931_s27 = smov 0   ;;  %s6933_s28 = smov 0  }
   0x7 LB: > { %s6948_s29 = sadd.s32 4294967295, %s6842_s28   ;;  %s5932_s30 = sadd.s32 4294967294, %s6842_s28   ;;  %s6842_s28 = sphi %s6933_s28, %s9435_s28   ;;  %s6838_s27 = sphi %s6931_s27, %s9434_s27   ;;  %s6834_s26 = sphi %s6929_s26, %s9433_s26   ;;  %s6830_s25 = sphi %s6927_s25, %s9432_s25  }
   0x8   : > { %s6952_s14 = sadd.s32 1, %s6842_s28   ;;  %s316_s15 = sadd.s32 1, %s6838_s27 }
   0x9   : > { %s313_s16 = ssub.s32 %s6842_s28, %s6952_s14  ;;  %p326_p0 = scmp.ne.s32.totalorder %s6838_s27, %s6834_s26 }
   0xa   : > { %p314_p1 = scmp.eq.s32.totalorder %s313_s16, 0  ;;  %p327_p2 = scmp.eq.s32.totalorder %s6948_s29, 1 }
   0xb   : > { %p332_p3 = scmp.ne.s32.totalorder %s6834_s26, %s6830_s25  ;;  %p333_p4 = scmp.eq.s32.totalorder %s5932_s30, 1 }
   0xc   : > { %s6963_s17 = scalar_select %p314_p1, %s6838_s27, %s316_s15  }
   0xd   : > { %p6965_p5 = por %p327_p2, %p326_p0  ;;  %p6969_p6 = por %p333_p4, %p332_p3 }
   0xe   : > { %9390 = sst [smem:[#allocation9_spill]] %s6963_s17  ;;  %p5935_p7 = scmp.ge.s32.totalorder %s6842_s28, 1 }
   0xf   : > { %p398_p8 = scmp.lt.s32.totalorder %s6842_s28, 3 }
  0x11   : > { %p399_p9 = pnand %p5935_p7, %p398_p8 }
  0x13   : > { %402 = sbr.rel (%p399_p9) target bundleno = 2855 (0xb27), region = 72 }
  0x18   : > { %p444_p10 = scmp.lt.s32.totalorder %s6948_s29, 1  ;;  %vm453_vm0 = vcmask 523264   ;;  %vm456_vm1 = vcmask 517120   ;;  %v9359_v0 = vmov 0.0   ;;  %v9361_v1 = vmov 0   ;;  %s9393_s2 = sld [smem:[#allocation25_spill]] }
  0x19   : > { %454 = vst.msk [vmem:[#allocation2] sm:$0xff] %vm453_vm0, %v9359_v0  ;;  %455 = vst.msk [vmem:[#allocation2 + $0x8] sm:$0xff] %vm453_vm0, %v9359_v0  ;;  %1110 = vmatprep.subr.bf16.mxu0 %v9361_v1  ;;  %1346 = vmatprep.subr.bf16.mxu1 %v9361_v1  ;;  %vm462_vm2 = vcmask 516096   ;;  %s9394_s0 = sld [smem:[#allocation24_spill]]  ;;  %s9377_s15 = smov 64  }
  0x1a   : > { %457 = vst.msk [vmem:[#allocation2 + $0x10] sm:$0x3] %vm456_vm1, %v9359_v0  ;;  %461 = vst.msk [vmem:[#allocation2 + $0x1a8] sm:$0x3] %vm456_vm1, %v9359_v0  ;;  %s7006_s22 = scalar_select %p444_p10, %s6948_s29, 1  ;;  %6633 = vset.pattern.permute.xlu1 %v9361_v1  ;;  %6634 = vset.pattern.permute.xlu0 %v9361_v1 }
  0x1b   : > { %459 = vst.msk [vmem:[#allocation2 + $0x198] sm:$0xff] %vm453_vm0, %v9359_v0  ;;  %460 = vst.msk [vmem:[#allocation2 + $0x1a0] sm:$0xff] %vm453_vm0, %v9359_v0  ;;  %s9395_s3 = sld [smem:[#allocation26_spill]]  ;;  %s9379_s23 = smov 120  }
  0x1c   : > { %499 = vst.msk [vmem:[#allocation3] sm:$0xff] %vm453_vm0, %v9359_v0  ;;  %502 = vst.msk [vmem:[#allocation3 + $0x90] sm:$0xff] %vm453_vm0, %v9359_v0  ;;  %s6438_s30 = sshll.u32 %s7006_s22, 8  ;;  %s6849_s24 = smov 104  }
  0x1d   : > { %500 = vst.msk [vmem:[#allocation3 + $0x8] sm:$0x3] %vm456_vm1, %v9359_v0  ;;  %503 = vst.msk [vmem:[#allocation3 + $0x98] sm:$0x3] %vm456_vm1, %v9359_v0  ;;  %s6852_s16 = smov 72   ;;  %s9381_s21 = smov 96  }
  0x1e   : > { %v7000_v2 = vld [vmem:[%s9393_s2 + $0x98] sm:$0xff]   ;;  %482 = vst.msk [vmem:[#allocation2 + $0x29] sm:$0x1] %vm462_vm2, %v9359_v0  ;;  %463 = vst.msk [vmem:[#allocation2] sm:$0x1] %vm462_vm2, %v9359_v0  ;;  %v6636_v3 = vld [vmem:[%s9393_s2 + $0x90] sm:$0xff]  }
  0x1f   : > { %464 = vst.msk [vmem:[#allocation2 + $0x18] sm:$0x1] %vm462_vm2, %v9359_v0  ;;  %465 = vst.msk [vmem:[#allocation2 + $0x30] sm:$0x1] %vm462_vm2, %v9359_v0  ;;  %1111 = vmatpush1.bf16.msra.mxu0 %v7000_v2  ;;  %s7155_s20 = scalar_lea.vmem %s9394_s0, %s6438_s30  ;;  %v6637_v4 = vld [vmem:[%s9393_s2 + $0x88] sm:$0xff]   ;;  %v6638_v17 = vld [vmem:[%s9393_s2 + $0x80] sm:$0xff]  }
  0x20   : > { %466 = vst.msk [vmem:[#allocation2 + $0x48] sm:$0x1] %vm462_vm2, %v9359_v0  ;;  %467 = vst.msk [vmem:[#allocation2 + $0x60] sm:$0x1] %vm462_vm2, %v9359_v0  ;;  %1112 = vmatprep.subr.bf16.mxu0 %v9361_v1  ;;  %v552_v5 = vld [vmem:[%s7155_s20] sm:$0xff]  ;;  %v553_v6 = vld [vmem:[%s7155_s20 + $0x8] sm:$0xff] }
  0x21   : > { %468 = vst.msk [vmem:[#allocation2 + $0x78] sm:$0x1] %vm462_vm2, %v9359_v0  ;;  %469 = vst.msk [vmem:[#allocation2 + $0x90] sm:$0x1] %vm462_vm2, %v9359_v0  ;;  %v554_v7 = vld [vmem:[%s7155_s20 + $0x10] sm:$0xff]  ;;  %v555_v8 = vld [vmem:[%s7155_s20 + $0x18] sm:$0xff] }
  0x22   : > { %470 = vst.msk [vmem:[#allocation2 + $0xa8] sm:$0x1] %vm462_vm2, %v9359_v0  ;;  %471 = vst.msk [vmem:[#allocation2 + $0xc0] sm:$0x1] %vm462_vm2, %v9359_v0  ;;  %v560_v9 = vld [vmem:[%s7155_s20 + $0x40] sm:$0xff]  ;;  %v561_v10 = vld [vmem:[%s7155_s20 + $0x48] sm:$0xff] }
  0x23   : > { %472 = vst.msk [vmem:[#allocation2 + $0xd8] sm:$0x1] %vm462_vm2, %v9359_v0  ;;  %473 = vst.msk [vmem:[#allocation2 + $0xf0] sm:$0x1] %vm462_vm2, %v9359_v0  ;;  %1113 = vmatpush1.bf16.msra.mxu0 %v6636_v3  ;;  %v564_v11 = vld [vmem:[%s7155_s20 + $0x60] sm:$0xff]  ;;  %v565_v12 = vld [vmem:[%s7155_s20 + $0x68] sm:$0xff] }
  0x24   : > { %474 = vst.msk [vmem:[#allocation2 + $0x108] sm:$0x1] %vm462_vm2, %v9359_v0  ;;  %475 = vst.msk [vmem:[#allocation2 + $0x120] sm:$0x1] %vm462_vm2, %v9359_v0  ;;  %v556_v13 = vld [vmem:[%s7155_s20 + $0x20] sm:$0xff]  ;;  %1114 = vmatprep.subr.bf16.mxu0 %v9361_v1  ;;  %v557_v14 = vld [vmem:[%s7155_s20 + $0x28] sm:$0xff] }
  0x25   : > { %476 = vst.msk [vmem:[#allocation2 + $0x138] sm:$0x1] %vm462_vm2, %v9359_v0  ;;  %477 = vst.msk [vmem:[#allocation2 + $0x150] sm:$0x1] %vm462_vm2, %v9359_v0  ;;  %v568_v15 = vld [vmem:[%s7155_s20 + $0x80] sm:$0xff]  ;;  %v569_v16 = vld [vmem:[%s7155_s20 + $0x88] sm:$0xff] }
  0x26   : > { %478 = vst.msk [vmem:[#allocation2 + $0x168] sm:$0x1] %vm462_vm2, %v9359_v0  ;;  %479 = vst.msk [vmem:[#allocation2 + $0x180] sm:$0x1] %vm462_vm2, %v9359_v0  ;;  %v572_v18 = vld [vmem:[%s7155_s20 + $0xa0] sm:$0xff]  ;;  %v573_v19 = vld [vmem:[%s7155_s20 + $0xa8] sm:$0xff] }
  0x27   : > { %480 = vst.msk [vmem:[#allocation2 + $0x198] sm:$0x1] %vm462_vm2, %v9359_v0  ;;  %481 = vst.msk [vmem:[#allocation2 + $0x11] sm:$0x1] %vm462_vm2, %v9359_v0  ;;  %v558_v20 = vld [vmem:[%s7155_s20 + $0x30] sm:$0xff]  ;;  %v559_v21 = vld [vmem:[%s7155_s20 + $0x38] sm:$0xff]  ;;  %1115 = vmatpush1.bf16.msra.mxu0 %v6637_v4 }
  0x28   : > { %483 = vst.msk [vmem:[#allocation2 + $0x41] sm:$0x1] %vm462_vm2, %v9359_v0  ;;  %484 = vst.msk [vmem:[#allocation2 + $0x59] sm:$0x1] %vm462_vm2, %v9359_v0  ;;  %v576_v22 = vld [vmem:[%s7155_s20 + $0xc0] sm:$0xff]  ;;  %v577_v23 = vld [vmem:[%s7155_s20 + $0xc8] sm:$0xff]  ;;  %1116 = vmatprep.subr.bf16.mxu0 %v9361_v1 }
  0x29   : > { %485 = vst.msk [vmem:[#allocation2 + $0x71] sm:$0x1] %vm462_vm2, %v9359_v0  ;;  %486 = vst.msk [vmem:[#allocation2 + $0x89] sm:$0x1] %vm462_vm2, %v9359_v0  ;;  %v580_v24 = vld [vmem:[%s7155_s20 + $0xe0] sm:$0xff]  ;;  %v581_v25 = vld [vmem:[%s7155_s20 + $0xe8] sm:$0xff] }
  0x2a   : > { %487 = vst.msk [vmem:[#allocation2 + $0xa1] sm:$0x1] %vm462_vm2, %v9359_v0  ;;  %488 = vst.msk [vmem:[#allocation2 + $0xb9] sm:$0x1] %vm462_vm2, %v9359_v0  ;;  %v562_v26 = vld [vmem:[%s7155_s20 + $0x50] sm:$0xff]  ;;  %v563_v27 = vld [vmem:[%s7155_s20 + $0x58] sm:$0xff] }
  0x2b   : > { %489 = vst.msk [vmem:[#allocation2 + $0xd1] sm:$0x1] %vm462_vm2, %v9359_v0  ;;  %490 = vst.msk [vmem:[#allocation2 + $0xe9] sm:$0x1] %vm462_vm2, %v9359_v0  ;;  %1117 = vmatpush1.bf16.msra.mxu0 %v6638_v17  ;;  %v6639_v33 = vld [vmem:[%s9393_s2 + $0x78] sm:$0xff]   ;;  %v566_v45 = vld [vmem:[%s7155_s20 + $0x70] sm:$0xff] }
  0x2c   : > { %491 = vst.msk [vmem:[#allocation2 + $0x101] sm:$0x1] %vm462_vm2, %v9359_v0  ;;  %492 = vst.msk [vmem:[#allocation2 + $0x119] sm:$0x1] %vm462_vm2, %v9359_v0  ;;  %1118 = vmatprep.subr.bf16.mxu0 %v9361_v1  ;;  %v567_v49 = vld [vmem:[%s7155_s20 + $0x78] sm:$0xff]  ;;  %v570_v50 = vld [vmem:[%s7155_s20 + $0x90] sm:$0xff] }
  0x2d   : > { %493 = vst.msk [vmem:[#allocation2 + $0x131] sm:$0x1] %vm462_vm2, %v9359_v0  ;;  %494 = vst.msk [vmem:[#allocation2 + $0x149] sm:$0x1] %vm462_vm2, %v9359_v0  ;;  %v571_v51 = vld [vmem:[%s7155_s20 + $0x98] sm:$0xff]  ;;  %v574_v52 = vld [vmem:[%s7155_s20 + $0xb0] sm:$0xff] }
  0x2e   : > { %495 = vst.msk [vmem:[#allocation2 + $0x161] sm:$0x1] %vm462_vm2, %v9359_v0  ;;  %496 = vst.msk [vmem:[#allocation2 + $0x179] sm:$0x1] %vm462_vm2, %v9359_v0  ;;  %v575_v53 = vld [vmem:[%s7155_s20 + $0xb8] sm:$0xff]  ;;  %v6640_v56 = vld [vmem:[%s9393_s2 + $0x70] sm:$0xff]  }
  0x2f   : > { %497 = vst.msk [vmem:[#allocation2 + $0x191] sm:$0x1] %vm462_vm2, %v9359_v0  ;;  %498 = vst.msk [vmem:[#allocation2 + $0x1a9] sm:$0x1] %vm462_vm2, %v9359_v0  ;;  %1119 = vmatpush1.bf16.msra.mxu0 %v6639_v33  ;;  %v6641_v59 = vld [vmem:[%s9393_s2 + $0x68] sm:$0xff]   ;;  %v578_v60 = vld [vmem:[%s7155_s20 + $0xd0] sm:$0xff] }
  0x30   : > { %504 = vst.msk [vmem:[#allocation3] sm:$0x1] %vm462_vm2, %v9359_v0  ;;  %505 = vst.msk [vmem:[#allocation3 + $0x10] sm:$0x1] %vm462_vm2, %v9359_v0  ;;  %1120 = vmatprep.subr.bf16.mxu0 %v9361_v1  ;;  %v579_v61 = vld [vmem:[%s7155_s20 + $0xd8] sm:$0xff]  ;;  %s6850_s30 = smov 88  }
  0x31   : > { %506 = vst.msk [vmem:[#allocation3 + $0x20] sm:$0x1] %vm462_vm2, %v9359_v0  ;;  %507 = vst.msk [vmem:[#allocation3 + $0x30] sm:$0x1] %vm462_vm2, %v9359_v0  ;;  %v6643_v17 = vld [vmem:[%s9393_s2 + $0xb8] sm:$0xff]   ;;  %s9385_s17 = smov 80  }
  0x32   : > { %508 = vst.msk [vmem:[#allocation3 + $0x40] sm:$0x1] %vm462_vm2, %v9359_v0  ;;  %509 = vst.msk [vmem:[#allocation3 + $0x50] sm:$0x1] %vm462_vm2, %v9359_v0  ;;  %s6435_s0 = sshll.u32 %s6948_s29, 4 }
  0x33   : > { %510 = vst.msk [vmem:[#allocation3 + $0x60] sm:$0x1] %vm462_vm2, %v9359_v0  ;;  %511 = vst.msk [vmem:[#allocation3 + $0x70] sm:$0x1] %vm462_vm2, %v9359_v0  ;;  %1121 = vmatpush1.bf16.msra.mxu0 %v6640_v56 }
  0x34   : > { %512 = vst.msk [vmem:[#allocation3 + $0x80] sm:$0x1] %vm462_vm2, %v9359_v0  ;;  %513 = vst.msk [vmem:[#allocation3 + $0x90] sm:$0x1] %vm462_vm2, %v9359_v0  ;;  %1122 = vmatprep.subr.bf16.mxu0 %v9361_v1 }
  0x35   : > { %514 = vst.msk [vmem:[#allocation3 + $0x9] sm:$0x1] %vm462_vm2, %v9359_v0  ;;  %515 = vst.msk [vmem:[#allocation3 + $0x19] sm:$0x1] %vm462_vm2, %v9359_v0 }
  0x36   : > { %516 = vst.msk [vmem:[#allocation3 + $0x29] sm:$0x1] %vm462_vm2, %v9359_v0  ;;  %517 = vst.msk [vmem:[#allocation3 + $0x39] sm:$0x1] %vm462_vm2, %v9359_v0 }
  0x37   : > { %518 = vst.msk [vmem:[#allocation3 + $0x49] sm:$0x1] %vm462_vm2, %v9359_v0  ;;  %519 = vst.msk [vmem:[#allocation3 + $0x59] sm:$0x1] %vm462_vm2, %v9359_v0  ;;  %1123 = vmatpush1.bf16.msra.mxu0 %v6641_v59 }
  0x38   : > { %520 = vst.msk [vmem:[#allocation3 + $0x69] sm:$0x1] %vm462_vm2, %v9359_v0  ;;  %521 = vst.msk [vmem:[#allocation3 + $0x79] sm:$0x1] %vm462_vm2, %v9359_v0  ;;  %1124 = vmatprep.subr.bf16.mxu0 %v9361_v1 }
  0x39   : > { %522 = vst.msk [vmem:[#allocation3 + $0x89] sm:$0x1] %vm462_vm2, %v9359_v0  ;;  %523 = vst.msk [vmem:[#allocation3 + $0x99] sm:$0x1] %vm462_vm2, %v9359_v0 }
  0x3a   : > { %529 = vst.msk [vmem:[#allocation4 + $0x8] sm:$0x1] %vm462_vm2, %v9359_v0  ;;  %530 = vst.msk [vmem:[#allocation4 + $0x10] sm:$0x1] %vm462_vm2, %v9359_v0 }
  0x3b   : > { %531 = vst.msk [vmem:[#allocation4 + $0x18] sm:$0x1] %vm462_vm2, %v9359_v0  ;;  %532 = vst.msk [vmem:[#allocation4 + $0x20] sm:$0x1] %vm462_vm2, %v9359_v0 }
  0x3c   : > { %535 = vst.msk [vmem:[#allocation4 + $0xd] sm:$0x1] %vm462_vm2, %v9359_v0  ;;  %536 = vst.msk [vmem:[#allocation4 + $0x15] sm:$0x1] %vm462_vm2, %v9359_v0 }
  0x3d   : > { %537 = vst.msk [vmem:[#allocation4 + $0x1d] sm:$0x1] %vm462_vm2, %v9359_v0  ;;  %538 = vst.msk [vmem:[#allocation4 + $0x25] sm:$0x1] %vm462_vm2, %v9359_v0 }
  0x3e   : > { %545 = vst.msk [vmem:[#allocation5 + $0x4] sm:$0x1] %vm462_vm2, %v9359_v0  ;;  %546 = vst.msk [vmem:[#allocation5 + $0x8] sm:$0x1] %vm462_vm2, %v9359_v0 }
  0x3f   : > { %549 = vst.msk [vmem:[#allocation5 + $0x7] sm:$0x1] %vm462_vm2, %v9359_v0  ;;  %550 = vst.msk [vmem:[#allocation5 + $0xb] sm:$0x1] %vm462_vm2, %v9359_v0 }
  0x40   : > { %585 = vst.msk [vmem:[#allocation2 + $0x19] sm:$0xff] %vm453_vm0, %v552_v5  ;;  %586 = vst.msk [vmem:[#allocation2 + $0x21] sm:$0xff] %vm453_vm0, %v553_v6  ;;  %v6644_v5 = vld [vmem:[%s9393_s2 + $0x38] sm:$0xff]  }
  0x41   : > { %587 = vst.msk [vmem:[#allocation2 + $0x31] sm:$0xff] %vm453_vm0, %v554_v7  ;;  %588 = vst.msk [vmem:[#allocation2 + $0x39] sm:$0xff] %vm453_vm0, %v555_v8  ;;  %1347 = vmatpush1.bf16.msra.mxu1 %v6644_v5 }
  0x42   : > { %593 = vst.msk [vmem:[#allocation2 + $0x79] sm:$0xff] %vm453_vm0, %v560_v9  ;;  %594 = vst.msk [vmem:[#allocation2 + $0x81] sm:$0xff] %vm453_vm0, %v561_v10  ;;  %v6642_v9 = vld [vmem:[%s9393_s2 + $0x60] sm:$0xff]   ;;  %1348 = vmatprep.subr.bf16.mxu1 %v9361_v1 }
  0x43   : > { %597 = vst.msk [vmem:[#allocation2 + $0xa9] sm:$0xff] %vm453_vm0, %v564_v11  ;;  %598 = vst.msk [vmem:[#allocation2 + $0xb1] sm:$0xff] %vm453_vm0, %v565_v12  ;;  %1125 = vmatpush1.bf16.msra.mxu0 %v6642_v9 }
  0x44   : > { %589 = vst.msk [vmem:[#allocation2 + $0x49] sm:$0xff] %vm453_vm0, %v556_v13  ;;  %590 = vst.msk [vmem:[#allocation2 + $0x51] sm:$0xff] %vm453_vm0, %v557_v14  ;;  %v6646_v14 = vld [vmem:[%s9393_s2 + $0x30] sm:$0xff]   ;;  %1134 = vmatprep.subr.bf16.mxu0 %v9361_v1 }
  0x45   : > { %601 = vst.msk [vmem:[#allocation2 + $0xd9] sm:$0xff] %vm453_vm0, %v568_v15  ;;  %602 = vst.msk [vmem:[#allocation2 + $0xe1] sm:$0xff] %vm453_vm0, %v569_v16  ;;  %1349 = vmatpush1.bf16.msra.mxu1 %v6646_v14 }
  0x46   : > { %605 = vst.msk [vmem:[#allocation2 + $0x109] sm:$0xff] %vm453_vm0, %v572_v18  ;;  %606 = vst.msk [vmem:[#allocation2 + $0x111] sm:$0xff] %vm453_vm0, %v573_v19  ;;  %v6648_v18 = vld [vmem:[%s9393_s2 + $0x28] sm:$0xff]   ;;  %1350 = vmatprep.subr.bf16.mxu1 %v9361_v1 }
  0x47   : > { %591 = vst.msk [vmem:[#allocation2 + $0x61] sm:$0xff] %vm453_vm0, %v558_v20  ;;  %592 = vst.msk [vmem:[#allocation2 + $0x69] sm:$0xff] %vm453_vm0, %v559_v21  ;;  %v655_v28 = vld [vmem:[#allocation2 + $0x19] sm:$0xff]  ;;  %v656_v29 = vld [vmem:[#allocation2 + $0x21] sm:$0xff]  ;;  %1135 = vmatpush2.bf16.msra.mxu0 %v6643_v17 }
  0x48   : > { %609 = vst.msk [vmem:[#allocation2 + $0x139] sm:$0xff] %vm453_vm0, %v576_v22  ;;  %610 = vst.msk [vmem:[#allocation2 + $0x141] sm:$0xff] %vm453_vm0, %v577_v23  ;;  %v657_v30 = vld [vmem:[#allocation2 + $0x31] sm:$0xff]  ;;  %v6518_v31 = vpack.i.bf16 %v656_v29, %v655_v28  ;;  %v658_v32 = vld [vmem:[#allocation2 + $0x39] sm:$0xff]  ;;  %1136 = vmatprep.subr.bf16.mxu0 %v9361_v1 }
  0x49   : > { %613 = vst.msk [vmem:[#allocation2 + $0x169] sm:$0xff] %vm453_vm0, %v580_v24  ;;  %614 = vst.msk [vmem:[#allocation2 + $0x171] sm:$0xff] %vm453_vm0, %v581_v25  ;;  %v6523_v35 = vpack.i.bf16 %v658_v32, %v657_v30  ;;  %v663_v37 = vld [vmem:[#allocation2 + $0x79] sm:$0xff]  ;;  %v664_v38 = vld [vmem:[#allocation2 + $0x81] sm:$0xff]  ;;  %1351 = vmatpush1.bf16.msra.mxu1 %v6648_v18 }
  0x4a   : > { %595 = vst.msk [vmem:[#allocation2 + $0x91] sm:$0xff] %vm453_vm0, %v562_v26  ;;  %596 = vst.msk [vmem:[#allocation2 + $0x99] sm:$0xff] %vm453_vm0, %v563_v27  ;;  %6519 = vrot.lane.b32.xlu0 %v6518_v31, %s9377_s15  ;;  %v667_v42 = vld [vmem:[#allocation2 + $0xa9] sm:$0xff]  ;;  %v668_v43 = vld [vmem:[#allocation2 + $0xb1] sm:$0xff]  ;;  %v6538_v46 = vpack.i.bf16 %v664_v38, %v663_v37  ;;  %1352 = vmatprep.subr.bf16.mxu1 %v9361_v1 }
  0x4b   : > { %v659_v34 = vld [vmem:[#allocation2 + $0x49] sm:$0xff]  ;;  %v660_v36 = vld [vmem:[#allocation2 + $0x51] sm:$0xff]  ;;  %599 = vst.msk [vmem:[#allocation2 + $0xc1] sm:$0xff] %vm453_vm0, %v566_v45  ;;  %600 = vst.msk [vmem:[#allocation2 + $0xc9] sm:$0xff] %vm453_vm0, %v567_v49  ;;  %v6548_v57 = vpack.i.bf16 %v668_v43, %v667_v42 }
  0x4c   : > { %v6528_v39 = vpack.i.bf16 %v660_v36, %v659_v34  ;;  %603 = vst.msk [vmem:[#allocation2 + $0xf1] sm:$0xff] %vm453_vm0, %v570_v50  ;;  %604 = vst.msk [vmem:[#allocation2 + $0xf9] sm:$0xff] %vm453_vm0, %v571_v51  ;;  %v671_v54 = vld [vmem:[#allocation2 + $0xd9] sm:$0xff]  ;;  %v672_v58 = vld [vmem:[#allocation2 + $0xe1] sm:$0xff] }
  0x4d   : > { %607 = vst.msk [vmem:[#allocation2 + $0x121] sm:$0xff] %vm453_vm0, %v574_v52  ;;  %608 = vst.msk [vmem:[#allocation2 + $0x129] sm:$0xff] %vm453_vm0, %v575_v53  ;;  %v675_v62 = vld [vmem:[#allocation2 + $0x109] sm:$0xff]  ;;  %v676_v63 = vld [vmem:[#allocation2 + $0x111] sm:$0xff]  ;;  %v6558_v3 = vpack.i.bf16 %v672_v58, %v671_v54 }
  0x4e   : > { %v661_v40 = vld [vmem:[#allocation2 + $0x61] sm:$0xff]  ;;  %v662_v41 = vld [vmem:[#allocation2 + $0x69] sm:$0xff]  ;;  %6529 = vrot.lane.b32.xlu1 %v6528_v39, %s9377_s15  ;;  %6524 = vrot.lane.b32.xlu0 %v6523_v35, %s9377_s15  ;;  %611 = vst.msk [vmem:[#allocation2 + $0x151] sm:$0xff] %vm453_vm0, %v578_v60  ;;  %612 = vst.msk [vmem:[#allocation2 + $0x159] sm:$0xff] %vm453_vm0, %v579_v61  ;;  %v6568_v15 = vpack.i.bf16 %v676_v63, %v675_v62 }
  0x4f   : > { %v6533_v44 = vpack.i.bf16 %v662_v41, %v661_v40  ;;  %v679_v11 = vld [vmem:[#allocation2 + $0x139] sm:$0xff]  ;;  %v680_v12 = vld [vmem:[#allocation2 + $0x141] sm:$0xff]  ;;  %v6645_v23 = vld [vmem:[%s9393_s2 + $0xb0] sm:$0xff]  }
  0x50   : > { %v683_v19 = vld [vmem:[#allocation2 + $0x169] sm:$0xff]  ;;  %v684_v20 = vld [vmem:[#allocation2 + $0x171] sm:$0xff]  ;;  %v6578_v24 = vpack.i.bf16 %v680_v12, %v679_v11  ;;  %v691_v26 = vld [vmem:[#allocation2 + $0x1a] sm:$0xff]  ;;  %1137 = vmatpush2.bf16.msra.mxu0 %v6645_v23 }
  0x51   : > { %v665_v47 = vld [vmem:[#allocation2 + $0x91] sm:$0xff]  ;;  %v666_v48 = vld [vmem:[#allocation2 + $0x99] sm:$0xff]  ;;  %v692_v27 = vld [vmem:[#allocation2 + $0x22] sm:$0xff]  ;;  %v6588_v33 = vpack.i.bf16 %v684_v20, %v683_v19  ;;  %1138 = vmatprep.subr.bf16.mxu0 %v9361_v1 }
  0x52   : > { %6534 = vrot.lane.b32.xlu1 %v6533_v44, %s9377_s15  ;;  %v6543_v55 = vpack.i.bf16 %v666_v48, %v665_v47  ;;  %6539 = vrot.lane.b32.xlu0 %v6538_v46, %s9377_s15  ;;  %v669_v2 = vld [vmem:[#allocation2 + $0xc1] sm:$0xff]  ;;  %v670_v4 = vld [vmem:[#allocation2 + $0xc9] sm:$0xff]  ;;  %v583_v29 = vld [vmem:[%s7155_s20 + $0xf8] sm:$0xff]  ;;  %v7276_v31 = vpack.c.bf16 %v692_v27, %v691_v26 }
  0x53   : > { %v6553_v6 = vpack.i.bf16 %v670_v4, %v669_v2  ;;  %v673_v7 = vld [vmem:[#allocation2 + $0xf1] sm:$0xff]  ;;  %v674_v8 = vld [vmem:[#allocation2 + $0xf9] sm:$0xff]  ;;  %616 = vst.msk [vmem:[#allocation2 + $0x189] sm:$0xff] %vm453_vm0, %v583_v29  ;;  %v653_v34 = vld [vmem:[#allocation2 + $0x1] sm:$0xff] }
  0x54   : > { %v677_v10 = vld [vmem:[#allocation2 + $0x121] sm:$0xff]  ;;  %v6563_v13 = vpack.i.bf16 %v674_v8, %v673_v7  ;;  %v678_v16 = vld [vmem:[#allocation2 + $0x129] sm:$0xff]  ;;  %5974 = vmatprep.mubr.msk.bf16.mxu0 %vm453_vm0, %v7276_v31  ;;  %v6652_v37 = vld [vmem:[%s9393_s2 + $0x18] sm:$0xff]  }
  0x55   : > { %v6573_v21 = vpack.i.bf16 %v678_v16, %v677_v10  ;;  %v681_v22 = vld [vmem:[#allocation2 + $0x151] sm:$0xff]  ;;  %v682_v25 = vld [vmem:[#allocation2 + $0x159] sm:$0xff]  ;;  %v654_v35 = vld [vmem:[#allocation2 + $0x9] sm:$0xff] }
  0x56   : > { %6544 = vrot.lane.b32.xlu1 %v6543_v55, %s9377_s15  ;;  %6549 = vrot.lane.b32.xlu0 %v6548_v57, %s9377_s15  ;;  %v582_v28 = vld [vmem:[%s7155_s20 + $0xf0] sm:$0xff]  ;;  %v6650_v30 = vld [vmem:[%s9393_s2 + $0x20] sm:$0xff]   ;;  %v6583_v32 = vpack.i.bf16 %v682_v25, %v681_v22  ;;  %v6598_v38 = vpack.i.bf16 %v654_v35, %v653_v34  ;;  %v619_v53 = vld [vmem:[#allocation2 + $0x18] sm:$0xff]  ;;  %s9383_s20 = smov 112  }
  0x57   : > { %615 = vst.msk [vmem:[#allocation2 + $0x181] sm:$0xff] %vm453_vm0, %v582_v28  ;;  %v6647_v36 = vld [vmem:[%s9393_s2 + $0xa8] sm:$0xff]   ;;  %1353 = vmatpush1.bf16.msra.mxu1 %v6650_v30  ;;  %v6649_v39 = vld [vmem:[%s9393_s2 + $0xa0] sm:$0xff]   ;;  %v6653_v43 = vld [vmem:[%s9393_s2 + $0x10] sm:$0xff]  }
  0x58   : > { %1354 = vmatprep.subr.bf16.mxu1 %v9361_v1  ;;  %1139 = vmatpush2.bf16.msra.mxu0 %v6647_v36  ;;  %v6654_v44 = vld [vmem:[%s9393_s2 + $0x8] sm:$0xff]   ;;  %v6656_v45 = vld [vmem:[%s9393_s2] sm:$0xff]   ;;  %v6657_v49 = vld [vmem:[%s9393_s2 + $0x58] sm:$0xff]  }
  0x59   : > { %1140 = vmatprep.subr.bf16.mxu0 %v9361_v1  ;;  %v689_v46 = vld [vmem:[#allocation2 + $0x2] sm:$0xff]  ;;  %v690_v47 = vld [vmem:[#allocation2 + $0xa] sm:$0xff]  ;;  %v693_v55 = vld [vmem:[#allocation2 + $0x32] sm:$0xff] }
  0x5a   : > { %6554 = vrot.lane.b32.xlu1 %v6553_v6, %s9377_s15  ;;  %6559 = vrot.lane.b32.xlu0 %v6558_v3, %s9377_s15  ;;  %v686_v41 = vld [vmem:[#allocation2 + $0x189] sm:$0xff]  ;;  %v906_v48 = vpack.c.bf16 %v690_v47, %v689_v46  ;;  %v6661_v52 = vld [vmem:[%s9393_s2 + $0x40] sm:$0xff]   ;;  %v6651_v63 = vld [vmem:[%s9393_s2 + $0xf8] sm:$0xff]  }
  0x5b   : > { %1355 = vmatpush1.bf16.msra.mxu1 %v6652_v37  ;;  %v6658_v50 = vld [vmem:[%s9393_s2 + $0x50] sm:$0xff]   ;;  %v6660_v51 = vld [vmem:[%s9393_s2 + $0x48] sm:$0xff]   ;;  %v620_v54 = vld [vmem:[#allocation2 + $0x20] sm:$0xff] }
  0x5c   : > { %1356 = vmatprep.subr.bf16.mxu1 %v9361_v1  ;;  %1141 = vmatpush2.bf16.msra.mxu0 %v6649_v39  ;;  %v694_v56 = vld [vmem:[#allocation2 + $0x3a] sm:$0xff]  ;;  %v621_v2 = vld [vmem:[#allocation2 + $0x30] sm:$0xff]  ;;  %v6659_v18 = vld [vmem:[%s9393_s2 + $0xe8] sm:$0xff]  }
  0x5d   : > { %1607 = vmatprep.subr.bf16.mxu0 %v9361_v1  ;;  %6002 = vmatprep.mubr.msk.bf16.mxu1 %vm453_vm0, %v906_v48  ;;  %v687_v57 = vld [vmem:[#allocation2 + $0x199] sm:$0xff]  ;;  %v688_v58 = vld [vmem:[#allocation2 + $0x1a1] sm:$0xff]  ;;  %v7338_v6 = vpack.c.bf16 %v694_v56, %v693_v55  ;;  %v6655_v11 = vld [vmem:[%s9393_s2 + $0xf0] sm:$0xff]  }
  0x5e   : > { %6564 = vrot.lane.b32.xlu1 %v6563_v13, %s9377_s15  ;;  %6569 = vrot.lane.b32.xlu0 %v6568_v15, %s9377_s15  ;;  %v685_v40 = vld [vmem:[#allocation2 + $0x181] sm:$0xff]  ;;  %v6603_v60 = vpack.i.bf16 %v688_v58, %v687_v57  ;;  %v622_v3 = vld [vmem:[#allocation2 + $0x38] sm:$0xff]  ;;  %v695_v12 = vld [vmem:[#allocation2 + $0x4a] sm:$0xff] }
  0x5f   : > { %v6593_v42 = vpack.i.bf16 %v686_v41, %v685_v40  ;;  %1357 = vmatpush1.bf16.msra.mxu1 %v6653_v43  ;;  %v696_v13 = vld [vmem:[#allocation2 + $0x52] sm:$0xff]  ;;  %v623_v20 = vld [vmem:[#allocation2 + $0x48] sm:$0xff]  ;;  %v6662_v26 = vld [vmem:[%s9393_s2 + $0xe0] sm:$0xff]  }
  0x60   : > { %1358 = vmatprep.subr.bf16.mxu1 %v9361_v1  ;;  %v697_v27 = vld [vmem:[#allocation2 + $0x62] sm:$0xff]  ;;  %v698_v28 = vld [vmem:[#allocation2 + $0x6a] sm:$0xff]  ;;  %v6663_v34 = vld [vmem:[%s9393_s2 + $0xd8] sm:$0xff]  }
  0x61   : > { %v625_v36 = vld [vmem:[#allocation2 + $0x60] sm:$0xff]  ;;  %v626_v37 = vld [vmem:[#allocation2 + $0x68] sm:$0xff]  ;;  %v7377_v40 = vpack.c.bf16 %v698_v28, %v697_v27  ;;  %v701_v58 = vld [vmem:[#allocation2 + $0x92] sm:$0xff] }
  0x62   : > { %6574 = vrot.lane.b32.xlu1 %v6573_v21, %s9377_s15  ;;  %6579 = vrot.lane.b32.xlu0 %v6578_v24, %s9377_s15  ;;  %v624_v21 = vld [vmem:[#allocation2 + $0x50] sm:$0xff]  ;;  %v7356_v24 = vpack.c.bf16 %v696_v13, %v695_v12  ;;  %v699_v46 = vld [vmem:[#allocation2 + $0x7a] sm:$0xff]  ;;  %v700_v47 = vld [vmem:[#allocation2 + $0x82] sm:$0xff] }
  0x63   : > { %1359 = vmatpush1.bf16.msra.mxu1 %v6654_v44  ;;  %v6664_v44 = vld [vmem:[%s9393_s2 + $0xd0] sm:$0xff]   ;;  %v628_v55 = vld [vmem:[#allocation2 + $0x80] sm:$0xff]  ;;  %v631_v28 = vld [vmem:[#allocation2 + $0xa8] sm:$0xff] }
  0x64   : > { %1360 = vmatprep.subr.bf16.mxu1 %v9361_v1 }
  0x66   : > { %6584 = vrot.lane.b32.xlu1 %v6583_v32, %s9377_s15  ;;  %6589 = vrot.lane.b32.xlu0 %v6588_v33, %s9377_s15 }
  0x67   : > { %1361 = vmatpush1.bf16.msra.mxu1 %v6656_v45 }
  0x68   : > { %1370 = vmatprep.subr.bf16.mxu1 %v9361_v1 }
  0x6a   : > { %6599 = vrot.lane.b32.xlu0 %v6598_v38, %s9377_s15  ;;  %6594 = vrot.lane.b32.xlu1 %v6593_v42, %s9377_s15 }
  0x6b   : > { %1371 = vmatpush2.bf16.msra.mxu1 %v6657_v49 }
  0x6c   : > { %1372 = vmatprep.subr.bf16.mxu1 %v9361_v1 }
  0x6e   : > { %6604 = vrot.lane.b32.xlu1 %v6603_v60, %s9377_s15  ;;  %v6666_v60 = vld [vmem:[%s9393_s2 + $0xc0] sm:$0xff]   ;;  %s9426_s15 = smov 96  }
  0x6f   : > { %1373 = vmatpush2.bf16.msra.mxu1 %v6658_v50 }
  0x70   : > { %1374 = vmatprep.subr.bf16.mxu1 %v9361_v1 }
  0x73   : > { %1375 = vmatpush2.bf16.msra.mxu1 %v6660_v51  ;;  %v7395_v51 = vpack.c.bf16 %v700_v47, %v699_v46  ;;  %v634_v46 = vld [vmem:[#allocation2 + $0xc8] sm:$0xff] }
  0x74   : > { %1376 = vmatprep.subr.bf16.mxu1 %v9361_v1 }
  0x77   : > { %1377 = vmatpush2.bf16.msra.mxu1 %v6661_v52  ;;  %v6665_v52 = vld [vmem:[%s9393_s2 + $0xc8] sm:$0xff]  }
  0x78   : > { %3766 = vmatprep.subr.bf16.mxu1 %v9361_v1 }
  0xbc   : > { %v6520_v59 = vpop.permute.xlu0 %6519 }
  0xbd   : > { %v6522_v61 = vunpack.i.h.bf16 %v6520_v59  ;;  %v6521_v62 = vunpack.i.l.bf16 %v6520_v59  ;;  %v702_v59 = vld [vmem:[#allocation2 + $0x9a] sm:$0xff] }
  0xbf   : > { %v871_v4 = vsel %vm453_vm0, %v619_v53, %v6521_v62  ;;  %v872_v5 = vsel %vm453_vm0, %v620_v54, %v6522_v61  ;;  %v627_v54 = vld [vmem:[#allocation2 + $0x78] sm:$0xff]  ;;  %v617_v62 = vld [vmem:[#allocation2] sm:$0xff] }
  0xc0   : > { %v6525_v7 = vpop.permute.xlu0 %6524  ;;  %v7340_v8 = vpack.c.bf16 %v872_v5, %v871_v4  ;;  %v6530_v17 = vpop.permute.xlu1 %6529 }
  0xc1   : > { %v6527_v9 = vunpack.i.h.bf16 %v6525_v7  ;;  %v6526_v10 = vunpack.i.l.bf16 %v6525_v7  ;;  %v6532_v22 = vunpack.i.h.bf16 %v6530_v17  ;;  %v6531_v23 = vunpack.i.l.bf16 %v6530_v17 }
  0xc2   : > { %1143 = vmatmul.mubr.bf16.vlgmr.msra.gmra.mxu0 %v7340_v8  ;;  %v7414_v7 = vpack.c.bf16 %v702_v59, %v701_v58  ;;  %v635_v58 = vld [vmem:[#allocation2 + $0xd8] sm:$0xff]  ;;  %v636_v59 = vld [vmem:[#allocation2 + $0xe0] sm:$0xff] }
  0xc3   : > { %1608 = vmatpush1.bf16.msra.mxu0 %v6651_v63  ;;  %5975 = vmatprep.mubr.msk.bf16.mxu0 %vm453_vm0, %v7338_v6  ;;  %v873_v14 = vsel %vm453_vm0, %v621_v2, %v6526_v10  ;;  %v874_v15 = vsel %vm453_vm0, %v622_v3, %v6527_v9  ;;  %v875_v29 = vsel %vm453_vm0, %v623_v20, %v6531_v23  ;;  %v618_v63 = vld [vmem:[#allocation2 + $0x8] sm:$0xff] }
  0xc4   : > { %v6540_v16 = vpop.permute.xlu0 %6539  ;;  %1609 = vmatprep.subr.bf16.mxu0 %v9361_v1  ;;  %v7354_v19 = vpack.c.bf16 %v874_v15, %v873_v14  ;;  %v876_v30 = vsel %vm453_vm0, %v624_v21, %v6532_v22  ;;  %v6535_v33 = vpop.permute.xlu1 %6534  ;;  %v629_v14 = vld [vmem:[#allocation2 + $0x90] sm:$0xff]  ;;  %v630_v15 = vld [vmem:[#allocation2 + $0x98] sm:$0xff] }
  0xc5   : > { %v7375_v35 = vpack.c.bf16 %v876_v30, %v875_v29  ;;  %v6537_v38 = vunpack.i.h.bf16 %v6535_v33  ;;  %v6536_v39 = vunpack.i.l.bf16 %v6535_v33  ;;  %v6542_v49 = vunpack.i.h.bf16 %v6540_v16  ;;  %v703_v20 = vld [vmem:[#allocation2 + $0xaa] sm:$0xff]  ;;  %v704_v21 = vld [vmem:[#allocation2 + $0xb2] sm:$0xff] }
  0xc6   : > { %v6541_v50 = vunpack.i.l.bf16 %v6540_v16  ;;  %v6667_v16 = vld [vmem:[%s9393_s2 + $0x118] sm:$0xff]   ;;  %v6668_v22 = vld [vmem:[%s9393_s2 + $0x110] sm:$0xff]   ;;  %v6669_v30 = vld [vmem:[%s9393_s2 + $0x108] sm:$0xff]  }
  0xc7   : > { %1610 = vmatpush1.bf16.msra.mxu0 %v6655_v11  ;;  %v877_v42 = vsel %vm453_vm0, %v625_v36, %v6536_v39  ;;  %v878_v43 = vsel %vm453_vm0, %v626_v37, %v6537_v38  ;;  %v880_v57 = vsel %vm453_vm0, %v628_v55, %v6542_v49  ;;  %v632_v29 = vld [vmem:[#allocation2 + $0xb0] sm:$0xff]  ;;  %v705_v36 = vld [vmem:[#allocation2 + $0xc2] sm:$0xff] }
  0xc8   : > { %v7358_v25 = vpop.permute.xlu0 %6549  ;;  %1611 = vmatprep.subr.bf16.mxu0 %v9361_v1  ;;  %v7393_v48 = vpack.c.bf16 %v878_v43, %v877_v42  ;;  %v879_v56 = vsel %vm453_vm0, %v627_v54, %v6541_v50  ;;  %v6545_v2 = vpop.permute.xlu1 %6544  ;;  %v706_v37 = vld [vmem:[#allocation2 + $0xca] sm:$0xff]  ;;  %v6670_v38 = vld [vmem:[%s9393_s2 + $0x100] sm:$0xff]   ;;  %s9430_s2 = smov 80  }
  0xc9   : > { %v7412_v5 = vpack.c.bf16 %v880_v57, %v879_v56  ;;  %v6547_v11 = vunpack.i.h.bf16 %v6545_v2  ;;  %v6546_v12 = vunpack.i.l.bf16 %v6545_v2  ;;  %v6551_v27 = vunpack.i.l.bf16 %v7358_v25  ;;  %v707_v50 = vld [vmem:[#allocation2 + $0xda] sm:$0xff] }
  0xca   : > { %1151 = vmatmul.mubr.bf16.gmra.mxu0 %v7354_v19  ;;  %v7457_v43 = vpack.c.bf16 %v706_v37, %v705_v36  ;;  %v641_v36 = vld [vmem:[#allocation2 + $0x120] sm:$0xff]  ;;  %v642_v37 = vld [vmem:[#allocation2 + $0x128] sm:$0xff] }
  0xcb   : > { %5976 = vmatprep.mubr.msk.bf16.mxu0 %vm453_vm0, %v7356_v24  ;;  %1612 = vmatpush1.bf16.msra.mxu0 %v6659_v18  ;;  %v881_v17 = vsel %vm453_vm0, %v629_v14, %v6546_v12  ;;  %v882_v18 = vsel %vm453_vm0, %v630_v15, %v6547_v11  ;;  %v638_v11 = vld [vmem:[#allocation2 + $0xf8] sm:$0xff]  ;;  %v711_v14 = vld [vmem:[#allocation2 + $0x10a] sm:$0xff] }
  0xcc   : > { %v7369_v32 = vpop.permute.xlu0 %6559  ;;  %1613 = vmatprep.subr.bf16.mxu0 %v9361_v1  ;;  %v7433_v23 = vpack.c.bf16 %v882_v18, %v881_v17  ;;  %v712_v15 = vld [vmem:[#allocation2 + $0x112] sm:$0xff] }
  0xcd   : > { %v6562_v55 = vunpack.i.h.bf16 %v7369_v32  ;;  %v6561_v56 = vunpack.i.l.bf16 %v7369_v32  ;;  %v709_v32 = vld [vmem:[#allocation2 + $0xf2] sm:$0xff] }
  0xcf   : > { %1614 = vmatpush1.bf16.msra.mxu0 %v6662_v26  ;;  %v6552_v26 = vunpack.i.h.bf16 %v7358_v25  ;;  %v883_v25 = vsel %vm453_vm0, %v631_v28, %v6551_v27 }
  0xd0   : > { %v7379_v41 = vpop.permute.xlu0 %6569  ;;  %1615 = vmatprep.subr.bf16.mxu0 %v9361_v1 }
  0xd1   : > { %v884_v33 = vsel %vm453_vm0, %v632_v29, %v6552_v26  ;;  %v6572_v17 = vunpack.i.h.bf16 %v7379_v41  ;;  %v6571_v18 = vunpack.i.l.bf16 %v7379_v41  ;;  %v713_v41 = vld [vmem:[#allocation2 + $0x122] sm:$0xff]  ;;  %v714_v29 = vld [vmem:[#allocation2 + $0x12a] sm:$0xff] }
  0xd2   : > { %1159 = vmatmul.mubr.bf16.gmra.mxu0 %v7375_v35 }
  0xd3   : > { %5977 = vmatprep.mubr.msk.bf16.mxu0 %vm453_vm0, %v7377_v40  ;;  %1616 = vmatpush1.bf16.msra.mxu0 %v6663_v34  ;;  %v6555_v34 = vpop.permute.xlu1 %6554 }
  0xd4   : > { %v7390_v45 = vpop.permute.xlu0 %6579  ;;  %1617 = vmatprep.subr.bf16.mxu0 %v9361_v1  ;;  %v6557_v39 = vunpack.i.h.bf16 %v6555_v34  ;;  %v6556_v42 = vunpack.i.l.bf16 %v6555_v34  ;;  %v7510_v34 = vpack.c.bf16 %v714_v29, %v713_v41  ;;  %v722_v41 = vld [vmem:[#allocation2 + $0x18a] sm:$0xff] }
  0xd6   : > { %v886_v49 = vsel %vm453_vm0, %v634_v46, %v6557_v39 }
  0xd7   : > { %1618 = vmatpush1.bf16.msra.mxu0 %v6664_v44  ;;  %v633_v44 = vld [vmem:[#allocation2 + $0xc0] sm:$0xff] }
  0xd8   : > { %v7400_v53 = vpop.permute.xlu0 %6589  ;;  %1619 = vmatprep.subr.bf16.mxu0 %v9361_v1  ;;  %v885_v47 = vsel %vm453_vm0, %v633_v44, %v6556_v42  ;;  %v715_v42 = vld [vmem:[#allocation2 + $0x13a] sm:$0xff]  ;;  %v716_v44 = vld [vmem:[#allocation2 + $0x142] sm:$0xff] }
  0xd9   : > { %v7468_v54 = vpack.c.bf16 %v886_v49, %v885_v47  ;;  %v6582_v47 = vunpack.i.h.bf16 %v7390_v45  ;;  %v6581_v49 = vunpack.i.l.bf16 %v7390_v45  ;;  %v717_v45 = vld [vmem:[#allocation2 + $0x152] sm:$0xff] }
  0xda   : > { %1167 = vmatmul.mubr.bf16.gmra.mxu0 %v7393_v48 }
  0xdb   : > { %5978 = vmatprep.mubr.msk.bf16.mxu0 %vm453_vm0, %v7395_v51  ;;  %1620 = vmatpush1.bf16.msra.mxu0 %v6665_v52  ;;  %v708_v52 = vld [vmem:[#allocation2 + $0xe2] sm:$0xff] }
  0xdc   : > { %v6600_v61 = vpop.permute.xlu0 %6599  ;;  %1621 = vmatprep.subr.bf16.mxu0 %v9361_v1  ;;  %v7472_v57 = vpack.c.bf16 %v708_v52, %v707_v50  ;;  %v7524_v50 = vpack.c.bf16 %v716_v44, %v715_v42  ;;  %v643_v52 = vld [vmem:[#allocation2 + $0x138] sm:$0xff] }
  0xdd   : > { %v6602_v3 = vunpack.i.h.bf16 %v6600_v61  ;;  %v6601_v4 = vunpack.i.l.bf16 %v6600_v61  ;;  %v888_v61 = vsel %vm453_vm0, %v636_v59, %v6562_v55  ;;  %v644_v55 = vld [vmem:[#allocation2 + $0x140] sm:$0xff] }
  0xdf   : > { %v869_v9 = vsel %vm453_vm0, %v617_v62, %v6601_v4  ;;  %v870_v10 = vsel %vm453_vm0, %v618_v63, %v6602_v3  ;;  %1622 = vmatpush1.bf16.msra.mxu0 %v6666_v60  ;;  %v887_v60 = vsel %vm453_vm0, %v635_v58, %v6561_v56  ;;  %v6565_v62 = vpop.permute.xlu1 %6564  ;;  %v710_v63 = vld [vmem:[#allocation2 + $0xfa] sm:$0xff]  ;;  %v895_v56 = vsel %vm453_vm0, %v643_v52, %v6581_v49 }
  0xe0   : > { %v905_v13 = vpack.c.bf16 %v870_v10, %v869_v9  ;;  %1631 = vmatprep.subr.bf16.mxu0 %v9361_v1  ;;  %v7482_v2 = vpack.c.bf16 %v888_v61, %v887_v60  ;;  %v6567_v3 = vunpack.i.h.bf16 %v6565_v62  ;;  %v6566_v4 = vunpack.i.l.bf16 %v6565_v62  ;;  %v637_v10 = vld [vmem:[#allocation2 + $0xf0] sm:$0xff]  ;;  %v718_v60 = vld [vmem:[#allocation2 + $0x15a] sm:$0xff] }
  0xe1   : > { %v7484_v9 = vpack.c.bf16 %v710_v63, %v709_v32  ;;  %v896_v58 = vsel %vm453_vm0, %v644_v55, %v6582_v47  ;;  %v7536_v63 = vpack.c.bf16 %v718_v60, %v717_v45 }
  0xe2   : > { %1175 = vmatmul.mubr.bf16.gmra.mxu0 %v7412_v5  ;;  %1379 = vmatmul.mubr.bf16.vlgmr.msra.gmra.mxu1 %v905_v13  ;;  %v889_v12 = vsel %vm453_vm0, %v637_v10, %v6566_v4  ;;  %v890_v13 = vsel %vm453_vm0, %v638_v11, %v6567_v3  ;;  %v7534_v61 = vpack.c.bf16 %v896_v58, %v895_v56  ;;  %v645_v3 = vld [vmem:[#allocation2 + $0x150] sm:$0xff]  ;;  %v646_v4 = vld [vmem:[#allocation2 + $0x158] sm:$0xff] }
  0xe3   : > { %5979 = vmatprep.mubr.msk.bf16.mxu0 %vm453_vm0, %v7414_v7  ;;  %6003 = vmatprep.mubr.msk.bf16.mxu1 %vm453_vm0, %v7276_v31  ;;  %v7437_v31 = vpack.c.bf16 %v704_v21, %v703_v20  ;;  %v7498_v20 = vpack.c.bf16 %v712_v15, %v711_v14  ;;  %v639_v21 = vld [vmem:[#allocation2 + $0x108] sm:$0xff]  ;;  %v6575_v28 = vpop.permute.xlu1 %6574  ;;  %v6592_v15 = vunpack.i.h.bf16 %v7400_v53 }
  0xe4   : > { %1632 = vmatpush2.bf16.msra.mxu0 %v6667_v16  ;;  %v7494_v16 = vpack.c.bf16 %v890_v13, %v889_v12  ;;  %v891_v26 = vsel %vm453_vm0, %v639_v21, %v6571_v18  ;;  %v719_v12 = vld [vmem:[#allocation2 + $0x16a] sm:$0xff]  ;;  %v720_v13 = vld [vmem:[#allocation2 + $0x172] sm:$0xff] }
  0xe5   : > { %1633 = vmatprep.subr.bf16.mxu0 %v9361_v1  ;;  %v7550_v18 = vpack.c.bf16 %v720_v13, %v719_v12  ;;  %v647_v21 = vld [vmem:[#allocation2 + $0x168] sm:$0xff] }
  0xe7   : > { %v6585_v59 = vpop.permute.xlu1 %6584 }
  0xe8   : > { %1634 = vmatpush2.bf16.msra.mxu0 %v6668_v22  ;;  %v640_v22 = vld [vmem:[#allocation2 + $0x110] sm:$0xff]  ;;  %v6587_v62 = vunpack.i.h.bf16 %v6585_v59  ;;  %v6586_v32 = vunpack.i.l.bf16 %v6585_v59 }
  0xe9   : > { %1635 = vmatprep.subr.bf16.mxu0 %v9361_v1  ;;  %v892_v27 = vsel %vm453_vm0, %v640_v22, %v6572_v17  ;;  %v6591_v17 = vunpack.i.l.bf16 %v7400_v53  ;;  %v648_v22 = vld [vmem:[#allocation2 + $0x170] sm:$0xff]  ;;  %v721_v53 = vld [vmem:[#allocation2 + $0x182] sm:$0xff] }
  0xea   : > { %1183 = vmatmul.mubr.bf16.gmra.mxu0 %v7433_v23  ;;  %1387 = vmatmul.mubr.bf16.gmra.mxu1 %v7340_v8  ;;  %v7455_v8 = vpack.c.bf16 %v884_v33, %v883_v25  ;;  %v6577_v25 = vunpack.i.h.bf16 %v6575_v28  ;;  %v6576_v33 = vunpack.i.l.bf16 %v6575_v28  ;;  %v897_v10 = vsel %vm453_vm0, %v645_v3, %v6586_v32 }
  0xeb   : > { %5980 = vmatprep.mubr.msk.bf16.mxu0 %vm453_vm0, %v7437_v31  ;;  %6004 = vmatprep.mubr.msk.bf16.mxu1 %vm453_vm0, %v7338_v6  ;;  %v898_v11 = vsel %vm453_vm0, %v646_v4, %v6587_v62  ;;  %v6595_v28 = vpop.permute.xlu1 %6594  ;;  %v724_v62 = vld [vmem:[#allocation2 + $0x1a2] sm:$0xff] }
  0xec   : > { %1636 = vmatpush2.bf16.msra.mxu0 %v6669_v30  ;;  %v7508_v30 = vpack.c.bf16 %v892_v27, %v891_v26  ;;  %v894_v39 = vsel %vm453_vm0, %v642_v37, %v6577_v25  ;;  %v7546_v14 = vpack.c.bf16 %v898_v11, %v897_v10  ;;  %v899_v26 = vsel %vm453_vm0, %v647_v21, %v6591_v17  ;;  %v649_v37 = vld [vmem:[#allocation2 + $0x180] sm:$0xff] }
  0xed   : > { %1637 = vmatprep.subr.bf16.mxu0 %v9361_v1  ;;  %v900_v27 = vsel %vm453_vm0, %v648_v22, %v6592_v15  ;;  %v6597_v25 = vunpack.i.h.bf16 %v6595_v28  ;;  %v652_v15 = vld [vmem:[#allocation2 + $0x1a0] sm:$0xff] }
  0xee   : > { %v7560_v29 = vpack.c.bf16 %v900_v27, %v899_v26 }
  0xef   : > { %v6605_v59 = vpop.permute.xlu1 %6604 }
  0xf0   : > { %1638 = vmatpush2.bf16.msra.mxu0 %v6670_v38  ;;  %v893_v38 = vsel %vm453_vm0, %v641_v36, %v6576_v33  ;;  %v6596_v33 = vunpack.i.l.bf16 %v6595_v28  ;;  %v7562_v36 = vpack.c.bf16 %v722_v41, %v721_v53  ;;  %v6607_v4 = vunpack.i.h.bf16 %v6605_v59 }
  0xf1   : > { %4795 = vmatprep.subr.bf16.mxu0 %v9361_v1  ;;  %v7520_v46 = vpack.c.bf16 %v894_v39, %v893_v38  ;;  %v650_v38 = vld [vmem:[#allocation2 + $0x188] sm:$0xff]  ;;  %v6606_v10 = vunpack.i.l.bf16 %v6605_v59 }
  0xf2   : > { %1191 = vmatmul.mubr.bf16.gmra.mxu0 %v7455_v8  ;;  %1395 = vmatmul.mubr.bf16.gmra.mxu1 %v7354_v19  ;;  %v901_v39 = vsel %vm453_vm0, %v649_v37, %v6596_v33  ;;  %v902_v42 = vsel %vm453_vm0, %v650_v38, %v6597_v25  ;;  %v904_v22 = vsel %vm453_vm0, %v652_v15, %v6607_v4 }
  0xf3   : > { %5981 = vmatprep.mubr.msk.bf16.mxu0 %vm453_vm0, %v7457_v43  ;;  %6005 = vmatprep.mubr.msk.bf16.mxu1 %vm453_vm0, %v7356_v24  ;;  %v7572_v44 = vpack.c.bf16 %v902_v42, %v901_v39 }
  0xfa   : > { %1199 = vmatmul.mubr.bf16.gmra.mxu0 %v7468_v54  ;;  %1403 = vmatmul.mubr.bf16.gmra.mxu1 %v7375_v35 }
  0xfb   : > { %5982 = vmatprep.mubr.msk.bf16.mxu0 %vm453_vm0, %v7472_v57  ;;  %6006 = vmatprep.mubr.msk.bf16.mxu1 %vm453_vm0, %v7377_v40 }
 0x102   : > { %1207 = vmatmul.mubr.bf16.gmra.mxu0 %v7482_v2  ;;  %1411 = vmatmul.mubr.bf16.gmra.mxu1 %v7393_v48 }
 0x103   : > { %5983 = vmatprep.mubr.msk.bf16.mxu0 %vm453_vm0, %v7484_v9  ;;  %6007 = vmatprep.mubr.msk.bf16.mxu1 %vm453_vm0, %v7395_v51 }
 0x10a   : > { %1215 = vmatmul.mubr.bf16.gmra.mxu0 %v7494_v16  ;;  %1419 = vmatmul.mubr.bf16.gmra.mxu1 %v7412_v5 }
 0x10b   : > { %5984 = vmatprep.mubr.msk.bf16.mxu0 %vm453_vm0, %v7498_v20  ;;  %6008 = vmatprep.mubr.msk.bf16.mxu1 %vm453_vm0, %v7414_v7 }
 0x112   : > { %1223 = vmatmul.mubr.bf16.gmra.mxu0 %v7508_v30  ;;  %1427 = vmatmul.mubr.bf16.gmra.mxu1 %v7433_v23 }
 0x113   : > { %5985 = vmatprep.mubr.msk.bf16.mxu0 %vm453_vm0, %v7510_v34  ;;  %6009 = vmatprep.mubr.msk.bf16.mxu1 %vm453_vm0, %v7437_v31 }
 0x11a   : > { %1231 = vmatmul.mubr.bf16.gmra.mxu0 %v7520_v46  ;;  %1435 = vmatmul.mubr.bf16.gmra.mxu1 %v7455_v8 }
 0x11b   : > { %5986 = vmatprep.mubr.msk.bf16.mxu0 %vm453_vm0, %v7524_v50  ;;  %6010 = vmatprep.mubr.msk.bf16.mxu1 %vm453_vm0, %v7457_v43 }
 0x122   : > { %1239 = vmatmul.mubr.bf16.gmra.mxu0 %v7534_v61  ;;  %1443 = vmatmul.mubr.bf16.gmra.mxu1 %v7468_v54 }
 0x123   : > { %5987 = vmatprep.mubr.msk.bf16.mxu0 %vm453_vm0, %v7536_v63  ;;  %6011 = vmatprep.mubr.msk.bf16.mxu1 %vm453_vm0, %v7472_v57 }
 0x12a   : > { %1247 = vmatmul.mubr.bf16.gmra.mxu0 %v7546_v14  ;;  %1451 = vmatmul.mubr.bf16.gmra.mxu1 %v7482_v2 }
 0x12b   : > { %5988 = vmatprep.mubr.msk.bf16.mxu0 %vm453_vm0, %v7550_v18  ;;  %6012 = vmatprep.mubr.msk.bf16.mxu1 %vm453_vm0, %v7484_v9 }
 0x132   : > { %1255 = vmatmul.mubr.bf16.gmra.mxu0 %v7560_v29  ;;  %1459 = vmatmul.mubr.bf16.gmra.mxu1 %v7494_v16 }
 0x133   : > { %5989 = vmatprep.mubr.msk.bf16.mxu0 %vm453_vm0, %v7562_v36  ;;  %6013 = vmatprep.mubr.msk.bf16.mxu1 %vm453_vm0, %v7498_v20 }
 0x13a   : > { %1263 = vmatmul.mubr.bf16.gmra.mxu0 %v7572_v44  ;;  %1467 = vmatmul.mubr.bf16.gmra.mxu1 %v7508_v30 }
 0x13b   : > { %6014 = vmatprep.mubr.msk.bf16.mxu1 %vm453_vm0, %v7510_v34  ;;  %6054 = vmatprep.mubr.msk.bf16.mxu0 %vm453_vm0, %v7338_v6 }
 0x142   : > { %1475 = vmatmul.mubr.bf16.gmra.mxu1 %v7520_v46  ;;  %1640 = vmatmul.mubr.bf16.vlgmr.msra.gmra.mxu0 %v7354_v19 }
 0x143   : > { %6015 = vmatprep.mubr.msk.bf16.mxu1 %vm453_vm0, %v7524_v50  ;;  %6055 = vmatprep.mubr.msk.bf16.mxu0 %vm453_vm0, %v7356_v24 }
 0x14a   : > { %1483 = vmatmul.mubr.bf16.gmra.mxu1 %v7534_v61  ;;  %1648 = vmatmul.mubr.bf16.gmra.mxu0 %v7375_v35 }
 0x14b   : > { %6016 = vmatprep.mubr.msk.bf16.mxu1 %vm453_vm0, %v7536_v63  ;;  %6056 = vmatprep.mubr.msk.bf16.mxu0 %vm453_vm0, %v7377_v40 }
 0x152   : > { %1491 = vmatmul.mubr.bf16.gmra.mxu1 %v7546_v14  ;;  %1656 = vmatmul.mubr.bf16.gmra.mxu0 %v7393_v48 }
 0x153   : > { %6017 = vmatprep.mubr.msk.bf16.mxu1 %vm453_vm0, %v7550_v18  ;;  %6057 = vmatprep.mubr.msk.bf16.mxu0 %vm453_vm0, %v7395_v51 }
 0x15a   : > { %1499 = vmatmul.mubr.bf16.gmra.mxu1 %v7560_v29  ;;  %1664 = vmatmul.mubr.bf16.gmra.mxu0 %v7412_v5 }
 0x15b   : > { %6058 = vmatprep.mubr.msk.bf16.mxu0 %vm453_vm0, %v7414_v7 }
 0x162   : > { %1672 = vmatmul.mubr.bf16.gmra.mxu0 %v7433_v23 }
 0x163   : > { %6059 = vmatprep.mubr.msk.bf16.mxu0 %vm453_vm0, %v7437_v31 }
 0x16a   : > { %1680 = vmatmul.mubr.bf16.gmra.mxu0 %v7455_v8 }
 0x16b   : > { %6060 = vmatprep.mubr.msk.bf16.mxu0 %vm453_vm0, %v7457_v43 }
 0x172   : > { %1688 = vmatmul.mubr.bf16.gmra.mxu0 %v7468_v54 }
 0x173   : > { %6061 = vmatprep.mubr.msk.bf16.mxu0 %vm453_vm0, %v7472_v57 }
 0x17a   : > { %1696 = vmatmul.mubr.bf16.gmra.mxu0 %v7482_v2 }
 0x17b   : > { %6062 = vmatprep.mubr.msk.bf16.mxu0 %vm453_vm0, %v7484_v9 }
 0x182   : > { %v1144_v6 = vpop.f32.mrf.mxu0  ;;  %1704 = vmatmul.mubr.bf16.gmra.mxu0 %v7494_v16 }
 0x183   : > { %6063 = vmatprep.mubr.msk.bf16.mxu0 %vm453_vm0, %v7498_v20 }
 0x184   : > { %v1146_v19 = vpop.f32.mrf.mxu0 }
 0x186   : > { %v1147_v24 = vpop.f32.mrf.mxu0 }
 0x188   : > { %v1149_v35 = vpop.f32.mrf.mxu0 }
 0x18a   : > { %v1152_v40 = vpop.f32.mrf.mxu0  ;;  %1712 = vmatmul.mubr.bf16.gmra.mxu0 %v7508_v30 }
 0x18b   : > { %6064 = vmatprep.mubr.msk.bf16.mxu0 %vm453_vm0, %v7510_v34 }
 0x18c   : > { %v1154_v48 = vpop.f32.mrf.mxu0 }
 0x18e   : > { %v1155_v51 = vpop.f32.mrf.mxu0 }
 0x190   : > { %v1157_v5 = vpop.f32.mrf.mxu0 }
 0x192   : > { %v1160_v7 = vpop.f32.mrf.mxu0  ;;  %1720 = vmatmul.mubr.bf16.gmra.mxu0 %v7520_v46 }
 0x193   : > { %6065 = vmatprep.mubr.msk.bf16.mxu0 %vm453_vm0, %v7524_v50 }
 0x194   : > { %v1162_v23 = vpop.f32.mrf.mxu0 }
 0x196   : > { %v1163_v31 = vpop.f32.mrf.mxu0 }
 0x198   : > { %v1165_v8 = vpop.f32.mrf.mxu0 }
 0x19a   : > { %v1168_v43 = vpop.f32.mrf.mxu0  ;;  %1728 = vmatmul.mubr.bf16.gmra.mxu0 %v7534_v61  ;;  %v723_v61 = vld [vmem:[#allocation2 + $0x19a] sm:$0xff] }
 0x19b   : > { %6066 = vmatprep.mubr.msk.bf16.mxu0 %vm453_vm0, %v7536_v63  ;;  %v940_v11 = vpack.c.bf16 %v724_v62, %v723_v61 }
 0x19c   : > { %v1170_v54 = vpop.f32.mrf.mxu0 }
 0x19e   : > { %v1171_v57 = vpop.f32.mrf.mxu0 }
 0x1a0   : > { %v1173_v2 = vpop.f32.mrf.mxu0 }
 0x1a2   : > { %v1176_v9 = vpop.f32.mrf.mxu0  ;;  %v1380_v16 = vpop.f32.mrf.mxu1  ;;  %1736 = vmatmul.mubr.bf16.gmra.mxu0 %v7546_v14  ;;  %v651_v14 = vld [vmem:[#allocation2 + $0x198] sm:$0xff] }
 0x1a3   : > { %v7627_v20 = vadd.f32 %v1380_v16, %v1144_v6  ;;  %6067 = vmatprep.mubr.msk.bf16.mxu0 %vm453_vm0, %v7550_v18  ;;  %v903_v26 = vsel %vm453_vm0, %v651_v14, %v6606_v10 }
 0x1a4   : > { %v1178_v30 = vpop.f32.mrf.mxu0  ;;  %v1382_v34 = vpop.f32.mrf.mxu1 }
 0x1a6   : > { %v1179_v46 = vpop.f32.mrf.mxu0  ;;  %v1383_v47 = vpop.f32.mrf.mxu1 }
 0x1a7   : > { %v7631_v49 = vadd.f32 %v1383_v47, %v1147_v24 }
 0x1a8   : > { %v1181_v50 = vpop.f32.mrf.mxu0  ;;  %v1385_v52 = vpop.f32.mrf.mxu1 }
 0x1aa   : > { %v1184_v55 = vpop.f32.mrf.mxu0  ;;  %v1388_v56 = vpop.f32.mrf.mxu1  ;;  %1744 = vmatmul.mubr.bf16.gmra.mxu0 %v7560_v29  ;;  %v939_v29 = vpack.c.bf16 %v904_v22, %v903_v26 }
 0x1ab   : > { %v7634_v58 = vadd.f32 %v1388_v56, %v1152_v40  ;;  %6068 = vmatprep.mubr.msk.bf16.mxu0 %vm453_vm0, %v7562_v36 }
 0x1ac   : > { %v1186_v45 = vpop.f32.mrf.mxu0  ;;  %v1390_v60 = vpop.f32.mrf.mxu1 }
 0x1ae   : > { %v1187_v32 = vpop.f32.mrf.mxu0  ;;  %v1391_v63 = vpop.f32.mrf.mxu1 }
 0x1af   : > { %v7638_v3 = vadd.f32 %v1391_v63, %v1155_v51 }
 0x1b0   : > { %v1189_v12 = vpop.f32.mrf.mxu0  ;;  %v1393_v13 = vpop.f32.mrf.mxu1 }
 0x1b2   : > { %v1192_v17 = vpop.f32.mrf.mxu0  ;;  %v1396_v18 = vpop.f32.mrf.mxu1  ;;  %1752 = vmatmul.mubr.bf16.gmra.mxu0 %v7572_v44 }
 0x1b3   : > { %v7641_v21 = vadd.f32 %v1396_v18, %v1160_v7  ;;  %6069 = vmatprep.mubr.msk.bf16.mxu0 %vm453_vm0, %v940_v11 }
 0x1b4   : > { %v1194_v27 = vpop.f32.mrf.mxu0  ;;  %v1398_v28 = vpop.f32.mrf.mxu1 }
 0x1b6   : > { %v1195_v53 = vpop.f32.mrf.mxu0  ;;  %v1399_v41 = vpop.f32.mrf.mxu1 }
 0x1b7   : > { %v7646_v25 = vadd.f32 %v1399_v41, %v1163_v31 }
 0x1b8   : > { %v1197_v33 = vpop.f32.mrf.mxu0  ;;  %v1401_v36 = vpop.f32.mrf.mxu1 }
 0x1ba   : > { %v1200_v37 = vpop.f32.mrf.mxu0  ;;  %v1404_v38 = vpop.f32.mrf.mxu1  ;;  %1760 = vmatmul.mubr.bf16.gmra.mxu0 %v939_v29 }
 0x1bb   : > { %v7648_v39 = vadd.f32 %v1404_v38, %v1168_v43 }
 0x1bc   : > { %v1202_v42 = vpop.f32.mrf.mxu0  ;;  %v1406_v44 = vpop.f32.mrf.mxu1 }
 0x1be   : > { %v1203_v6 = vpop.f32.mrf.mxu0  ;;  %v1407_v19 = vpop.f32.mrf.mxu1 }
 0x1bf   : > { %v7650_v24 = vadd.f32 %v1407_v19, %v1171_v57 }
 0x1c0   : > { %v1205_v35 = vpop.f32.mrf.mxu0  ;;  %v1409_v40 = vpop.f32.mrf.mxu1 }
 0x1c2   : > { %v1208_v48 = vpop.f32.mrf.mxu0  ;;  %v1412_v51 = vpop.f32.mrf.mxu1 }
 0x1c3   : > { %v7652_v5 = vadd.f32 %v1412_v51, %v1176_v9 }
 0x1c4   : > { %v1210_v7 = vpop.f32.mrf.mxu0  ;;  %v1414_v23 = vpop.f32.mrf.mxu1 }
 0x1c6   : > { %v1211_v31 = vpop.f32.mrf.mxu0  ;;  %v1415_v8 = vpop.f32.mrf.mxu1 }
 0x1c7   : > { %v7654_v54 = vadd.f32 %v1415_v8, %v1179_v46 }
 0x1c8   : > { %v1213_v43 = vpop.f32.mrf.mxu0  ;;  %v1417_v2 = vpop.f32.mrf.mxu1 }
 0x1ca   : > { %v1216_v16 = vpop.f32.mrf.mxu0  ;;  %v1420_v30 = vpop.f32.mrf.mxu1 }
 0x1cb   : > { %v7656_v34 = vadd.f32 %v1420_v30, %v1184_v55 }
 0x1cc   : > { %v1218_v57 = vpop.f32.mrf.mxu0  ;;  %v1422_v47 = vpop.f32.mrf.mxu1 }
 0x1ce   : > { %v1219_v50 = vpop.f32.mrf.mxu0  ;;  %v1423_v52 = vpop.f32.mrf.mxu1 }
 0x1cf   : > { %v7658_v56 = vadd.f32 %v1423_v52, %v1187_v32 }
 0x1d0   : > { %v1221_v9 = vpop.f32.mrf.mxu0  ;;  %v1425_v59 = vpop.f32.mrf.mxu1 }
 0x1d2   : > { %v1224_v45 = vpop.f32.mrf.mxu0  ;;  %v1428_v60 = vpop.f32.mrf.mxu1 }
 0x1d3   : > { %v7660_v61 = vadd.f32 %v1428_v60, %v1192_v17 }
 0x1d4   : > { %v1226_v46 = vpop.f32.mrf.mxu0  ;;  %v1430_v62 = vpop.f32.mrf.mxu1 }
 0x1d6   : > { %v1227_v63 = vpop.f32.mrf.mxu0  ;;  %v1431_v4 = vpop.f32.mrf.mxu1 }
 0x1d7   : > { %v7662_v10 = vadd.f32 %v1431_v4, %v1195_v53 }
 0x1d8   : > { %v1229_v55 = vpop.f32.mrf.mxu0  ;;  %v1433_v11 = vpop.f32.mrf.mxu1 }
 0x1da   : > { %v1232_v12 = vpop.f32.mrf.mxu0  ;;  %v1436_v13 = vpop.f32.mrf.mxu1 }
 0x1db   : > { %v7664_v14 = vadd.f32 %v1436_v13, %v1200_v37 }
 0x1dc   : > { %v1234_v32 = vpop.f32.mrf.mxu0  ;;  %v1438_v15 = vpop.f32.mrf.mxu1 }
 0x1de   : > { %v1235_v18 = vpop.f32.mrf.mxu0  ;;  %v1439_v22 = vpop.f32.mrf.mxu1 }
 0x1df   : > { %v7666_v26 = vadd.f32 %v1439_v22, %v1203_v6 }
 0x1e0   : > { %v1237_v17 = vpop.f32.mrf.mxu0  ;;  %v1441_v27 = vpop.f32.mrf.mxu1 }
 0x1e2   : > { %v1240_v28 = vpop.f32.mrf.mxu0  ;;  %v1444_v41 = vpop.f32.mrf.mxu1 }
 0x1e3   : > { %v7668_v29 = vadd.f32 %v1444_v41, %v1208_v48 }
 0x1e4   : > { %v1242_v53 = vpop.f32.mrf.mxu0  ;;  %v1446_v33 = vpop.f32.mrf.mxu1 }
 0x1e6   : > { %v1243_v36 = vpop.f32.mrf.mxu0  ;;  %v1447_v38 = vpop.f32.mrf.mxu1 }
 0x1e7   : > { %v7670_v42 = vadd.f32 %v1447_v38, %v1211_v31 }
 0x1e8   : > { %v1245_v37 = vpop.f32.mrf.mxu0  ;;  %v1449_v44 = vpop.f32.mrf.mxu1 }
 0x1ea   : > { %v1248_v19 = vpop.f32.mrf.mxu0  ;;  %v1452_v35 = vpop.f32.mrf.mxu1 }
 0x1eb   : > { %v7672_v40 = vadd.f32 %v1452_v35, %v1216_v16  ;;  %v6847_v35 = vmov 1983009808  }
 0x1ec   : > { %v1250_v6 = vpop.f32.mrf.mxu0  ;;  %v1454_v51 = vpop.f32.mrf.mxu1 }
 0x1ed   : > { %v1969_v6 = vunpack.c.l.s4 %v6847_v35  ;;  %v1971_v51 = vlaneseq }
 0x1ee   : > { %v1251_v7 = vpop.f32.mrf.mxu0  ;;  %v1455_v23 = vpop.f32.mrf.mxu1 }
 0x1ef   : > { %v7674_v8 = vadd.f32 %v1455_v23, %v1219_v50 }
 0x1f0   : > { %v1253_v48 = vpop.f32.mrf.mxu0  ;;  %v1457_v43 = vpop.f32.mrf.mxu1 }
 0x1f2   : > { %v7676_v2 = vpop.f32.mrf.mxu0  ;;  %v1460_v30 = vpop.f32.mrf.mxu1 }
 0x1f3   : > { %v7678_v57 = vadd.f32 %v1460_v30, %v1224_v45 }
 0x1f4   : > { %v1258_v31 = vpop.f32.mrf.mxu0  ;;  %v1462_v47 = vpop.f32.mrf.mxu1 }
 0x1f6   : > { %v7680_v52 = vpop.f32.mrf.mxu0  ;;  %v1463_v9 = vpop.f32.mrf.mxu1 }
 0x1f7   : > { %v7682_v16 = vadd.f32 %v1463_v9, %v1227_v63  ;;  %v1970_v9 = vunpack.c.0.s8 %v1969_v6 }
 0x1f8   : > { %v1261_v59 = vpop.f32.mrf.mxu0  ;;  %v1465_v60 = vpop.f32.mrf.mxu1 }
 0x1fa   : > { %v7684_v46 = vpop.f32.mrf.mxu0  ;;  %v1468_v50 = vpop.f32.mrf.mxu1 }
 0x1fb   : > { %v7686_v62 = vadd.f32 %v1468_v50, %v1232_v12  ;;  %v7698_v12 = vld [vmem:[%s9395_s3] ss:$0 sm:$0xff]  ;;  %s451_s3 = scalar_lea.vmem %s9346_s1, %s7006_s22 }
 0x1fc   : > { %v1266_v4 = vpop.f32.mrf.mxu0  ;;  %v1470_v55 = vpop.f32.mrf.mxu1 }
 0x1fe   : > { %v7688_v11 = vpop.f32.mrf.mxu0  ;;  %v1471_v45 = vpop.f32.mrf.mxu1 }
 0x1ff   : > { %v7690_v13 = vadd.f32 %v1471_v45, %v1235_v18 }
 0x200   : > { %v1269_v32 = vpop.f32.mrf.mxu0  ;;  %v1473_v15 = vpop.f32.mrf.mxu1 }
 0x202   : > { %v1476_v22 = vpop.f32.mrf.mxu1  ;;  %v1641_v17 = vpop.f32.mrf.mxu0 }
 0x203   : > { %v7692_v63 = vadd.f32 %v1476_v22, %v1240_v28  ;;  %v1768_v53 = vadd.f32 %v1641_v17, %v7627_v20 }
 0x204   : > { %v1478_v27 = vpop.f32.mrf.mxu1  ;;  %v1643_v41 = vpop.f32.mrf.mxu0 }
 0x205   : > { %v1807_v28 = vadd.f32 %v7698_v12, %v1768_v53 }
 0x206   : > { %v1479_v33 = vpop.f32.mrf.mxu1  ;;  %v1644_v38 = vpop.f32.mrf.mxu0 }
 0x207   : > { %v7700_v37 = vadd.f32 %v1479_v33, %v1243_v36  ;;  %v1769_v23 = vadd.f32 %v1644_v38, %v7631_v49  ;;  %v7707_v36 = vshrl.u32 %v1971_v51, 7  ;;  %v1871_v59 = vmul.f32 0.2, %v1807_v28 }
 0x208   : > { %v1481_v18 = vpop.f32.mrf.mxu1  ;;  %v1646_v44 = vpop.f32.mrf.mxu0  ;;  %vm1839_vm3 = vcmp.gt.f32.partialorder %v1807_v28, 0.0 }
 0x209   : > { %v1808_v60 = vadd.f32 %v7698_v12, %v1769_v23  ;;  %v7715_v15 = vsub.s32 %v1970_v9, %v7707_v36  ;;  %v1903_v22 = vsel %vm1839_vm3, %v1807_v28, %v1871_v59 }
 0x20a   : > { %v1484_v48 = vpop.f32.mrf.mxu1  ;;  %v1649_v20 = vpop.f32.mrf.mxu0 }
 0x20b   : > { %v7704_v43 = vadd.f32 %v1484_v48, %v1248_v19  ;;  %v1770_v30 = vadd.f32 %v1649_v20, %v7634_v58  ;;  %v1872_v17 = vmul.f32 0.2, %v1808_v60  ;;  %vm1840_vm5 = vcmp.gt.f32.partialorder %v1808_v60, 0.0 }
 0x20c   : > { %v1486_v31 = vpop.f32.mrf.mxu1  ;;  %v1651_v47 = vpop.f32.mrf.mxu0 }
 0x20d   : > { %v1809_v50 = vadd.f32 %v7698_v12, %v1770_v30  ;;  %v1904_v28 = vsel %vm1840_vm5, %v1808_v60, %v1872_v17 }
 0x20e   : > { %v1487_v4 = vpop.f32.mrf.mxu1  ;;  %v1652_v55 = vpop.f32.mrf.mxu0 }
 0x20f   : > { %vm1841_vm4 = vcmp.gt.f32.partialorder %v1809_v50, 0.0  ;;  %v1873_v49 = vmul.f32 0.2, %v1809_v50  ;;  %v7711_v45 = vadd.f32 %v1487_v4, %v1251_v7  ;;  %v1771_v19 = vadd.f32 %v1652_v55, %v7638_v3 }
 0x210   : > { %v1489_v58 = vpop.f32.mrf.mxu1  ;;  %v1654_v32 = vpop.f32.mrf.mxu0 }
 0x211   : > { %v1905_v27 = vsel %vm1841_vm4, %v1809_v50, %v1873_v49  ;;  %v1810_v41 = vadd.f32 %v7698_v12, %v1771_v19 }
 0x212   : > { %v1935_v53 = vmax.f32 %v1903_v22, %v1905_v27  ;;  %v1492_v33 = vpop.f32.mrf.mxu1  ;;  %v1657_v38 = vpop.f32.mrf.mxu0 }
 0x213   : > { %vm1842_vm6 = vcmp.gt.f32.partialorder %v1810_v41, 0.0  ;;  %v1874_v18 = vmul.f32 0.2, %v1810_v41  ;;  %v7719_v7 = vadd.f32 %v1492_v33, %v7676_v2  ;;  %v1772_v3 = vadd.f32 %v1657_v38, %v7641_v21 }
 0x214   : > { %v1967_v44 = vcombine.high %v1935_v53, %v1935_v53  ;;  %v1494_v35 = vpop.f32.mrf.mxu1  ;;  %v1659_v6 = vpop.f32.mrf.mxu0  ;;  %v1974_v51 = vrot.slane %v1935_v53, %v7715_v15 }
 0x215   : > { %v1906_v23 = vsel %vm1842_vm6, %v1810_v41, %v1874_v18  ;;  %v1811_v59 = vadd.f32 %v7698_v12, %v1772_v3 }
 0x216   : > { %v1936_v48 = vmax.f32 %v1904_v28, %v1906_v23  ;;  %v1495_v20 = vpop.f32.mrf.mxu1  ;;  %v1660_v30 = vpop.f32.mrf.mxu0  ;;  %v6071_v31 = vrot.slane %v1974_v51, 9  ;;  %v1982_v47 = vcombine.high %v1974_v51, %v1974_v51  ;;  %v1981_v9 = vrot.slane %v1967_v44, %v7715_v15 }
 0x217   : > { %v7726_v2 = vadd.f32 %v1495_v20, %v7680_v52  ;;  %v1773_v19 = vadd.f32 %v1660_v30, %v7646_v25  ;;  %v1875_v41 = vmul.f32 0.2, %v1811_v59  ;;  %vm1843_vm7 = vcmp.gt.f32.partialorder %v1811_v59, 0.0 }
 0x218   : > { %v1984_v21 = vcombine.high %v1936_v48, %v1936_v48  ;;  %v1497_v50 = vpop.f32.mrf.mxu1  ;;  %v1662_v4 = vpop.f32.mrf.mxu0  ;;  %v7728_v55 = vmax.f32 %v1974_v51, %v6071_v31  ;;  %v6072_v49 = vrot.slane %v1982_v47, 9  ;;  %v6073_v60 = vrot.slane %v1981_v9, 9 }
 0x219   : > { %v1983_v58 = vcombine.high %v1981_v9, %v1981_v9  ;;  %v1991_v32 = vrot.slane %v1936_v48, %v7715_v15  ;;  %v1812_v6 = vadd.f32 %v7698_v12, %v1773_v19 }
 0x21a   : > { %v1500_v22 = vpop.f32.mrf.mxu1  ;;  %2623 = vrot.lane.b32.xlu0 %v7728_v55, %s9379_s23  ;;  %v1665_v17 = vpop.f32.mrf.mxu0  ;;  %v7734_v52 = vmax.f32 %v1982_v47, %v6072_v49  ;;  %v1998_v27 = vrot.slane %v1984_v21, %v7715_v15  ;;  %v7743_v18 = vmax.f32 %v1981_v9, %v6073_v60  ;;  %v1907_v47 = vsel %vm1843_vm7, %v1811_v59, %v1875_v41 }
 0x21b   : > { %v7738_v53 = vadd.f32 %v1500_v22, %v7684_v46  ;;  %v1774_v33 = vadd.f32 %v1665_v17, %v7648_v39  ;;  %v6074_v3 = vrot.slane %v1983_v58, 9  ;;  %v6075_v44 = vrot.slane %v1991_v32, 9 }
 0x21c   : > { %v1502_v25 = vpop.f32.mrf.mxu1  ;;  %2625 = vrot.lane.b32.xlu1 %v7734_v52, %s9379_s23  ;;  %v1667_v38 = vpop.f32.mrf.mxu0  ;;  %v1999_v35 = vcombine.high %v1991_v32, %v1991_v32  ;;  %v2000_v28 = vcombine.high %v1998_v27, %v1998_v27  ;;  %v6077_v4 = vrot.slane %v1998_v27, 9  ;;  %v1876_v49 = vmul.f32 0.2, %v1812_v6 }
 0x21d   : > { %v1813_v51 = vadd.f32 %v7698_v12, %v1774_v33  ;;  %v7749_v23 = vmax.f32 %v1983_v58, %v6074_v3  ;;  %v7757_v50 = vmax.f32 %v1991_v32, %v6075_v44  ;;  %vm1844_vm9 = vcmp.gt.f32.partialorder %v1812_v6, 0.0 }
 0x21e   : > { %v1503_v46 = vpop.f32.mrf.mxu1  ;;  %2627 = vrot.lane.b32.xlu0 %v7743_v18, %s9379_s23  ;;  %v1668_v39 = vpop.f32.mrf.mxu0  ;;  %v6076_v48 = vrot.slane %v1999_v35, 9  ;;  %v6078_v58 = vrot.slane %v2000_v28, 9  ;;  %v7767_v33 = vmax.f32 %v1998_v27, %v6077_v4  ;;  %v1908_v38 = vsel %vm1844_vm9, %v1812_v6, %v1876_v49 }
 0x21f   : > { %vm1845_vm8 = vcmp.gt.f32.partialorder %v1813_v51, 0.0  ;;  %v1877_v20 = vmul.f32 0.2, %v1813_v51  ;;  %v7752_v30 = vadd.f32 %v1503_v46, %v7688_v11  ;;  %v1775_v31 = vadd.f32 %v1668_v39, %v7650_v24 }
 0x220   : > { %v1505_v9 = vpop.f32.mrf.mxu1  ;;  %2629 = vrot.lane.b32.xlu1 %v7749_v23, %s9379_s23  ;;  %v1670_v21 = vpop.f32.mrf.mxu0  ;;  %v7762_v11 = vmax.f32 %v1999_v35, %v6076_v48  ;;  %v7770_v44 = vmax.f32 %v2000_v28, %v6078_v58 }
 0x221   : > { %v1909_v60 = vsel %vm1845_vm8, %v1813_v51, %v1877_v20  ;;  %v1814_v19 = vadd.f32 %v7698_v12, %v1775_v31 }
 0x222   : > { %v1937_v22 = vmax.f32 %v1907_v47, %v1909_v60  ;;  %2631 = vrot.lane.b32.xlu0 %v7757_v50, %s9379_s23  ;;  %v1673_v24 = vpop.f32.mrf.mxu0 }
 0x223   : > { %vm1846_vm10 = vcmp.gt.f32.partialorder %v1814_v19, 0.0  ;;  %v1878_v59 = vmul.f32 0.2, %v1814_v19  ;;  %v1776_v17 = vadd.f32 %v1673_v24, %v7652_v5 }
 0x224   : > { %v2001_v32 = vcombine.high %v1937_v22, %v1937_v22  ;;  %2633 = vrot.lane.b32.xlu1 %v7762_v11, %s9379_s23  ;;  %v1675_v41 = vpop.f32.mrf.mxu0  ;;  %v2008_v25 = vrot.slane %v1937_v22, %v7715_v15 }
 0x225   : > { %v1910_v3 = vsel %vm1846_vm10, %v1814_v19, %v1878_v59  ;;  %v1815_v48 = vadd.f32 %v7698_v12, %v1776_v17 }
 0x226   : > { %v1938_v51 = vmax.f32 %v1908_v38, %v1910_v3  ;;  %2635 = vrot.lane.b32.xlu0 %v7767_v33, %s9379_s23  ;;  %v1676_v35 = vpop.f32.mrf.mxu0  ;;  %v6079_v46 = vrot.slane %v2008_v25, 9  ;;  %v2016_v5 = vcombine.high %v2008_v25, %v2008_v25  ;;  %v2015_v39 = vrot.slane %v2001_v32, %v7715_v15 }
 0x227   : > { %v1777_v27 = vadd.f32 %v1676_v35, %v7654_v54  ;;  %vm1847_vm11 = vcmp.gt.f32.partialorder %v1815_v48, 0.0  ;;  %v1879_v22 = vmul.f32 0.2, %v1815_v48 }
 0x228   : > { %v2018_v20 = vcombine.high %v1938_v51, %v1938_v51  ;;  %v2025_v31 = vrot.slane %v1938_v51, %v7715_v15  ;;  %2637 = vrot.lane.b32.xlu1 %v7770_v44, %s9379_s23  ;;  %v1678_v6 = vpop.f32.mrf.mxu0  ;;  %v7780_v28 = vmax.f32 %v2008_v25, %v6079_v46  ;;  %v6080_v47 = vrot.slane %v2016_v5, 9 }
 0x229   : > { %v2017_v9 = vcombine.high %v2015_v39, %v2015_v39  ;;  %v6081_v49 = vrot.slane %v2015_v39, 9  ;;  %v1816_v24 = vadd.f32 %v7698_v12, %v1777_v27  ;;  %v1911_v46 = vsel %vm1847_vm11, %v1815_v48, %v1879_v22 }
 0x22a   : > { %2639 = vrot.lane.b32.xlu0 %v7780_v28, %s9379_s23  ;;  %v1681_v21 = vpop.f32.mrf.mxu0  ;;  %v7784_v4 = vmax.f32 %v2016_v5, %v6080_v47  ;;  %v2033_v60 = vcombine.high %v2025_v31, %v2025_v31  ;;  %v2032_v54 = vrot.slane %v2018_v20, %v7715_v15  ;;  %v6083_v51 = vrot.slane %v2025_v31, 9 }
 0x22b   : > { %v1778_v19 = vadd.f32 %v1681_v21, %v7656_v34  ;;  %v6082_v58 = vrot.slane %v2017_v9, 9  ;;  %v7794_v3 = vmax.f32 %v2015_v39, %v6081_v49  ;;  %v1880_v5 = vmul.f32 0.2, %v1816_v24 }
 0x22c   : > { %2641 = vrot.lane.b32.xlu1 %v7784_v4, %s9379_s23  ;;  %v1683_v59 = vpop.f32.mrf.mxu0  ;;  %v6084_v41 = vrot.slane %v2033_v60, 9  ;;  %v2034_v25 = vcombine.high %v2032_v54, %v2032_v54  ;;  %v6085_v20 = vrot.slane %v2032_v54, 9  ;;  %vm1848_vm13 = vcmp.gt.f32.partialorder %v1816_v24, 0.0 }
 0x22d   : > { %v1817_v17 = vadd.f32 %v7698_v12, %v1778_v19  ;;  %v7792_v32 = vmax.f32 %v2017_v9, %v6082_v58  ;;  %v7805_v19 = vmax.f32 %v2025_v31, %v6083_v51  ;;  %v1912_v59 = vsel %vm1848_vm13, %v1816_v24, %v1880_v5 }
 0x22e   : > { %v1684_v38 = vpop.f32.mrf.mxu0  ;;  %v7803_v47 = vmax.f32 %v2033_v60, %v6084_v41  ;;  %v6086_v9 = vrot.slane %v2034_v25, 9  ;;  %v7815_v31 = vmax.f32 %v2032_v54, %v6085_v20 }
 0x22f   : > { %vm1849_vm12 = vcmp.gt.f32.partialorder %v1817_v17, 0.0  ;;  %v1881_v34 = vmul.f32 0.2, %v1817_v17  ;;  %2645 = vrot.lane.b32.xlu0 %v7792_v32, %s9379_s23  ;;  %v1779_v35 = vadd.f32 %v1684_v38, %v7658_v56 }
 0x230   : > { %2643 = vrot.lane.b32.xlu1 %v7794_v3, %s9379_s23  ;;  %v1686_v27 = vpop.f32.mrf.mxu0  ;;  %v7813_v41 = vmax.f32 %v2034_v25, %v6086_v9 }
 0x231   : > { %v1913_v6 = vsel %vm1849_vm12, %v1817_v17, %v1881_v34  ;;  %v1818_v39 = vadd.f32 %v7698_v12, %v1779_v35 }
 0x232   : > { %v1939_v21 = vmax.f32 %v1911_v46, %v1913_v6  ;;  %v1689_v49 = vpop.f32.mrf.mxu0 }
 0x233   : > { %vm1850_vm14 = vcmp.gt.f32.partialorder %v1818_v39, 0.0  ;;  %v1882_v56 = vmul.f32 0.2, %v1818_v39  ;;  %2649 = vrot.lane.b32.xlu0 %v7803_v47, %s9379_s23  ;;  %v1780_v48 = vadd.f32 %v1689_v49, %v7660_v61 }
 0x234   : > { %v2035_v58 = vcombine.high %v1939_v21, %v1939_v21  ;;  %2647 = vrot.lane.b32.xlu1 %v7805_v19, %s9379_s23  ;;  %v1691_v22 = vpop.f32.mrf.mxu0  ;;  %v2042_v60 = vrot.slane %v1939_v21, %v7715_v15 }
 0x235   : > { %v1914_v17 = vsel %vm1850_vm14, %v1818_v39, %v1882_v56  ;;  %v1819_v61 = vadd.f32 %v7698_v12, %v1780_v48 }
 0x236   : > { %v1940_v38 = vmax.f32 %v1912_v59, %v1914_v17  ;;  %v1692_v51 = vpop.f32.mrf.mxu0  ;;  %v6087_v34 = vrot.slane %v2042_v60, 9  ;;  %v2050_v35 = vcombine.high %v2042_v60, %v2042_v60  ;;  %v2049_v46 = vrot.slane %v2035_v58, %v7715_v15 }
 0x237   : > { %2653 = vrot.lane.b32.xlu0 %v7813_v41, %s9379_s23  ;;  %v1781_v6 = vadd.f32 %v1692_v51, %v7662_v10  ;;  %vm1851_vm15 = vcmp.gt.f32.partialorder %v1819_v61, 0.0  ;;  %v1883_v48 = vmul.f32 0.2, %v1819_v61 }
 0x238   : > { %v2052_v27 = vcombine.high %v1940_v38, %v1940_v38  ;;  %2651 = vrot.lane.b32.xlu1 %v7815_v31, %s9379_s23  ;;  %v1694_v24 = vpop.f32.mrf.mxu0  ;;  %v7824_v54 = vmax.f32 %v2042_v60, %v6087_v34  ;;  %v6088_v25 = vrot.slane %v2050_v35, 9  ;;  %v6089_v5 = vrot.slane %v2049_v46, 9 }
 0x239   : > { %v2051_v20 = vcombine.high %v2049_v46, %v2049_v46  ;;  %v2059_v39 = vrot.slane %v1940_v38, %v7715_v15  ;;  %v1820_v58 = vadd.f32 %v7698_v12, %v1781_v6  ;;  %v1915_v24 = vsel %vm1851_vm15, %v1819_v61, %v1883_v48 }
 0x23a   : > { %v1697_v9 = vpop.f32.mrf.mxu0  ;;  %v7827_v21 = vmax.f32 %v2050_v35, %v6088_v25  ;;  %v2066_v49 = vrot.slane %v2052_v27, %v7715_v15  ;;  %v7837_v17 = vmax.f32 %v2049_v46, %v6089_v5 }
 0x23b   : > { %2655 = vrot.lane.b32.xlu0 %v7824_v54, %s9379_s23  ;;  %v1782_v10 = vadd.f32 %v1697_v9, %v7664_v14  ;;  %v6090_v56 = vrot.slane %v2051_v20, 9  ;;  %v2067_v60 = vcombine.high %v2059_v39, %v2059_v39  ;;  %v6091_v38 = vrot.slane %v2059_v39, 9 }
 0x23c   : > { %2657 = vrot.lane.b32.xlu1 %v7827_v21, %s9379_s23  ;;  %v1699_v22 = vpop.f32.mrf.mxu0  ;;  %v2068_v51 = vcombine.high %v2066_v49, %v2066_v49  ;;  %v1884_v25 = vmul.f32 0.2, %v1820_v58  ;;  %v6093_v5 = vrot.slane %v2066_v49, 9  ;;  %vm1852_vm4 = vcmp.gt.f32.partialorder %v1820_v58, 0.0 }
 0x23d   : > { %v1821_v59 = vadd.f32 %v7698_v12, %v1782_v10  ;;  %v7839_v35 = vmax.f32 %v2051_v20, %v6090_v56  ;;  %v6092_v14 = vrot.slane %v2067_v60, 9  ;;  %v7848_v10 = vmax.f32 %v2059_v39, %v6091_v38 }
 0x23e   : > { %v1700_v34 = vpop.f32.mrf.mxu0  ;;  %v6094_v56 = vrot.slane %v2068_v51, 9  ;;  %v1916_v38 = vsel %vm1852_vm4, %v1820_v58, %v1884_v25 }
 0x23f   : > { %vm1853_vm3 = vcmp.gt.f32.partialorder %v1821_v59, 0.0  ;;  %v1885_v27 = vmul.f32 0.2, %v1821_v59  ;;  %2659 = vrot.lane.b32.xlu0 %v7837_v17, %s9379_s23  ;;  %v1783_v6 = vadd.f32 %v1700_v34, %v7666_v26  ;;  %v7850_v1 = vmax.f32 %v2067_v60, %v6092_v14 }
 0x240   : > { %2661 = vrot.lane.b32.xlu1 %v7839_v35, %s9379_s23  ;;  %v1702_v46 = vpop.f32.mrf.mxu0  ;;  %v7860_v60 = vmax.f32 %v2068_v51, %v6094_v56 }
 0x241   : > { %v1917_v9 = vsel %vm1853_vm3, %v1821_v59, %v1885_v27  ;;  %v1822_v20 = vadd.f32 %v7698_v12, %v1783_v6  ;;  %v7858_v27 = vmax.f32 %v2066_v49, %v6093_v5 }
 0x242   : > { %v1941_v22 = vmax.f32 %v1915_v24, %v1917_v9  ;;  %v1705_v0 = vpop.f32.mrf.mxu0 }
 0x243   : > { %vm1854_vm5 = vcmp.gt.f32.partialorder %v1822_v20, 0.0  ;;  %v1886_v26 = vmul.f32 0.2, %v1822_v20  ;;  %2663 = vrot.lane.b32.xlu0 %v7848_v10, %s9379_s23  ;;  %v1784_v48 = vadd.f32 %v1705_v0, %v7668_v29 }
 0x244   : > { %v2069_v61 = vcombine.high %v1941_v22, %v1941_v22  ;;  %2665 = vrot.lane.b32.xlu1 %v7850_v1, %s9379_s23  ;;  %v1707_v59 = vpop.f32.mrf.mxu0  ;;  %v2076_v39 = vrot.slane %v1941_v22, %v7715_v15 }
 0x245   : > { %v1918_v34 = vsel %vm1854_vm5, %v1822_v20, %v1886_v26  ;;  %v1823_v0 = vadd.f32 %v7698_v12, %v1784_v48 }
 0x246   : > { %v1942_v14 = vmax.f32 %v1916_v38, %v1918_v34  ;;  %v1708_v6 = vpop.f32.mrf.mxu0  ;;  %v6095_v24 = vrot.slane %v2076_v39, 9  ;;  %v2084_v46 = vcombine.high %v2076_v39, %v2076_v39  ;;  %v2083_v9 = vrot.slane %v2069_v61, %v7715_v15 }
 0x247   : > { %2667 = vrot.lane.b32.xlu0 %v7858_v27, %s9379_s23  ;;  %v1785_v29 = vadd.f32 %v1708_v6, %v7670_v42  ;;  %v1887_v26 = vmul.f32 0.2, %v1823_v0  ;;  %vm1855_vm6 = vcmp.gt.f32.partialorder %v1823_v0, 0.0 }
 0x248   : > { %2669 = vrot.lane.b32.xlu1 %v7860_v60, %s9379_s23  ;;  %v1710_v49 = vpop.f32.mrf.mxu0  ;;  %v7869_v58 = vmax.f32 %v2076_v39, %v6095_v24  ;;  %v6096_v51 = vrot.slane %v2084_v46, 9  ;;  %v6097_v25 = vrot.slane %v2083_v9, 9  ;;  %v2085_v5 = vcombine.high %v2083_v9, %v2083_v9 }
 0x249   : > { %v1824_v42 = vadd.f32 %v7698_v12, %v1785_v29  ;;  %v2093_v48 = vrot.slane %v1942_v14, %v7715_v15  ;;  %v2086_v24 = vcombine.high %v1942_v14, %v1942_v14 }
 0x24a   : > { %9396 = vst [vmem:[#allocation10_spill] sm:$0xff] %v7869_v58  ;;  %v1713_v20 = vpop.f32.mrf.mxu0  ;;  %v7871_v56 = vmax.f32 %v2084_v46, %v6096_v51  ;;  %v7881_v39 = vmax.f32 %v2083_v9, %v6097_v25  ;;  %v6098_v38 = vrot.slane %v2085_v5, 9  ;;  %v1919_v46 = vsel %vm1855_vm6, %v1823_v0, %v1887_v26 }
 0x24b   : > { %2671 = vrot.lane.b32.xlu0 %v7869_v58, %s9379_s23  ;;  %v1786_v22 = vadd.f32 %v1713_v20, %v7672_v40  ;;  %v1888_v29 = vmul.f32 0.2, %v1824_v42  ;;  %v6099_v51 = vrot.slane %v2093_v48, 9  ;;  %v2101_v9 = vcombine.high %v2093_v48, %v2093_v48 }
 0x24c   : > { %9397 = vst [vmem:[#allocation11_spill] sm:$0xff] %v7871_v56  ;;  %2673 = vrot.lane.b32.xlu1 %v7871_v56, %s9379_s23  ;;  %v1715_v61 = vpop.f32.mrf.mxu0  ;;  %vm1856_vm8 = vcmp.gt.f32.partialorder %v1824_v42, 0.0 }
 0x24d   : > { %v1825_v59 = vadd.f32 %v7698_v12, %v1786_v22  ;;  %v7887_v22 = vmax.f32 %v2085_v5, %v6098_v38  ;;  %v1920_v5 = vsel %vm1856_vm8, %v1824_v42, %v1888_v29 }
 0x24e   : > { %v1716_v34 = vpop.f32.mrf.mxu0 }
 0x24f   : > { %vm1857_vm7 = vcmp.gt.f32.partialorder %v1825_v59, 0.0  ;;  %v1889_v6 = vmul.f32 0.2, %v1825_v59  ;;  %2675 = vrot.lane.b32.xlu0 %v7881_v39, %s9379_s23  ;;  %v1787_v40 = vadd.f32 %v1716_v34, %v7674_v8  ;;  %9398 = vst [vmem:[#allocation12_spill] sm:$0xff] %v7887_v22  ;;  %v7896_v34 = vmax.f32 %v2093_v48, %v6099_v51 }
 0x250   : > { %v1718_v49 = vpop.f32.mrf.mxu0 }
 0x251   : > { %v1921_v20 = vsel %vm1857_vm7, %v1825_v59, %v1889_v6  ;;  %v1826_v61 = vadd.f32 %v7698_v12, %v1787_v40  ;;  %v2100_v59 = vrot.slane %v2086_v24, %v7715_v15  ;;  %9399 = vst [vmem:[#allocation13_spill] sm:$0xff] %v7896_v34  ;;  %v6100_v6 = vrot.slane %v2101_v9, 9 }
 0x252   : > { %v1943_v25 = vmax.f32 %v1919_v46, %v1921_v20  ;;  %v1721_v58 = vpop.f32.mrf.mxu0 }
 0x253   : > { %vm1858_vm9 = vcmp.gt.f32.partialorder %v1826_v61, 0.0  ;;  %v1890_v56 = vmul.f32 0.2, %v1826_v61  ;;  %2677 = vrot.lane.b32.xlu0 %v7887_v22, %s9379_s23  ;;  %v1788_v0 = vadd.f32 %v1721_v58, %v7678_v57  ;;  %v6101_v24 = vrot.slane %v2100_v59, 9 }
 0x254   : > { %v2103_v8 = vcombine.high %v1943_v25, %v1943_v25  ;;  %v7892_v14 = vrot.slane %v1943_v25, %v7715_v15  ;;  %v1723_v26 = vpop.f32.mrf.mxu0  ;;  %v2102_v42 = vcombine.high %v2100_v59, %v2100_v59  ;;  %v7905_v48 = vmax.f32 %v2101_v9, %v6100_v6 }
 0x255   : > { %v1922_v38 = vsel %vm1858_vm9, %v1826_v61, %v1890_v56  ;;  %v1827_v57 = vadd.f32 %v7698_v12, %v1788_v0  ;;  %vm3199_vm9 = vcmask 1041409  }
 0x256   : > { %v1944_v40 = vmax.f32 %v1920_v5, %v1922_v38  ;;  %v1724_v46 = vpop.f32.mrf.mxu0  ;;  %v2118_v49 = vcombine.high %v7892_v14, %v7892_v14  ;;  %v2117_v20 = vrot.slane %v2103_v8, %v7715_v15  ;;  %9400 = vst [vmem:[#allocation14_spill] sm:$0xff] %v7905_v48  ;;  %v7914_v38 = vmax.f32 %v2100_v59, %v6101_v24 }
 0x257   : > { %2679 = vrot.lane.b32.xlu0 %v7896_v34, %s9379_s23  ;;  %v1789_v56 = vadd.f32 %v1724_v46, %v7682_v16  ;;  %v1891_v5 = vmul.f32 0.2, %v1827_v57  ;;  %v6102_v16 = vrot.slane %v2102_v42, 9  ;;  %vm1859_vm10 = vcmp.gt.f32.partialorder %v1827_v57, 0.0 }
 0x258   : > { %v1726_v58 = vpop.f32.mrf.mxu0  ;;  %v6104_v25 = vrot.slane %v2118_v49, 9  ;;  %v6105_v61 = vrot.slane %v2117_v20, 9  ;;  %v2119_v26 = vcombine.high %v2117_v20, %v2117_v20  ;;  %9402 = vst [vmem:[#allocation16_spill] sm:$0xff] %v7914_v38  ;;  %v2127_v46 = vrot.slane %v1944_v40, %v7715_v15 }
 0x259   : > { %v1828_v9 = vadd.f32 %v7698_v12, %v1789_v56  ;;  %v2120_v24 = vcombine.high %v1944_v40, %v1944_v40 }
 0x25a   : > { %v1729_v29 = vpop.f32.mrf.mxu0  ;;  %v7907_v51 = vmax.f32 %v2118_v49, %v6104_v25  ;;  %v7919_v58 = vmax.f32 %v2117_v20, %v6105_v61  ;;  %v6106_v25 = vrot.slane %v2119_v26, 9 }
 0x25b   : > { %2681 = vrot.lane.b32.xlu0 %v7905_v48, %s9379_s23  ;;  %v1790_v8 = vadd.f32 %v1729_v29, %v7686_v62  ;;  %v1923_v29 = vsel %vm1859_vm10, %v1827_v57, %v1891_v5  ;;  %v1892_v20 = vmul.f32 0.2, %v1828_v9  ;;  %v6107_v48 = vrot.slane %v2127_v46, 9 }
 0x25c   : > { %9401 = vst [vmem:[#allocation15_spill] sm:$0xff] %v7907_v51  ;;  %2689 = vrot.lane.b32.xlu1 %v7907_v51, %s9379_s23  ;;  %v1731_v0 = vpop.f32.mrf.mxu0  ;;  %vm1860_vm12 = vcmp.gt.f32.partialorder %v1828_v9, 0.0  ;;  %v7930_v22 = vmax.f32 %v2119_v26, %v6106_v25  ;;  %vm3201_vm10 = vcmask 1042434  }
 0x25d   : > { %v1829_v6 = vadd.f32 %v7698_v12, %v1790_v8  ;;  %v7926_v8 = vmax.f32 %v2102_v42, %v6102_v16  ;;  %v6103_v0 = vrot.slane %v7892_v14, 9  ;;  %v1924_v26 = vsel %vm1860_vm12, %v1828_v9, %v1892_v20 }
 0x25e   : > { %v1732_v49 = vpop.f32.mrf.mxu0  ;;  %v7941_v25 = vmax.f32 %v2127_v46, %v6107_v48  ;;  %vm3205_vm12 = vcmask 1044484  }
 0x25f   : > { %vm1861_vm11 = vcmp.gt.f32.partialorder %v1829_v6, 0.0  ;;  %v1893_v62 = vmul.f32 0.2, %v1829_v6  ;;  %2683 = vrot.lane.b32.xlu0 %v7914_v38, %s9379_s23  ;;  %v1791_v59 = vadd.f32 %v1732_v49, %v7690_v13  ;;  %v2135_v13 = vcombine.high %v2127_v46, %v2127_v46 }
 0x260   : > { %2691 = vrot.lane.b32.xlu1 %v7919_v58, %s9379_s23  ;;  %v1734_v56 = vpop.f32.mrf.mxu0  ;;  %v7938_v16 = vmax.f32 %v7892_v14, %v6103_v0  ;;  %9403 = vst [vmem:[#allocation17_spill] sm:$0xff] %v7941_v25 }
 0x261   : > { %v1925_v61 = vsel %vm1861_vm11, %v1829_v6, %v1893_v62  ;;  %v1830_v51 = vadd.f32 %v7698_v12, %v1791_v59  ;;  %v2134_v62 = vrot.slane %v2120_v24, %v7715_v15  ;;  %vm3203_vm11 = vcmask 1043459  }
 0x262   : > { %v1945_v34 = vmax.f32 %v1923_v29, %v1925_v61  ;;  %v1737_v38 = vpop.f32.mrf.mxu0  ;;  %v6108_v61 = vrot.slane %v2135_v13, 9 }
 0x263   : > { %vm1862_vm13 = vcmp.gt.f32.partialorder %v1830_v51, 0.0  ;;  %v1894_v40 = vmul.f32 0.2, %v1830_v51  ;;  %2685 = vrot.lane.b32.xlu0 %v7926_v8, %s9379_s23  ;;  %v1792_v42 = vadd.f32 %v1737_v38, %v7692_v63  ;;  %v6109_v0 = vrot.slane %v2134_v62, 9 }
 0x264   : > { %v2137_v57 = vcombine.high %v1945_v34, %v1945_v34  ;;  %2693 = vrot.lane.b32.xlu1 %v7930_v22, %s9379_s23  ;;  %v1739_v5 = vpop.f32.mrf.mxu0  ;;  %v2144_v6 = vrot.slane %v1945_v34, %v7715_v15  ;;  %v7953_v24 = vmax.f32 %v2135_v13, %v6108_v61  ;;  %v2136_v20 = vcombine.high %v2134_v62, %v2134_v62 }
 0x265   : > { %v1926_v49 = vsel %vm1862_vm13, %v1830_v51, %v1894_v40  ;;  %v1831_v14 = vadd.f32 %v7698_v12, %v1792_v42  ;;  %vm3207_vm13 = vcmask 1045509  }
 0x266   : > { %v1946_v59 = vmax.f32 %v1924_v26, %v1926_v49  ;;  %v1740_v29 = vpop.f32.mrf.mxu0  ;;  %v6111_v56 = vrot.slane %v2144_v6, 9  ;;  %v2151_v63 = vrot.slane %v2137_v57, %v7715_v15  ;;  %9405 = vst [vmem:[#allocation19_spill] sm:$0xff] %v7953_v24  ;;  %v6110_v61 = vrot.slane %v2136_v20, 9 }
 0x267   : > { %2687 = vrot.lane.b32.xlu0 %v7938_v16, %s9379_s23  ;;  %v1793_v38 = vadd.f32 %v1740_v29, %v7700_v37  ;;  %v1895_v57 = vmul.f32 0.2, %v1831_v14  ;;  %vm1863_vm14 = vcmp.gt.f32.partialorder %v1831_v14, 0.0 }
 0x268   : > { %2695 = vrot.lane.b32.xlu1 %v7941_v25, %s9379_s23  ;;  %v1742_v34 = vpop.f32.mrf.mxu0  ;;  %v7951_v48 = vmax.f32 %v2144_v6, %v6111_v56  ;;  %v6113_v51 = vrot.slane %v2151_v63, 9  ;;  %v2153_v9 = vcombine.high %v2151_v63, %v2151_v63  ;;  %v2161_v5 = vrot.slane %v1946_v59, %v7715_v15 }
 0x269   : > { %v1832_v37 = vadd.f32 %v7698_v12, %v1793_v38  ;;  %v7965_v56 = vmax.f32 %v2134_v62, %v6109_v0 }
 0x26a   : > { %9404 = vst [vmem:[#allocation18_spill] sm:$0xff] %v7951_v48  ;;  %v1745_v46 = vpop.f32.mrf.mxu0  ;;  %v7963_v26 = vmax.f32 %v2151_v63, %v6113_v51  ;;  %v6114_v49 = vrot.slane %v2153_v9, 9  ;;  %v6115_v51 = vrot.slane %v2161_v5, 9 }
 0x26b   : > { %2703 = vrot.lane.b32.xlu0 %v7951_v48, %s9379_s23  ;;  %v1794_v40 = vadd.f32 %v1745_v46, %v7704_v43  ;;  %v2152_v43 = vcombine.high %v2144_v6, %v2144_v6  ;;  %v2154_v46 = vcombine.high %v1946_v59, %v1946_v59  ;;  %v1896_v48 = vmul.f32 0.2, %v1832_v37 }
 0x26c   : > { %2697 = vrot.lane.b32.xlu1 %v7953_v24, %s9379_s23  ;;  %v1747_v42 = vpop.f32.mrf.mxu0  ;;  %9406 = vst [vmem:[#allocation20_spill] sm:$0xff] %v7963_v26  ;;  %v7973_v0 = vmax.f32 %v2153_v9, %v6114_v49  ;;  %v2169_v6 = vcombine.high %v2161_v5, %v2161_v5  ;;  %vm1864_vm3 = vcmp.gt.f32.partialorder %v1832_v37, 0.0 }
 0x26d   : > { %v1833_v13 = vadd.f32 %v7698_v12, %v1794_v40  ;;  %v1927_v42 = vsel %vm1863_vm14, %v1831_v14, %v1895_v57  ;;  %v2168_v49 = vrot.slane %v2154_v46, %v7715_v15  ;;  %vm3209_vm14 = vcmask 1046534  }
 0x26e   : > { %v1748_v29 = vpop.f32.mrf.mxu0 }
 0x26f   : > { %vm1865_vm15 = vcmp.gt.f32.partialorder %v1833_v13, 0.0  ;;  %v1897_v34 = vmul.f32 0.2, %v1833_v13  ;;  %2707 = vrot.lane.b32.xlu0 %v7963_v26, %s9379_s23  ;;  %v1795_v38 = vadd.f32 %v1748_v29, %v7711_v45  ;;  %v7975_v26 = vmax.f32 %v2136_v20, %v6110_v61 }
 0x270   : > { %2699 = vrot.lane.b32.xlu1 %v7965_v56, %s9379_s23  ;;  %v1750_v63 = vpop.f32.mrf.mxu0  ;;  %v6112_v45 = vrot.slane %v2152_v43, 9  ;;  %v1928_v20 = vsel %vm1864_vm3, %v1832_v37, %v1896_v48  ;;  %v7986_v61 = vmax.f32 %v2161_v5, %v6115_v51  ;;  %v6117_v5 = vrot.slane %v2168_v49, 9 }
 0x271   : > { %v1929_v40 = vsel %vm1865_vm15, %v1833_v13, %v1897_v34  ;;  %v1834_v62 = vadd.f32 %v7698_v12, %v1795_v38  ;;  %v6116_v34 = vrot.slane %v2169_v6, 9  ;;  %v2170_v46 = vcombine.high %v2168_v49, %v2168_v49 }
 0x272   : > { %v1947_v24 = vmax.f32 %v1927_v42, %v1929_v40  ;;  %v1753_v25 = vpop.f32.mrf.mxu0  ;;  %v7988_v63 = vmax.f32 %v2152_v43, %v6112_v45  ;;  %vm3211_vm15 = vcmask 1047559   ;;  %vm3438_vm3 = vcmask 64512  }
 0x273   : > { %vm1866_vm4 = vcmp.gt.f32.partialorder %v1834_v62, 0.0  ;;  %v1898_v59 = vmul.f32 0.2, %v1834_v62  ;;  %2709 = vrot.lane.b32.xlu0 %v7973_v0, %s9379_s23  ;;  %v1796_v13 = vadd.f32 %v1753_v25, %v7719_v7  ;;  %v7999_v51 = vmax.f32 %v2169_v6, %v6116_v34 }
 0x274   : > { %v2171_v14 = vcombine.high %v1947_v24, %v1947_v24  ;;  %v7980_v57 = vrot.slane %v1947_v24, %v7715_v15  ;;  %2701 = vrot.lane.b32.xlu1 %v7975_v26, %s9379_s23  ;;  %v1755_v9 = vpop.f32.mrf.mxu0 }
 0x275   : > { %v1930_v29 = vsel %vm1866_vm4, %v1834_v62, %v1898_v59  ;;  %v1835_v25 = vadd.f32 %v7698_v12, %v1796_v13  ;;  %9407 = vst [vmem:[#allocation21_spill] sm:$0xff] %v7999_v51  ;;  %vm3447_vm4 = vcmask 130048  }
 0x276   : > { %v1948_v38 = vmax.f32 %v1928_v20, %v1930_v29  ;;  %v1756_v42 = vpop.f32.mrf.mxu0  ;;  %v2186_v24 = vcombine.high %v7980_v57, %v7980_v57  ;;  %v2185_v7 = vrot.slane %v2171_v14, %v7715_v15  ;;  %v8008_v20 = vmax.f32 %v2168_v49, %v6117_v5 }
 0x277   : > { %2711 = vrot.lane.b32.xlu0 %v7986_v61, %s9379_s23  ;;  %v1797_v43 = vadd.f32 %v1756_v42, %v7726_v2  ;;  %v1899_v13 = vmul.f32 0.2, %v1835_v25  ;;  %v6118_v2 = vrot.slane %v2170_v46, 9  ;;  %vm1867_vm5 = vcmp.gt.f32.partialorder %v1835_v25, 0.0 }
 0x278   : > { %2705 = vrot.lane.b32.xlu1 %v7988_v63, %s9379_s23  ;;  %v1758_v48 = vpop.f32.mrf.mxu0  ;;  %v6120_v37 = vrot.slane %v2186_v24, 9  ;;  %v6121_v45 = vrot.slane %v2185_v7, 9  ;;  %v2187_v59 = vcombine.high %v2185_v7, %v2185_v7  ;;  %9409 = vst [vmem:[#allocation23_spill] sm:$0xff] %v8008_v20  ;;  %v2195_v34 = vrot.slane %v1948_v38, %v7715_v15 }
 0x279   : > { %v1836_v6 = vadd.f32 %v7698_v12, %v1797_v43  ;;  %v1931_v5 = vsel %vm1867_vm5, %v1835_v25, %v1899_v13  ;;  %v8020_v43 = vmax.f32 %v2170_v46, %v6118_v2  ;;  %vm3456_vm5 = vcmask 195584  }
 0x27a   : > { %v1761_v40 = vpop.f32.mrf.mxu0  ;;  %v8001_v62 = vmax.f32 %v2186_v24, %v6120_v37  ;;  %v8013_v24 = vmax.f32 %v2185_v7, %v6121_v45  ;;  %v6122_v48 = vrot.slane %v2187_v59, 9  ;;  %v2188_v37 = vcombine.high %v1948_v38, %v1948_v38 }
 0x27b   : > { %2713 = vrot.lane.b32.xlu0 %v7999_v51, %s9379_s23  ;;  %v1798_v14 = vadd.f32 %v1761_v40, %v7738_v53  ;;  %v6119_v40 = vrot.slane %v7980_v57, 9  ;;  %v1900_v7 = vmul.f32 0.2, %v1836_v6  ;;  %vm1868_vm7 = vcmp.gt.f32.partialorder %v1836_v6, 0.0 }
 0x27c   : > { %9408 = vst [vmem:[#allocation22_spill] sm:$0xff] %v8001_v62  ;;  %2721 = vrot.lane.b32.xlu1 %v8001_v62, %s9379_s23  ;;  %v1763_v9 = vpop.f32.mrf.mxu0  ;;  %v6123_v62 = vrot.slane %v2195_v34, 9 }
 0x27d   : > { %v1837_v29 = vadd.f32 %v7698_v12, %v1798_v14  ;;  %v8031_v46 = vmax.f32 %v7980_v57, %v6119_v40  ;;  %v1932_v13 = vsel %vm1868_vm7, %v1836_v6, %v1900_v7  ;;  %v8052_v7 = vsub.s32 0, %v7707_v36 }
 0x27e   : > { %v1764_v42 = vpop.f32.mrf.mxu0  ;;  %vm3474_vm7 = vcmask 326656  }
 0x27f   : > { %vm1869_vm6 = vcmp.gt.f32.partialorder %v1837_v29, 0.0  ;;  %v1901_v53 = vmul.f32 0.2, %v1837_v29  ;;  %2715 = vrot.lane.b32.xlu0 %v8008_v20, %s9379_s23  ;;  %v1799_v49 = vadd.f32 %v1764_v42, %v7752_v30  ;;  %v8024_v20 = vmax.f32 %v2187_v59, %v6122_v48 }
 0x280   : > { %2723 = vrot.lane.b32.xlu1 %v8013_v24, %s9379_s23  ;;  %v1766_v14 = vpop.f32.mrf.mxu0  ;;  %v2203_v30 = vcombine.high %v2195_v34, %v2195_v34  ;;  %v2202_v59 = vrot.slane %v2188_v37, %v7715_v15 }
 0x281   : > { %v1933_v45 = vsel %vm1869_vm6, %v1837_v29, %v1901_v53  ;;  %v1838_v9 = vadd.f32 %v7698_v12, %v1799_v49  ;;  %v8034_v29 = vmax.f32 %v2195_v34, %v6123_v62  ;;  %vm3465_vm6 = vcmask 261120  }
 0x282   : > { %v1949_v51 = vmax.f32 %v1931_v5, %v1933_v45  ;;  %v6124_v53 = vrot.slane %v2203_v30, 9  ;;  %v6125_v37 = vrot.slane %v2202_v59, 9  ;;  %v2204_v5 = vcombine.high %v2202_v59, %v2202_v59 }
 0x283   : > { %vm1870_vm8 = vcmp.gt.f32.partialorder %v1838_v9, 0.0  ;;  %v1902_v38 = vmul.f32 0.2, %v1838_v9  ;;  %2717 = vrot.lane.b32.xlu0 %v8020_v43, %s9379_s23 }
 0x284   : > { %v2205_v25 = vcombine.high %v1949_v51, %v1949_v51  ;;  %2725 = vrot.lane.b32.xlu1 %v8024_v20, %s9379_s23  ;;  %v2212_v12 = vrot.slane %v1949_v51, %v7715_v15  ;;  %v8045_v34 = vmax.f32 %v2203_v30, %v6124_v53 }
 0x285   : > { %v1934_v2 = vsel %vm1870_vm8, %v1838_v9, %v1902_v38  ;;  %vm3483_vm8 = vcmask 392192  }
 0x286   : > { %v1950_v42 = vmax.f32 %v1932_v13, %v1934_v2  ;;  %v6127_v48 = vrot.slane %v2212_v12, 9  ;;  %v2219_v49 = vrot.slane %v2205_v25, %v7715_v15  ;;  %v8058_v25 = vmax.f32 %v2202_v59, %v6125_v37 }
 0x287   : > { %2719 = vrot.lane.b32.xlu0 %v8031_v46, %s9379_s23  ;;  %v6126_v13 = vrot.slane %v2204_v5, 9  ;;  %v2220_v2 = vcombine.high %v2212_v12, %v2212_v12 }
 0x288   : > { %2727 = vrot.lane.b32.xlu1 %v8034_v29, %s9379_s23  ;;  %v8042_v57 = vmax.f32 %v2212_v12, %v6127_v48  ;;  %v2229_v51 = vrot.slane %v1950_v42, %v7715_v15  ;;  %v2222_v6 = vcombine.high %v1950_v42, %v1950_v42  ;;  %v6129_v62 = vrot.slane %v2219_v49, 9 }
 0x289   : > { %v2221_v37 = vcombine.high %v2219_v49, %v2219_v49 }
 0x28a   : > { %v6131_v14 = vrot.slane %v2229_v51, 9  ;;  %v8055_v9 = vmax.f32 %v2219_v49, %v6129_v62  ;;  %v2236_v30 = vrot.slane %v2222_v6, %v7715_v15  ;;  %v6128_v62 = vrot.slane %v2220_v2, 9 }
 0x28b   : > { %2735 = vrot.lane.b32.xlu0 %v8042_v57, %s9379_s23 }
 0x28c   : > { %v2624_v40 = vpop.permute.xlu0 %2623  ;;  %2729 = vrot.lane.b32.xlu1 %v8045_v34, %s9379_s23  ;;  %v8065_v36 = vmax.f32 %v2229_v51, %v6131_v14  ;;  %v6133_v6 = vrot.slane %v2236_v30, 9 }
 0x28d   : > { %v2815_v45 = vmax.f32 %v7728_v55, %v2624_v40 }
 0x28e   : > { %v2626_v38 = vpop.permute.xlu1 %2625 }
 0x28f   : > { %v2816_v42 = vmax.f32 %v7734_v52, %v2626_v38  ;;  %2739 = vrot.lane.b32.xlu0 %v8055_v9, %s9379_s23  ;;  %v2946_v55 = vrot.slane %v2815_v45, %v8052_v7  ;;  %v8070_v52 = vmax.f32 %v2204_v5, %v6126_v13  ;;  %v8082_v13 = vmax.f32 %v2236_v30, %v6133_v6 }
 0x290   : > { %v2628_v48 = vpop.permute.xlu0 %2627  ;;  %2731 = vrot.lane.b32.xlu1 %v8058_v25, %s9379_s23 }
 0x291   : > { %v2950_v53 = vrot.slane %v2816_v42, %v8052_v7  ;;  %v2817_v59 = vmax.f32 %v7743_v18, %v2628_v48  ;;  %v8084_v48 = vmax.f32 %v2220_v2, %v6128_v62 }
 0x292   : > { %v2630_v12 = vpop.permute.xlu1 %2629 }
 0x293   : > { %v3200_v40 = vsel %vm3199_vm9, %v2950_v53, %v2946_v55  ;;  %v2954_v38 = vrot.slane %v2817_v59, %v8052_v7  ;;  %v2818_v14 = vmax.f32 %v7749_v23, %v2630_v12  ;;  %2743 = vrot.lane.b32.xlu0 %v8065_v36, %s9379_s23  ;;  %v6130_v23 = vrot.slane %v2221_v37, 9 }
 0x294   : > { %v2632_v45 = vpop.permute.xlu0 %2631  ;;  %2733 = vrot.lane.b32.xlu1 %v8070_v52, %s9379_s23  ;;  %v2237_v55 = vcombine.high %v2229_v51, %v2229_v51 }
 0x295   : > { %v3202_v18 = vsel %vm3201_vm10, %v2954_v38, %v3200_v40  ;;  %v2958_v5 = vrot.slane %v2818_v14, %v8052_v7  ;;  %v2819_v49 = vmax.f32 %v7757_v50, %v2632_v45  ;;  %v8096_v62 = vmax.f32 %v2221_v37, %v6130_v23 }
 0x296   : > { %v2634_v42 = vpop.permute.xlu1 %2633  ;;  %v6132_v38 = vrot.slane %v2237_v55, 9 }
 0x297   : > { %v3204_v53 = vsel %vm3203_vm11, %v2958_v5, %v3202_v18  ;;  %v2962_v59 = vrot.slane %v2819_v49, %v8052_v7  ;;  %v2820_v12 = vmax.f32 %v7762_v11, %v2634_v42  ;;  %2747 = vrot.lane.b32.xlu0 %v8082_v13, %s9379_s23  ;;  %v2238_v11 = vcombine.high %v2236_v30, %v2236_v30 }
 0x298   : > { %v2636_v40 = vpop.permute.xlu0 %2635  ;;  %2737 = vrot.lane.b32.xlu1 %v8084_v48, %s9379_s23  ;;  %v8105_v37 = vmax.f32 %v2237_v55, %v6132_v38 }
 0x299   : > { %v3206_v50 = vsel %vm3205_vm12, %v2962_v59, %v3204_v53  ;;  %v2966_v2 = vrot.slane %v2820_v12, %v8052_v7  ;;  %v2821_v51 = vmax.f32 %v7767_v33, %v2636_v40  ;;  %v6134_v23 = vrot.slane %v2238_v11, 9 }
 0x29a   : > { %v2638_v6 = vpop.permute.xlu1 %2637 }
 0x29b   : > { %v3208_v14 = vsel %vm3207_vm13, %v2966_v2, %v3206_v50  ;;  %v2970_v45 = vrot.slane %v2821_v51, %v8052_v7  ;;  %v2822_v18 = vmax.f32 %v7770_v44, %v2638_v6  ;;  %v8117_v55 = vmax.f32 %v2238_v11, %v6134_v23 }
 0x29c   : > { %v2640_v5 = vpop.permute.xlu0 %2639  ;;  %2741 = vrot.lane.b32.xlu1 %v8096_v62, %s9379_s23 }
 0x29d   : > { %v3210_v49 = vsel %vm3209_vm14, %v2970_v45, %v3208_v14  ;;  %v2974_v33 = vrot.slane %v2822_v18, %v8052_v7  ;;  %v2823_v44 = vmax.f32 %v7780_v28, %v2640_v5 }
 0x29e   : > { %v2642_v42 = vpop.permute.xlu1 %2641 }
 0x29f   : > { %v8108_v30 = vsel %vm3211_vm15, %v2974_v33, %v3210_v49  ;;  %v2824_v53 = vmax.f32 %v7784_v4, %v2642_v42  ;;  %v2978_v2 = vrot.slane %v2823_v44, %v8052_v7 }
 0x2a0   : > { %2745 = vrot.lane.b32.xlu1 %v8105_v37, %s9379_s23  ;;  %3270 = vrot.lane.b32.xlu0 %v8108_v30, %s9379_s23 }
 0x2a1   : > { %v2646_v59 = vpop.permute.xlu0 %2645  ;;  %v2982_v12 = vrot.slane %v2824_v53, %v8052_v7 }
 0x2a2   : > { %v2644_v40 = vpop.permute.xlu1 %2643  ;;  %v2826_v4 = vmax.f32 %v7792_v32, %v2646_v59 }
 0x2a3   : > { %v2825_v50 = vmax.f32 %v7794_v3, %v2644_v40  ;;  %v3213_v6 = vsel %vm3199_vm9, %v2982_v12, %v2978_v2 }
 0x2a4   : > { %3318 = vrot.lane.b32.xlu0 %v8108_v30, %s6849_s24  ;;  %2749 = vrot.lane.b32.xlu1 %v8117_v55, %s9379_s23  ;;  %v2990_v14 = vrot.slane %v2826_v4, %v8052_v7 }
 0x2a5   : > { %v2986_v28 = vrot.slane %v2825_v50, %v8052_v7  ;;  %v2650_v51 = vpop.permute.xlu0 %2649 }
 0x2a6   : > { %v2648_v38 = vpop.permute.xlu1 %2647  ;;  %v2828_v32 = vmax.f32 %v7803_v47, %v2650_v51 }
 0x2a7   : > { %v3214_v11 = vsel %vm3201_vm10, %v2986_v28, %v3213_v6  ;;  %v2827_v3 = vmax.f32 %v7805_v19, %v2648_v38 }
 0x2a8   : > { %3366 = vrot.lane.b32.xlu0 %v8108_v30, %s6850_s30  ;;  %3294 = vrot.lane.b32.xlu1 %v8108_v30, %s9383_s20  ;;  %v3215_v5 = vsel %vm3203_vm11, %v2990_v14, %v3214_v11  ;;  %v2998_v42 = vrot.slane %v2828_v32, %v8052_v7 }
 0x2a9   : > { %v2994_v45 = vrot.slane %v2827_v3, %v8052_v7  ;;  %v2654_v18 = vpop.permute.xlu0 %2653 }
 0x2aa   : > { %v2830_v49 = vmax.f32 %v7813_v41, %v2654_v18  ;;  %v2652_v19 = vpop.permute.xlu1 %2651 }
 0x2ab   : > { %v3216_v33 = vsel %vm3205_vm12, %v2994_v45, %v3215_v5  ;;  %v2829_v47 = vmax.f32 %v7815_v31, %v2652_v19 }
 0x2ac   : > { %3414 = vrot.lane.b32.xlu0 %v8108_v30, %s6852_s16  ;;  %3342 = vrot.lane.b32.xlu1 %v8108_v30, %s9381_s21  ;;  %v3006_v41 = vrot.slane %v2830_v49, %v8052_v7  ;;  %v3217_v44 = vsel %vm3207_vm13, %v2998_v42, %v3216_v33 }
 0x2ad   : > { %v3002_v23 = vrot.slane %v2829_v47, %v8052_v7  ;;  %v2656_v53 = vpop.permute.xlu0 %2655 }
 0x2ae   : > { %v2831_v59 = vmax.f32 %v7824_v54, %v2656_v53  ;;  %v2658_v31 = vpop.permute.xlu1 %2657 }
 0x2af   : > { %v3218_v12 = vsel %vm3209_vm14, %v3002_v23, %v3217_v44  ;;  %v2832_v40 = vmax.f32 %v7827_v21, %v2658_v31 }
 0x2b0   : > { %v8153_v50 = vsel %vm3211_vm15, %v3006_v41, %v3218_v12  ;;  %3390 = vrot.lane.b32.xlu1 %v8108_v30, %s9385_s17  ;;  %v3010_v2 = vrot.slane %v2831_v59, %v8052_v7  ;;  %v9410_v12 = vld [vmem:[#allocation11_spill] sm:$0xff] }
 0x2b1   : > { %v3014_v4 = vrot.slane %v2832_v40, %v8052_v7  ;;  %v2660_v28 = vpop.permute.xlu0 %2659  ;;  %3296 = vrot.lane.b32.xlu0 %v8153_v50, %s9383_s20 }
 0x2b2   : > { %v2833_v54 = vmax.f32 %v7837_v17, %v2660_v28  ;;  %v2662_v51 = vpop.permute.xlu1 %2661 }
 0x2b3   : > { %v3220_v21 = vsel %vm3199_vm9, %v3014_v4, %v3010_v2  ;;  %v2834_v6 = vmax.f32 %v7839_v35, %v2662_v51  ;;  %v9411_v2 = vld [vmem:[#allocation10_spill] sm:$0xff] }
 0x2b4   : > { %v3018_v38 = vrot.slane %v2833_v54, %v8052_v7  ;;  %3272 = vrot.lane.b32.xlu1 %v8153_v50, %s9379_s23 }
 0x2b5   : > { %v3022_v11 = vrot.slane %v2834_v6, %v8052_v7  ;;  %v2664_v3 = vpop.permute.xlu0 %2663  ;;  %3344 = vrot.lane.b32.xlu0 %v8153_v50, %s9381_s21 }
 0x2b6   : > { %v3221_v14 = vsel %vm3201_vm10, %v3018_v38, %v3220_v21  ;;  %v2835_v17 = vmax.f32 %v7848_v10, %v2664_v3  ;;  %v2666_v32 = vpop.permute.xlu1 %2665  ;;  %v9412_v21 = vld [vmem:[#allocation12_spill] sm:$0xff] }
 0x2b7   : > { %v3222_v45 = vsel %vm3203_vm11, %v3022_v11, %v3221_v14  ;;  %v2836_v35 = vmax.f32 %v7850_v1, %v2666_v32  ;;  %v9413_v11 = vld [vmem:[#allocation13_spill] sm:$0xff] }
 0x2b8   : > { %v3026_v18 = vrot.slane %v2835_v17, %v8052_v7  ;;  %3320 = vrot.lane.b32.xlu1 %v8153_v50, %s6849_s24  ;;  %v9414_v17 = vld [vmem:[#allocation14_spill] sm:$0xff] }
 0x2b9   : > { %v3030_v5 = vrot.slane %v2836_v35, %v8052_v7  ;;  %v2668_v49 = vpop.permute.xlu0 %2667  ;;  %3392 = vrot.lane.b32.xlu0 %v8153_v50, %s9385_s17 }
 0x2ba   : > { %v3223_v19 = vsel %vm3205_vm12, %v3026_v18, %v3222_v45  ;;  %v2837_v10 = vmax.f32 %v7858_v27, %v2668_v49  ;;  %v2670_v33 = vpop.permute.xlu1 %2669 }
 0x2bb   : > { %v3224_v47 = vsel %vm3207_vm13, %v3030_v5, %v3223_v19  ;;  %v2838_v1 = vmax.f32 %v7860_v60, %v2670_v33 }
 0x2bc   : > { %v3034_v42 = vrot.slane %v2837_v10, %v8052_v7  ;;  %3368 = vrot.lane.b32.xlu1 %v8153_v50, %s6850_s30 }
 0x2bd   : > { %v3038_v23 = vrot.slane %v2838_v1, %v8052_v7  ;;  %v2672_v53 = vpop.permute.xlu0 %2671 }
 0x2be   : > { %v3225_v41 = vsel %vm3209_vm14, %v3034_v42, %v3224_v47  ;;  %v2674_v59 = vpop.permute.xlu1 %2673  ;;  %v2839_v4 = vmax.f32 %v9411_v2, %v2672_v53 }
 0x2bf   : > { %v8190_v44 = vsel %vm3211_vm15, %v3038_v23, %v3225_v41  ;;  %v2840_v40 = vmax.f32 %v9410_v12, %v2674_v59 }
 0x2c0   : > { %3274 = vrot.lane.b32.xlu0 %v8190_v44, %s9379_s23  ;;  %3416 = vrot.lane.b32.xlu1 %v8153_v50, %s6852_s16  ;;  %v3042_v14 = vrot.slane %v2839_v4, %v8052_v7 }
 0x2c1   : > { %v2676_v27 = vpop.permute.xlu0 %2675  ;;  %v3046_v51 = vrot.slane %v2840_v40, %v8052_v7 }
 0x2c2   : > { %v2841_v28 = vmax.f32 %v7881_v39, %v2676_v27  ;;  %v9415_v39 = vld [vmem:[#allocation16_spill] sm:$0xff] }
 0x2c3   : > { %v3227_v18 = vsel %vm3199_vm9, %v3046_v51, %v3042_v14  ;;  %v9417_v14 = vld [vmem:[#allocation17_spill] sm:$0xff] }
 0x2c4   : > { %3322 = vrot.lane.b32.xlu0 %v8190_v44, %s6849_s24  ;;  %3298 = vrot.lane.b32.xlu1 %v8190_v44, %s9383_s20  ;;  %v3050_v45 = vrot.slane %v2841_v28, %v8052_v7 }
 0x2c5   : > { %v2678_v60 = vpop.permute.xlu0 %2677 }
 0x2c6   : > { %v2842_v6 = vmax.f32 %v9412_v21, %v2678_v60  ;;  %v3228_v47 = vsel %vm3201_vm10, %v3050_v45, %v3227_v18 }
 0x2c8   : > { %3370 = vrot.lane.b32.xlu0 %v8190_v44, %s6850_s30  ;;  %3346 = vrot.lane.b32.xlu1 %v8190_v44, %s9381_s21  ;;  %v3054_v5 = vrot.slane %v2842_v6, %v8052_v7 }
 0x2c9   : > { %v2680_v31 = vpop.permute.xlu0 %2679 }
 0x2ca   : > { %v2843_v3 = vmax.f32 %v9413_v11, %v2680_v31  ;;  %v3229_v23 = vsel %vm3203_vm11, %v3054_v5, %v3228_v47  ;;  %v9416_v31 = vld [vmem:[#allocation15_spill] sm:$0xff] }
 0x2cc   : > { %3418 = vrot.lane.b32.xlu0 %v8190_v44, %s6852_s16  ;;  %3394 = vrot.lane.b32.xlu1 %v8190_v44, %s9385_s17  ;;  %v3058_v10 = vrot.slane %v2843_v3, %v8052_v7 }
 0x2cd   : > { %v2682_v54 = vpop.permute.xlu0 %2681 }
 0x2ce   : > { %v2690_v38 = vpop.permute.xlu1 %2689  ;;  %v2844_v32 = vmax.f32 %v9414_v17, %v2682_v54  ;;  %v3230_v27 = vsel %vm3205_vm12, %v3058_v10, %v3229_v23 }
 0x2cf   : > { %v2848_v12 = vmax.f32 %v9416_v31, %v2690_v38 }
 0x2d0   : > { %v3062_v33 = vrot.slane %v2844_v32, %v8052_v7  ;;  %v9418_v32 = vld [vmem:[#allocation19_spill] sm:$0xff] }
 0x2d1   : > { %v2684_v35 = vpop.permute.xlu0 %2683  ;;  %v3078_v21 = vrot.slane %v2848_v12, %v8052_v7 }
 0x2d2   : > { %v2845_v49 = vmax.f32 %v9415_v39, %v2684_v35  ;;  %v2692_v19 = vpop.permute.xlu1 %2691  ;;  %v3231_v60 = vsel %vm3207_vm13, %v3062_v33, %v3230_v27 }
 0x2d4   : > { %v3066_v1 = vrot.slane %v2845_v49, %v8052_v7 }
 0x2d5   : > { %v2686_v42 = vpop.permute.xlu0 %2685 }
 0x2d6   : > { %v2846_v53 = vmax.f32 %v7926_v8, %v2686_v42  ;;  %v2694_v41 = vpop.permute.xlu1 %2693  ;;  %v3232_v40 = vsel %vm3209_vm14, %v3066_v1, %v3231_v60  ;;  %v2849_v8 = vmax.f32 %v7919_v58, %v2692_v19  ;;  %v9419_v42 = vld [vmem:[#allocation18_spill] sm:$0xff]  ;;  %v9420_v60 = vld [vmem:[#allocation20_spill] sm:$0xff] }
 0x2d7   : > { %v2850_v11 = vmax.f32 %v7930_v22, %v2694_v41 }
 0x2d8   : > { %v3070_v59 = vrot.slane %v2846_v53, %v8052_v7 }
 0x2d9   : > { %v2688_v2 = vpop.permute.xlu0 %2687  ;;  %v3086_v5 = vrot.slane %v2850_v11, %v8052_v7  ;;  %v9421_v11 = vld [vmem:[#allocation21_spill] sm:$0xff] }
 0x2da   : > { %v8232_v4 = vsel %vm3211_vm15, %v3070_v59, %v3232_v40  ;;  %v2847_v28 = vmax.f32 %v7938_v16, %v2688_v2  ;;  %v2696_v54 = vpop.permute.xlu1 %2695  ;;  %v3082_v16 = vrot.slane %v2849_v8, %v8052_v7 }
 0x2db   : > { %3276 = vrot.lane.b32.xlu1 %v8232_v4, %s9379_s23  ;;  %v2851_v17 = vmax.f32 %v9417_v14, %v2696_v54 }
 0x2dc   : > { %v3074_v51 = vrot.slane %v2847_v28, %v8052_v7 }
 0x2dd   : > { %v2704_v6 = vpop.permute.xlu0 %2703  ;;  %v3090_v22 = vrot.slane %v2851_v17, %v8052_v7  ;;  %v9422_v17 = vld [vmem:[#allocation23_spill] sm:$0xff] }
 0x2de   : > { %v2698_v38 = vpop.permute.xlu1 %2697  ;;  %v3234_v3 = vsel %vm3199_vm9, %v3078_v21, %v3074_v51  ;;  %v2855_v23 = vmax.f32 %v9419_v42, %v2704_v6 }
 0x2df   : > { %3300 = vrot.lane.b32.xlu1 %v8232_v4, %s9383_s20  ;;  %v2852_v45 = vmax.f32 %v9418_v32, %v2698_v38  ;;  %v3235_v35 = vsel %vm3201_vm10, %v3082_v16, %v3234_v3 }
 0x2e0   : > { %v3236_v49 = vsel %vm3203_vm11, %v3086_v5, %v3235_v35  ;;  %v3106_v28 = vrot.slane %v2855_v23, %v8052_v7 }
 0x2e1   : > { %v2708_v58 = vpop.permute.xlu0 %2707  ;;  %v3094_v19 = vrot.slane %v2852_v45, %v8052_v7 }
 0x2e2   : > { %v2700_v18 = vpop.permute.xlu1 %2699  ;;  %v2857_v59 = vmax.f32 %v9420_v60, %v2708_v58 }
 0x2e3   : > { %v2853_v39 = vmax.f32 %v7965_v56, %v2700_v18  ;;  %3324 = vrot.lane.b32.xlu1 %v8232_v4, %s6849_s24  ;;  %v3237_v56 = vsel %vm3205_vm12, %v3090_v22, %v3236_v49 }
 0x2e4   : > { %v3238_v53 = vsel %vm3207_vm13, %v3094_v19, %v3237_v56 }
 0x2e5   : > { %v2710_v10 = vpop.permute.xlu0 %2709  ;;  %v3098_v33 = vrot.slane %v2853_v39, %v8052_v7 }
 0x2e6   : > { %v2702_v47 = vpop.permute.xlu1 %2701  ;;  %v2858_v40 = vmax.f32 %v7973_v0, %v2710_v10  ;;  %v3114_v0 = vrot.slane %v2857_v59, %v8052_v7  ;;  %v9423_v10 = vld [vmem:[#allocation22_spill] sm:$0xff] }
 0x2e7   : > { %v2854_v1 = vmax.f32 %v7975_v26, %v2702_v47  ;;  %3348 = vrot.lane.b32.xlu1 %v8232_v4, %s9381_s21  ;;  %v3239_v31 = vsel %vm3209_vm14, %v3098_v33, %v3238_v53 }
 0x2e8   : > { %v3118_v6 = vrot.slane %v2858_v40, %v8052_v7 }
 0x2e9   : > { %v3102_v41 = vrot.slane %v2854_v1, %v8052_v7  ;;  %v2712_v27 = vpop.permute.xlu0 %2711 }
 0x2ea   : > { %v2706_v12 = vpop.permute.xlu1 %2705  ;;  %v2859_v54 = vmax.f32 %v7986_v61, %v2712_v27 }
 0x2eb   : > { %v8267_v26 = vsel %vm3211_vm15, %v3102_v41, %v3239_v31  ;;  %v2856_v2 = vmax.f32 %v7988_v63, %v2706_v12  ;;  %3372 = vrot.lane.b32.xlu1 %v8232_v4, %s6850_s30 }
 0x2ec   : > { %3278 = vrot.lane.b32.xlu0 %v8267_v26, %s9379_s23  ;;  %v3122_v61 = vrot.slane %v2859_v54, %v8052_v7 }
 0x2ed   : > { %v3110_v8 = vrot.slane %v2856_v2, %v8052_v7  ;;  %v2714_v51 = vpop.permute.xlu0 %2713 }
 0x2ee   : > { %v2722_v21 = vpop.permute.xlu1 %2721  ;;  %v2860_v3 = vmax.f32 %v9421_v11, %v2714_v51 }
 0x2ef   : > { %v3241_v63 = vsel %vm3199_vm9, %v3110_v8, %v3106_v28  ;;  %3396 = vrot.lane.b32.xlu1 %v8232_v4, %s9385_s17  ;;  %v2864_v33 = vmax.f32 %v9423_v10, %v2722_v21 }
 0x2f0   : > { %v3242_v38 = vsel %vm3201_vm10, %v3114_v0, %v3241_v63  ;;  %3302 = vrot.lane.b32.xlu0 %v8267_v26, %s9383_s20  ;;  %v3126_v35 = vrot.slane %v2860_v3, %v8052_v7  ;;  %v9424_v0 = vmov 0  }
 0x2f1   : > { %v3243_v16 = vsel %vm3203_vm11, %v3118_v6, %v3242_v38  ;;  %v2716_v14 = vpop.permute.xlu0 %2715  ;;  %v3142_v41 = vrot.slane %v2864_v33, %v8052_v7 }
 0x2f2   : > { %v2861_v32 = vmax.f32 %v9422_v17, %v2716_v14  ;;  %v2724_v45 = vpop.permute.xlu1 %2723  ;;  %v3244_v58 = vsel %vm3205_vm12, %v3122_v61, %v3243_v16 }
 0x2f3   : > { %3420 = vrot.lane.b32.xlu1 %v8232_v4, %s6852_s16  ;;  %v3245_v39 = vsel %vm3207_vm13, %v3126_v35, %v3244_v58 }
 0x2f4   : > { %3326 = vrot.lane.b32.xlu0 %v8267_v26, %s6849_s24  ;;  %v3130_v18 = vrot.slane %v2861_v32, %v8052_v7  ;;  %v6672_v32 = vld [vmem:[%s9349_s4 + $0x90] sm:$0xff]  }
 0x2f5   : > { %v2718_v5 = vpop.permute.xlu0 %2717 }
 0x2f6   : > { %v2862_v22 = vmax.f32 %v8020_v43, %v2718_v5  ;;  %v2726_v49 = vpop.permute.xlu1 %2725  ;;  %v3246_v47 = vsel %vm3209_vm14, %v3130_v18, %v3245_v39  ;;  %v2865_v43 = vmax.f32 %v8013_v24, %v2724_v45 }
 0x2f7   : > { %v2866_v59 = vmax.f32 %v8024_v20, %v2726_v49  ;;  %v6671_v20 = vld [vmem:[%s9349_s4 + $0x98] sm:$0xff]  }
 0x2f8   : > { %v3134_v19 = vrot.slane %v2862_v22, %v8052_v7  ;;  %3350 = vrot.lane.b32.xlu0 %v8267_v26, %s9381_s21  ;;  %3767 = vmatpush1.bf16.msra.mxu1 %v6671_v20 }
 0x2f9   : > { %v2720_v1 = vpop.permute.xlu0 %2719  ;;  %v3150_v54 = vrot.slane %v2866_v59, %v8052_v7  ;;  %3768 = vmatprep.subr.bf16.mxu1 %v9424_v0 }
 0x2fa   : > { %v8304_v56 = vsel %vm3211_vm15, %v3134_v19, %v3246_v47  ;;  %v2863_v42 = vmax.f32 %v8031_v46, %v2720_v1  ;;  %v2728_v23 = vpop.permute.xlu1 %2727  ;;  %v3146_v46 = vrot.slane %v2865_v43, %v8052_v7 }
 0x2fb   : > { %3280 = vrot.lane.b32.xlu1 %v8304_v56, %s9379_s23  ;;  %v2867_v24 = vmax.f32 %v8034_v29, %v2728_v23  ;;  %s9428_s23 = smov 64  }
 0x2fc   : > { %v3138_v53 = vrot.slane %v2863_v42, %v8052_v7  ;;  %3374 = vrot.lane.b32.xlu0 %v8267_v26, %s6850_s30  ;;  %3769 = vmatpush1.bf16.msra.mxu1 %v6672_v32  ;;  %v3520_v32 = vld [vmem:[#allocation3 + $0x1] sm:$0xff] }
 0x2fd   : > { %v2736_v27 = vpop.permute.xlu0 %2735  ;;  %v3154_v29 = vrot.slane %v2867_v24, %v8052_v7  ;;  %3770 = vmatprep.subr.bf16.mxu1 %v9424_v0 }
 0x2fe   : > { %v2730_v60 = vpop.permute.xlu1 %2729  ;;  %v3248_v31 = vsel %vm3199_vm9, %v3142_v41, %v3138_v53  ;;  %v2871_v11 = vmax.f32 %v8042_v57, %v2736_v27 }
 0x2ff   : > { %3304 = vrot.lane.b32.xlu1 %v8304_v56, %s9383_s20  ;;  %v2868_v12 = vmax.f32 %v8045_v34, %v2730_v60  ;;  %v3249_v40 = vsel %vm3201_vm10, %v3146_v46, %v3248_v31 }
 0x300   : > { %3398 = vrot.lane.b32.xlu0 %v8267_v26, %s9385_s17  ;;  %v3250_v34 = vsel %vm3203_vm11, %v3150_v54, %v3249_v40  ;;  %v3170_v45 = vrot.slane %v2871_v11, %v8052_v7 }
 0x301   : > { %v2740_v2 = vpop.permute.xlu0 %2739  ;;  %v3158_v51 = vrot.slane %v2868_v12, %v8052_v7  ;;  %v3251_v63 = vsel %vm3205_vm12, %v3154_v29, %v3250_v34 }
 0x302   : > { %v2732_v28 = vpop.permute.xlu1 %2731  ;;  %v2873_v57 = vmax.f32 %v8055_v9, %v2740_v2 }
 0x303   : > { %v2869_v8 = vmax.f32 %v8058_v25, %v2732_v28  ;;  %3328 = vrot.lane.b32.xlu1 %v8304_v56, %s6849_s24  ;;  %v3252_v3 = vsel %vm3207_vm13, %v3158_v51, %v3251_v63  ;;  %v6674_v28 = vld [vmem:[%s9349_s4 + $0x80] sm:$0xff]  }
 0x304   : > { %3422 = vrot.lane.b32.xlu0 %v8267_v26, %s6852_s16  ;;  %v3178_v9 = vrot.slane %v2873_v57, %v8052_v7 }
 0x305   : > { %v3162_v21 = vrot.slane %v2869_v8, %v8052_v7  ;;  %v2744_v38 = vpop.permute.xlu0 %2743 }
 0x306   : > { %v2734_v6 = vpop.permute.xlu1 %2733  ;;  %v2875_v39 = vmax.f32 %v8065_v36, %v2744_v38 }
 0x307   : > { %v2870_v25 = vmax.f32 %v8070_v52, %v2734_v6  ;;  %3352 = vrot.lane.b32.xlu1 %v8304_v56, %s9381_s21  ;;  %v3253_v16 = vsel %vm3209_vm14, %v3162_v21, %v3252_v3  ;;  %s9425_s21 = smov 120   ;;  %v6675_v6 = vld [vmem:[%s9349_s4 + $0x78] sm:$0xff]   ;;  %v6677_v3 = vld [vmem:[%s9349_s4 + $0x68] sm:$0xff]  }
 0x308   : > { %v3186_v47 = vrot.slane %v2875_v39, %v8052_v7 }
 0x309   : > { %v3166_v61 = vrot.slane %v2870_v25, %v8052_v7  ;;  %v2748_v35 = vpop.permute.xlu0 %2747 }
 0x30a   : > { %v2738_v14 = vpop.permute.xlu1 %2737  ;;  %v2877_v36 = vmax.f32 %v8082_v13, %v2748_v35  ;;  %v6673_v13 = vld [vmem:[%s9349_s4 + $0x88] sm:$0xff]  }
 0x30b   : > { %v8347_v17 = vsel %vm3211_vm15, %v3166_v61, %v3253_v16  ;;  %v2872_v52 = vmax.f32 %v8084_v48, %v2738_v14  ;;  %3376 = vrot.lane.b32.xlu1 %v8304_v56, %s6850_s30  ;;  %3771 = vmatpush1.bf16.msra.mxu1 %v6673_v13 }
 0x30c   : > { %3282 = vrot.lane.b32.xlu0 %v8347_v17, %s9425_s21  ;;  %v3194_v41 = vrot.slane %v2877_v36, %v8052_v7  ;;  %3772 = vmatprep.subr.bf16.mxu1 %v9424_v0 }
 0x30d   : > { %v3174_v58 = vrot.slane %v2872_v52, %v8052_v7 }
 0x30e   : > { %v2742_v18 = vpop.permute.xlu1 %2741 }
 0x30f   : > { %v3255_v48 = vsel %vm3199_vm9, %v3174_v58, %v3170_v45  ;;  %v2874_v5 = vmax.f32 %v8096_v62, %v2742_v18  ;;  %3400 = vrot.lane.b32.xlu1 %v8304_v56, %s9385_s17  ;;  %3773 = vmatpush1.bf16.msra.mxu1 %v6674_v28  ;;  %v6678_v45 = vld [vmem:[%s9349_s4 + $0x60] sm:$0xff]  }
 0x310   : > { %3306 = vrot.lane.b32.xlu0 %v8347_v17, %s9383_s20  ;;  %v3256_v49 = vsel %vm3201_vm10, %v3178_v9, %v3255_v48  ;;  %3774 = vmatprep.subr.bf16.mxu1 %v9424_v0  ;;  %s9427_s20 = smov 112   ;;  %v6679_v9 = vld [vmem:[%s9349_s4 + $0xb8] sm:$0xff]  }
 0x311   : > { %v3182_v22 = vrot.slane %v2874_v5, %v8052_v7 }
 0x312   : > { %v2746_v19 = vpop.permute.xlu1 %2745  ;;  %v3271_v10 = vpop.permute.xlu0 %3270 }
 0x313   : > { %v3257_v33 = vsel %vm3203_vm11, %v3182_v22, %v3256_v49  ;;  %v2876_v62 = vmax.f32 %v8105_v37, %v2746_v19  ;;  %3424 = vrot.lane.b32.xlu1 %v8304_v56, %s6852_s16  ;;  %v3439_v60 = vsel %vm3438_vm3, %v8108_v30, %v3271_v10  ;;  %3775 = vmatpush1.bf16.msra.mxu1 %v6675_v6  ;;  %v6680_v10 = vld [vmem:[%s9349_s4 + $0xb0] sm:$0xff]  }
 0x314   : > { %3330 = vrot.lane.b32.xlu0 %v8347_v17, %s6849_s24  ;;  %v3258_v42 = vsel %vm3205_vm12, %v3186_v47, %v3257_v33  ;;  %vm3492_vm12 = vcmask 457728   ;;  %3776 = vmatprep.subr.bf16.mxu1 %v9424_v0 }
 0x315   : > { %v3190_v1 = vrot.slane %v2876_v62, %v8052_v7 }
 0x316   : > { %v3319_v23 = vpop.permute.xlu0 %3318  ;;  %v2750_v43 = vpop.permute.xlu1 %2749 }
 0x317   : > { %v3259_v53 = vsel %vm3207_vm13, %v3190_v1, %v3258_v42  ;;  %v2878_v37 = vmax.f32 %v8117_v55, %v2750_v43  ;;  %v6681_v43 = vld [vmem:[%s9349_s4 + $0xa8] sm:$0xff]   ;;  %vm3659_vm13 = vcmask 1043456  }
 0x318   : > { %3354 = vrot.lane.b32.xlu0 %v8347_v17, %s9426_s15  ;;  %v3260_v59 = vsel %vm3209_vm14, %v3194_v41, %v3259_v53  ;;  %v3530_v41 = vld [vmem:[#allocation3 + $0x2] sm:$0xff] }
 0x319   : > { %v3198_v27 = vrot.slane %v2878_v37, %v8052_v7  ;;  %v6682_v37 = vld [vmem:[%s9349_s4 + $0xa0] sm:$0xff]  }
 0x31a   : > { %v3367_v31 = vpop.permute.xlu0 %3366  ;;  %v3295_v46 = vpop.permute.xlu1 %3294 }
 0x31b   : > { %v8394_v55 = vsel %vm3211_vm15, %v3198_v27, %v3260_v59  ;;  %v3448_v24 = vsel %vm3447_vm4, %v3439_v60, %v3295_v46 }
 0x31c   : > { %3378 = vrot.lane.b32.xlu0 %v8347_v17, %s6850_s30  ;;  %3284 = vrot.lane.b32.xlu1 %v8394_v55, %s9425_s21  ;;  %v3457_v12 = vsel %vm3456_vm5, %v3448_v24, %v3319_v23 }
 0x31e   : > { %v3415_v30 = vpop.permute.xlu0 %3414  ;;  %v3343_v40 = vpop.permute.xlu1 %3342 }
 0x31f   : > { %v3466_v2 = vsel %vm3465_vm6, %v3457_v12, %v3343_v40 }
 0x320   : > { %3402 = vrot.lane.b32.xlu0 %v8347_v17, %s9385_s17  ;;  %3332 = vrot.lane.b32.xlu1 %v8394_v55, %s6849_s24  ;;  %v3475_v20 = vsel %vm3474_vm7, %v3466_v2, %v3367_v31  ;;  %s442_s24 = sand.u32 1, %s6834_s26  }
 0x322   : > { %v3391_v54 = vpop.permute.xlu1 %3390 }
 0x323   : > { %v3484_v8 = vsel %vm3483_vm8, %v3475_v20, %v3391_v54  ;;  %v3297_v29 = vpop.permute.xlu0 %3296 }
 0x324   : > { %v3493_v34 = vsel %vm3492_vm12, %v3484_v8, %v3415_v30  ;;  %3426 = vrot.lane.b32.xlu0 %v8347_v17, %s6852_s16  ;;  %3380 = vrot.lane.b32.xlu1 %v8394_v55, %s6850_s30  ;;  %s5866_s30 = scalar_lea.hbm %s9358_s13, %s6435_s0 }
 0x325   : > { %3502 = vst.msk [vmem:[#allocation3 + $0x11] sm:$0xff] %vm453_vm0, %v3493_v34 }
 0x326   : > { %v3273_v51 = vpop.permute.xlu1 %3272 }
 0x327   : > { %v3440_v21 = vsel %vm3438_vm3, %v8153_v50, %v3273_v51  ;;  %v3345_v25 = vpop.permute.xlu0 %3344  ;;  %v6676_v50 = vld [vmem:[%s9349_s4 + $0x70] sm:$0xff]  }
 0x328   : > { %3308 = vrot.lane.b32.xlu0 %v8394_v55, %s9427_s20  ;;  %3428 = vrot.lane.b32.xlu1 %v8394_v55, %s6852_s16  ;;  %v3449_v63 = vsel %vm3447_vm4, %v3440_v21, %v3297_v29 }
 0x329   : > { %3777 = vmatpush1.bf16.msra.mxu1 %v6676_v50 }
 0x32a   : > { %v3321_v38 = vpop.permute.xlu1 %3320  ;;  %3778 = vmatprep.subr.bf16.mxu1 %v9424_v0 }
 0x32b   : > { %v3458_v11 = vsel %vm3456_vm5, %v3449_v63, %v3321_v38  ;;  %v3393_v61 = vpop.permute.xlu0 %3392 }
 0x32c   : > { %3356 = vrot.lane.b32.xlu0 %v8394_v55, %s9426_s15  ;;  %v3467_v16 = vsel %vm3465_vm6, %v3458_v11, %v3345_v25  ;;  %v3521_v57 = vld [vmem:[#allocation3 + $0x11] sm:$0xff] }
 0x32d   : > { %3779 = vmatpush1.bf16.msra.mxu1 %v6677_v3  ;;  %v6608_v48 = vpack.i.bf16 %v3521_v57, %v3520_v32  ;;  %v3531_v13 = vld [vmem:[#allocation3 + $0x12] sm:$0xff] }
 0x32e   : > { %v3369_v14 = vpop.permute.xlu1 %3368  ;;  %3780 = vmatprep.subr.bf16.mxu1 %v9424_v0  ;;  %v8479_v60 = vpack.c.bf16 %v3531_v13, %v3530_v41 }
 0x32f   : > { %v3476_v52 = vsel %vm3474_vm7, %v3467_v16, %v3369_v14 }
 0x330   : > { %3404 = vrot.lane.b32.xlu0 %v8394_v55, %s9385_s17  ;;  %v3485_v35 = vsel %vm3483_vm8, %v3476_v52, %v3393_v61  ;;  %v3663_v12 = vrot.slane %v8479_v60, 4  ;;  %s6856_s17 = smov [#allocation6]  }
 0x331   : > { %3781 = vmatpush1.bf16.msra.mxu1 %v6678_v45 }
 0x332   : > { %v3275_v58 = vpop.permute.xlu0 %3274  ;;  %v3417_v18 = vpop.permute.xlu1 %3416  ;;  %3790 = vmatprep.subr.bf16.mxu1 %v9424_v0 }
 0x333   : > { %v3494_v5 = vsel %vm3492_vm12, %v3485_v35, %v3417_v18  ;;  %v3441_v39 = vsel %vm3438_vm3, %v8190_v44, %v3275_v58 }
 0x334   : > { %3503 = vst.msk [vmem:[#allocation3 + $0x21] sm:$0xff] %vm453_vm0, %v3494_v5  ;;  %6609 = vrot.lane.b32.xlu0 %v6608_v48, %s9428_s23 }
 0x335   : > { %3791 = vmatpush2.bf16.msra.mxu1 %v6679_v9 }
 0x336   : > { %v3323_v22 = vpop.permute.xlu0 %3322  ;;  %v3299_v49 = vpop.permute.xlu1 %3298  ;;  %3792 = vmatprep.subr.bf16.mxu1 %v9424_v0 }
 0x337   : > { %v3450_v19 = vsel %vm3447_vm4, %v3441_v39, %v3299_v49 }
 0x338   : > { %v3459_v62 = vsel %vm3456_vm5, %v3450_v19, %v3323_v22 }
 0x339   : > { %3793 = vmatpush2.bf16.msra.mxu1 %v6680_v10 }
 0x33a   : > { %v3371_v33 = vpop.permute.xlu0 %3370  ;;  %v3347_v47 = vpop.permute.xlu1 %3346  ;;  %3794 = vmatprep.subr.bf16.mxu1 %v9424_v0 }
 0x33b   : > { %v3468_v36 = vsel %vm3465_vm6, %v3459_v62, %v3347_v47  ;;  %v3522_v27 = vld [vmem:[#allocation3 + $0x21] sm:$0xff] }
 0x33c   : > { %v3477_v1 = vsel %vm3474_vm7, %v3468_v36, %v3371_v33  ;;  %v3532_v31 = vld [vmem:[#allocation3 + $0x22] sm:$0xff] }
 0x33d   : > { %3795 = vmatpush2.bf16.msra.mxu1 %v6681_v43 }
 0x33e   : > { %v3419_v44 = vpop.permute.xlu0 %3418  ;;  %v3395_v42 = vpop.permute.xlu1 %3394  ;;  %3796 = vmatprep.subr.bf16.mxu1 %v9424_v0 }
 0x33f   : > { %v3486_v23 = vsel %vm3483_vm8, %v3477_v1, %v3395_v42 }
 0x340   : > { %v3495_v53 = vsel %vm3492_vm12, %v3486_v23, %v3419_v44 }
 0x341   : > { %3504 = vst.msk [vmem:[#allocation3 + $0x31] sm:$0xff] %vm453_vm0, %v3495_v53  ;;  %3797 = vmatpush2.bf16.msra.mxu1 %v6682_v37 }
 0x342   : > { %3915 = vmatprep.subr.bf16.mxu1 %v9424_v0 }
 0x348   : > { %v3523_v59 = vld [vmem:[#allocation3 + $0x31] sm:$0xff] }
 0x349   : > { %v3533_v46 = vld [vmem:[#allocation3 + $0x32] sm:$0xff]  ;;  %v6613_v24 = vpack.i.bf16 %v3523_v59, %v3522_v27 }
 0x34a   : > { %v8481_v30 = vpack.c.bf16 %v3533_v46, %v3532_v31 }
 0x34b   : > { %6614 = vrot.lane.b32.xlu1 %v6613_v24, %s9428_s23 }
 0x34c   : > { %v3664_v40 = vrot.slane %v8481_v30, 4 }
 0x34d   : > { %v3277_v2 = vpop.permute.xlu1 %3276 }
 0x34e   : > { %v3665_v28 = vsel %vm3659_vm13, %v3663_v12, %v3664_v40  ;;  %v3442_v51 = vsel %vm3438_vm3, %v8232_v4, %v3277_v2 }
 0x34f   : > { %6171 = vmatprep.mubr.msk.bf16.mxu1 %vm453_vm0, %v3665_v28 }
 0x351   : > { %v3301_v20 = vpop.permute.xlu1 %3300 }
 0x352   : > { %v3451_v21 = vsel %vm3447_vm4, %v3442_v51, %v3301_v20 }
 0x355   : > { %v3325_v54 = vpop.permute.xlu1 %3324 }
 0x356   : > { %v3460_v25 = vsel %vm3456_vm5, %v3451_v21, %v3325_v54 }
 0x359   : > { %v3349_v8 = vpop.permute.xlu1 %3348 }
 0x35a   : > { %v3469_v38 = vsel %vm3465_vm6, %v3460_v25, %v3349_v8 }
 0x35d   : > { %v3373_v29 = vpop.permute.xlu1 %3372 }
 0x35e   : > { %v3279_v34 = vpop.permute.xlu0 %3278  ;;  %v3478_v11 = vsel %vm3474_vm7, %v3469_v38, %v3373_v29 }
 0x35f   : > { %v3443_v32 = vsel %vm3438_vm3, %v8267_v26, %v3279_v34 }
 0x361   : > { %v3397_v6 = vpop.permute.xlu1 %3396 }
 0x362   : > { %v3303_v63 = vpop.permute.xlu0 %3302  ;;  %v3487_v50 = vsel %vm3483_vm8, %v3478_v11, %v3397_v6 }
 0x363   : > { %v3452_v45 = vsel %vm3447_vm4, %v3443_v32, %v3303_v63 }
 0x365   : > { %v3421_v3 = vpop.permute.xlu1 %3420 }
 0x366   : > { %v3496_v61 = vsel %vm3492_vm12, %v3487_v50, %v3421_v3  ;;  %v3327_v16 = vpop.permute.xlu0 %3326 }
 0x367   : > { %3505 = vst.msk [vmem:[#allocation3 + $0x41] sm:$0xff] %vm453_vm0, %v3496_v61  ;;  %v3461_v35 = vsel %vm3456_vm5, %v3452_v45, %v3327_v16 }
 0x36a   : > { %v3351_v14 = vpop.permute.xlu0 %3350 }
 0x36b   : > { %v3470_v18 = vsel %vm3465_vm6, %v3461_v35, %v3351_v14  ;;  %v3510_v35 = vld [vmem:[#allocation3] sm:$0xff] }
 0x36d   : > { %v3281_v4 = vpop.permute.xlu1 %3280 }
 0x36e   : > { %v3375_v52 = vpop.permute.xlu0 %3374  ;;  %v3524_v10 = vld [vmem:[#allocation3 + $0x41] sm:$0xff]  ;;  %v3444_v62 = vsel %vm3438_vm3, %v8304_v56, %v3281_v4  ;;  %v3529_v4 = vld [vmem:[#allocation3 + $0x91] sm:$0xff] }
 0x36f   : > { %v3479_v48 = vsel %vm3474_vm7, %v3470_v18, %v3375_v52  ;;  %v3511_v18 = vld [vmem:[#allocation3 + $0x10] sm:$0xff] }
 0x371   : > { %v3305_v57 = vpop.permute.xlu1 %3304 }
 0x372   : > { %v3399_v58 = vpop.permute.xlu0 %3398  ;;  %v3453_v36 = vsel %vm3447_vm4, %v3444_v62, %v3305_v57  ;;  %v3513_v62 = vld [vmem:[#allocation3 + $0x30] sm:$0xff] }
 0x373   : > { %v3488_v9 = vsel %vm3483_vm8, %v3479_v48, %v3399_v58 }
 0x375   : > { %v3329_v5 = vpop.permute.xlu1 %3328 }
 0x376   : > { %v3423_v39 = vpop.permute.xlu0 %3422  ;;  %v3462_v1 = vsel %vm3456_vm5, %v3453_v36, %v3329_v5 }
 0x377   : > { %v3497_v22 = vsel %vm3492_vm12, %v3488_v9, %v3423_v39 }
 0x378   : > { %3506 = vst.msk [vmem:[#allocation3 + $0x51] sm:$0xff] %vm453_vm0, %v3497_v22  ;;  %v3534_v22 = vld [vmem:[#allocation3 + $0x42] sm:$0xff] }
 0x379   : > { %v3353_v49 = vpop.permute.xlu1 %3352 }
 0x37a   : > { %v3471_v23 = vsel %vm3465_vm6, %v3462_v1, %v3353_v49 }
 0x37d   : > { %v3377_v26 = vpop.permute.xlu1 %3376 }
 0x37e   : > { %v3283_v19 = vpop.permute.xlu0 %3282  ;;  %v3480_v43 = vsel %vm3474_vm7, %v3471_v23, %v3377_v26 }
 0x37f   : > { %v3525_v33 = vld [vmem:[#allocation3 + $0x51] sm:$0xff]  ;;  %v3445_v59 = vsel %vm3438_vm3, %v8347_v17, %v3283_v19 }
 0x380   : > { %v6618_v47 = vpack.i.bf16 %v3525_v33, %v3524_v10  ;;  %v3535_v48 = vld [vmem:[#allocation3 + $0x52] sm:$0xff]  ;;  %v3512_v33 = vld [vmem:[#allocation3 + $0x20] sm:$0xff] }
 0x381   : > { %v3401_v44 = vpop.permute.xlu1 %3400  ;;  %v8540_v19 = vpack.c.bf16 %v3535_v48, %v3534_v22 }
 0x382   : > { %v3307_v42 = vpop.permute.xlu0 %3306  ;;  %6619 = vrot.lane.b32.xlu0 %v6618_v47, %s9428_s23  ;;  %v3489_v53 = vsel %vm3483_vm8, %v3480_v43, %v3401_v44  ;;  %v6683_v43 = vld [vmem:[%s9349_s4 + $0x38] sm:$0xff]  }
 0x383   : > { %v3454_v46 = vsel %vm3447_vm4, %v3445_v59, %v3307_v42  ;;  %v3668_v1 = vrot.slane %v8540_v19, 4  ;;  %v6689_v59 = vld [vmem:[%s9349_s4 + $0x8] sm:$0xff]  }
 0x385   : > { %v3425_v37 = vpop.permute.xlu1 %3424 }
 0x386   : > { %v3498_v41 = vsel %vm3492_vm12, %v3489_v53, %v3425_v37  ;;  %v3331_v13 = vpop.permute.xlu0 %3330  ;;  %v3669_v37 = vsel %vm3659_vm13, %v3664_v40, %v3668_v1  ;;  %v6686_v40 = vld [vmem:[%s9349_s4 + $0x20] sm:$0xff]  }
 0x387   : > { %3507 = vst.msk [vmem:[#allocation3 + $0x61] sm:$0xff] %vm453_vm0, %v3498_v41  ;;  %v3463_v12 = vsel %vm3456_vm5, %v3454_v46, %v3331_v13  ;;  %v6684_v41 = vld [vmem:[%s9349_s4 + $0x30] sm:$0xff]   ;;  %v6685_v13 = vld [vmem:[%s9349_s4 + $0x28] sm:$0xff]   ;;  %v6691_v46 = vld [vmem:[%s9349_s4 + $0x58] sm:$0xff]  }
 0x38a   : > { %v3355_v56 = vpop.permute.xlu0 %3354 }
 0x38b   : > { %v3472_v2 = vsel %vm3465_vm6, %v3463_v12, %v3355_v56  ;;  %v6687_v56 = vld [vmem:[%s9349_s4 + $0x18] sm:$0xff]   ;;  %v6693_v12 = vld [vmem:[%s9349_s4 + $0x48] sm:$0xff]  }
 0x38e   : > { %v3379_v27 = vpop.permute.xlu0 %3378  ;;  %v3285_v31 = vpop.permute.xlu1 %3284  ;;  %v3526_v38 = vld [vmem:[#allocation3 + $0x61] sm:$0xff] }
 0x38f   : > { %v3481_v28 = vsel %vm3474_vm7, %v3472_v2, %v3379_v27  ;;  %v3446_v17 = vsel %vm3438_vm3, %v8394_v55, %v3285_v31  ;;  %v6688_v27 = vld [vmem:[%s9349_s4 + $0x10] sm:$0xff]   ;;  %v6690_v31 = vld [vmem:[%s9349_s4] sm:$0xff]  }
 0x390   : > { %v6694_v2 = vld [vmem:[%s9349_s4 + $0x40] sm:$0xff]  }
 0x392   : > { %v3403_v24 = vpop.permute.xlu0 %3402  ;;  %v3333_v8 = vpop.permute.xlu1 %3332 }
 0x393   : > { %v3490_v20 = vsel %vm3483_vm8, %v3481_v28, %v3403_v24  ;;  %v6692_v24 = vld [vmem:[%s9349_s4 + $0x50] sm:$0xff]  }
 0x396   : > { %v3427_v54 = vpop.permute.xlu0 %3426  ;;  %v3381_v21 = vpop.permute.xlu1 %3380 }
 0x397   : > { %v3499_v29 = vsel %vm3492_vm12, %v3490_v20, %v3427_v54  ;;  %v3536_v54 = vld [vmem:[#allocation3 + $0x62] sm:$0xff] }
 0x398   : > { %3508 = vst.msk [vmem:[#allocation3 + $0x71] sm:$0xff] %vm453_vm0, %v3499_v29 }
 0x39a   : > { %v3309_v34 = vpop.permute.xlu0 %3308  ;;  %v3429_v16 = vpop.permute.xlu1 %3428 }
 0x39b   : > { %v3455_v51 = vsel %vm3447_vm4, %v3446_v17, %v3309_v34  ;;  %v3515_v34 = vld [vmem:[#allocation3 + $0x50] sm:$0xff] }
 0x39c   : > { %v3464_v25 = vsel %vm3456_vm5, %v3455_v51, %v3333_v8  ;;  %v3514_v51 = vld [vmem:[#allocation3 + $0x40] sm:$0xff] }
 0x39e   : > { %v3357_v6 = vpop.permute.xlu0 %3356 }
 0x39f   : > { %v3473_v63 = vsel %vm3465_vm6, %v3464_v25, %v3357_v6  ;;  %v3527_v11 = vld [vmem:[#allocation3 + $0x71] sm:$0xff] }
 0x3a0   : > { %v6623_v50 = vpack.i.bf16 %v3527_v11, %v3526_v38  ;;  %v3482_v61 = vsel %vm3474_vm7, %v3473_v63, %v3381_v21  ;;  %v3537_v28 = vld [vmem:[#allocation3 + $0x72] sm:$0xff] }
 0x3a1   : > { %v8604_v17 = vpack.c.bf16 %v3537_v28, %v3536_v54 }
 0x3a2   : > { %v3405_v3 = vpop.permute.xlu0 %3404  ;;  %6624 = vrot.lane.b32.xlu1 %v6623_v50, %s9428_s23 }
 0x3a3   : > { %v3491_v55 = vsel %vm3483_vm8, %v3482_v61, %v3405_v3  ;;  %v3672_v63 = vrot.slane %v8604_v17, 4  ;;  %v3539_v61 = vld [vmem:[#allocation3 + $0x92] sm:$0xff] }
 0x3a4   : > { %v3500_v14 = vsel %vm3492_vm12, %v3491_v55, %v3429_v16 }
 0x3a5   : > { %3509 = vst.msk [vmem:[#allocation3 + $0x81] sm:$0xff] %vm453_vm0, %v3500_v14  ;;  %v3673_v50 = vsel %vm3659_vm13, %v3668_v1, %v3672_v63 }
 0x3a6   : > { %v6610_v57 = vpop.permute.xlu0 %6609 }
 0x3a7   : > { %v6612_v45 = vunpack.i.h.bf16 %v6610_v57  ;;  %v6611_v58 = vunpack.i.l.bf16 %v6610_v57 }
 0x3a9   : > { %v3580_v5 = vsel %vm453_vm0, %v3510_v35, %v6611_v58  ;;  %v3581_v9 = vsel %vm453_vm0, %v3511_v18, %v6612_v45 }
 0x3aa   : > { %v8542_v10 = vpack.c.bf16 %v3581_v9, %v3580_v5  ;;  %v3519_v9 = vld [vmem:[#allocation3 + $0x90] sm:$0xff] }
 0x3ac   : > { %v3528_v52 = vld [vmem:[#allocation3 + $0x81] sm:$0xff]  ;;  %v3660_v42 = vrot.slane %v8542_v10, 4 }
 0x3ad   : > { %v6628_v32 = vpack.i.bf16 %v3529_v4, %v3528_v52  ;;  %v3538_v3 = vld [vmem:[#allocation3 + $0x82] sm:$0xff] }
 0x3ae   : > { %v8615_v4 = vpack.c.bf16 %v3539_v61, %v3538_v3  ;;  %v3516_v52 = vld [vmem:[#allocation3 + $0x60] sm:$0xff] }
 0x3af   : > { %6629 = vrot.lane.b32.xlu0 %v6628_v32, %s9428_s23  ;;  %v3517_v32 = vld [vmem:[#allocation3 + $0x70] sm:$0xff] }
 0x3b0   : > { %v3676_v35 = vrot.slane %v8615_v4, 4 }
 0x3b2   : > { %v3677_v5 = vsel %vm3659_vm13, %v3672_v63, %v3676_v35 }
 0x3bd   : > { %v6615_v39 = vpop.permute.xlu1 %6614 }
 0x3be   : > { %v6617_v49 = vunpack.i.h.bf16 %v6615_v39  ;;  %v6616_v26 = vunpack.i.l.bf16 %v6615_v39 }
 0x3c0   : > { %v3583_v47 = vsel %vm453_vm0, %v3513_v62, %v6617_v49  ;;  %v3582_v36 = vsel %vm453_vm0, %v3512_v33, %v6616_v26  ;;  %v3518_v26 = vld [vmem:[#allocation3 + $0x80] sm:$0xff] }
 0x3c1   : > { %v8546_v44 = vpack.c.bf16 %v3583_v47, %v3582_v36 }
 0x3c3   : > { %v3661_v23 = vrot.slane %v8546_v44, 4 }
 0x3c5   : > { %v3662_v53 = vsel %vm3659_vm13, %v3660_v42, %v3661_v23  ;;  %v6695_v42 = vld [vmem:[%s9349_s4 + $0xf8] sm:$0xff]  }
 0x3c6   : > { %3799 = vmatmul.mubr.bf16.vlgmr.msra.gmra.mxu1 %v3662_v53  ;;  %v6700_v53 = vld [vmem:[%s9349_s4 + $0xd0] sm:$0xff]  }
 0x3c7   : > { %6172 = vmatprep.mubr.msk.bf16.mxu1 %vm453_vm0, %v3669_v37  ;;  %3916 = vmatpush1.bf16.msra.mxu1 %v6683_v43  ;;  %v6699_v43 = vld [vmem:[%s9349_s4 + $0xd8] sm:$0xff]   ;;  %v6701_v37 = vld [vmem:[%s9349_s4 + $0xc8] sm:$0xff]  }
 0x3c8   : > { %3917 = vmatprep.subr.bf16.mxu1 %v9424_v0 }
 0x3cb   : > { %3918 = vmatpush1.bf16.msra.mxu1 %v6684_v41  ;;  %v6702_v41 = vld [vmem:[%s9349_s4 + $0xc0] sm:$0xff]  }
 0x3cc   : > { %3919 = vmatprep.subr.bf16.mxu1 %v9424_v0 }
 0x3cf   : > { %3920 = vmatpush1.bf16.msra.mxu1 %v6685_v13  ;;  %v6703_v13 = vld [vmem:[%s9349_s4 + $0x118] sm:$0xff]  }
 0x3d0   : > { %3921 = vmatprep.subr.bf16.mxu1 %v9424_v0 }
 0x3d3   : > { %3922 = vmatpush1.bf16.msra.mxu1 %v6686_v40  ;;  %v6704_v40 = vld [vmem:[%s9349_s4 + $0x110] sm:$0xff]  }
 0x3d4   : > { %3923 = vmatprep.subr.bf16.mxu1 %v9424_v0 }
 0x3d7   : > { %3924 = vmatpush1.bf16.msra.mxu1 %v6687_v56  ;;  %v6706_v56 = vld [vmem:[%s9349_s4 + $0x100] sm:$0xff]  }
 0x3d8   : > { %3925 = vmatprep.subr.bf16.mxu1 %v9424_v0 }
 0x3db   : > { %3926 = vmatpush1.bf16.msra.mxu1 %v6688_v27 }
 0x3dc   : > { %3927 = vmatprep.subr.bf16.mxu1 %v9424_v0 }
 0x3df   : > { %3928 = vmatpush1.bf16.msra.mxu1 %v6689_v59 }
 0x3e0   : > { %3929 = vmatprep.subr.bf16.mxu1 %v9424_v0 }
 0x3e3   : > { %3930 = vmatpush1.bf16.msra.mxu1 %v6690_v31 }
 0x3e4   : > { %3939 = vmatprep.subr.bf16.mxu1 %v9424_v0 }
 0x3e7   : > { %3940 = vmatpush2.bf16.msra.mxu1 %v6691_v46 }
 0x3e8   : > { %3941 = vmatprep.subr.bf16.mxu1 %v9424_v0 }
 0x3eb   : > { %3942 = vmatpush2.bf16.msra.mxu1 %v6692_v24 }
 0x3ec   : > { %3943 = vmatprep.subr.bf16.mxu1 %v9424_v0 }
 0x3ef   : > { %3944 = vmatpush2.bf16.msra.mxu1 %v6693_v12 }
 0x3f0   : > { %3945 = vmatprep.subr.bf16.mxu1 %v9424_v0 }
 0x3f3   : > { %3946 = vmatpush2.bf16.msra.mxu1 %v6694_v2 }
 0x3f4   : > { %v6620_v20 = vpop.permute.xlu0 %6619  ;;  %4080 = vmatprep.subr.bf16.mxu1 %v9424_v0 }
 0x3f5   : > { %v6622_v8 = vunpack.i.h.bf16 %v6620_v20  ;;  %v6621_v29 = vunpack.i.l.bf16 %v6620_v20 }
 0x3f7   : > { %v3585_v21 = vsel %vm453_vm0, %v3515_v34, %v6622_v8  ;;  %v3584_v6 = vsel %vm453_vm0, %v3514_v51, %v6621_v29 }
 0x3f8   : > { %v8608_v25 = vpack.c.bf16 %v3585_v21, %v3584_v6 }
 0x3fa   : > { %v3666_v38 = vrot.slane %v8608_v25, 4 }
 0x3fc   : > { %v3667_v11 = vsel %vm3659_vm13, %v3661_v23, %v3666_v38  ;;  %v6696_v23 = vld [vmem:[%s9349_s4 + $0xf0] sm:$0xff]  }
 0x3fd   : > { %3807 = vmatmul.mubr.bf16.gmra.mxu1 %v3667_v11 }
 0x3fe   : > { %6173 = vmatprep.mubr.msk.bf16.mxu1 %vm453_vm0, %v3673_v50 }
 0x414   : > { %v6625_v16 = vpop.permute.xlu1 %6624 }
 0x415   : > { %v6627_v55 = vunpack.i.h.bf16 %v6625_v16  ;;  %v6626_v14 = vunpack.i.l.bf16 %v6625_v16 }
 0x417   : > { %v3587_v57 = vsel %vm453_vm0, %v3517_v32, %v6627_v55  ;;  %v3586_v45 = vsel %vm453_vm0, %v3516_v52, %v6626_v14 }
 0x418   : > { %v8619_v58 = vpack.c.bf16 %v3587_v57, %v3586_v45 }
 0x41a   : > { %v3670_v18 = vrot.slane %v8619_v58, 4 }
 0x41c   : > { %v3671_v48 = vsel %vm3659_vm13, %v3666_v38, %v3670_v18 }
 0x41d   : > { %3815 = vmatmul.mubr.bf16.gmra.mxu1 %v3671_v48 }
 0x41e   : > { %6174 = vmatprep.mubr.msk.bf16.mxu1 %vm453_vm0, %v3677_v5 }
 0x421   : > { %v6630_v39 = vpop.permute.xlu0 %6629 }
 0x422   : > { %v6632_v22 = vunpack.i.h.bf16 %v6630_v39  ;;  %v6631_v49 = vunpack.i.l.bf16 %v6630_v39 }
 0x424   : > { %v3589_v33 = vsel %vm453_vm0, %v3519_v9, %v6632_v22  ;;  %v3588_v62 = vsel %vm453_vm0, %v3518_v26, %v6631_v49 }
 0x425   : > { %v3598_v47 = vpack.c.bf16 %v3589_v33, %v3588_v62 }
 0x427   : > { %v3674_v36 = vrot.slane %v3598_v47, 4 }
 0x429   : > { %v3675_v1 = vsel %vm3659_vm13, %v3670_v18, %v3674_v36 }
 0x42a   : > { %3823 = vmatmul.mubr.bf16.gmra.mxu1 %v3675_v1 }
 0x42b   : > { %6187 = vmatprep.mubr.msk.bf16.mxu1 %vm453_vm0, %v8479_v60  ;;  %v6697_v60 = vld [vmem:[%s9349_s4 + $0xe8] sm:$0xff]  }
 0x432   : > { %3948 = vmatmul.mubr.bf16.vlgmr.msra.gmra.mxu1 %v8542_v10  ;;  %v6698_v10 = vld [vmem:[%s9349_s4 + $0xe0] sm:$0xff]  }
 0x433   : > { %4081 = vmatpush1.bf16.msra.mxu1 %v6695_v42  ;;  %6188 = vmatprep.mubr.msk.bf16.mxu1 %vm453_vm0, %v8481_v30 }
 0x434   : > { %4082 = vmatprep.subr.bf16.mxu1 %v9424_v0 }
 0x437   : > { %4083 = vmatpush1.bf16.msra.mxu1 %v6696_v23 }
 0x438   : > { %4084 = vmatprep.subr.bf16.mxu1 %v9424_v0 }
 0x43a   : > { %3956 = vmatmul.mubr.bf16.gmra.mxu1 %v8546_v44 }
 0x43b   : > { %4085 = vmatpush1.bf16.msra.mxu1 %v6697_v60  ;;  %6189 = vmatprep.mubr.msk.bf16.mxu1 %vm453_vm0, %v8540_v19 }
 0x43c   : > { %4086 = vmatprep.subr.bf16.mxu1 %v9424_v0 }
 0x43f   : > { %4087 = vmatpush1.bf16.msra.mxu1 %v6698_v10 }
 0x440   : > { %4088 = vmatprep.subr.bf16.mxu1 %v9424_v0 }
 0x442   : > { %3964 = vmatmul.mubr.bf16.gmra.mxu1 %v8608_v25 }
 0x443   : > { %4089 = vmatpush1.bf16.msra.mxu1 %v6699_v43  ;;  %6190 = vmatprep.mubr.msk.bf16.mxu1 %vm453_vm0, %v8604_v17 }
 0x444   : > { %4090 = vmatprep.subr.bf16.mxu1 %v9424_v0 }
 0x447   : > { %4091 = vmatpush1.bf16.msra.mxu1 %v6700_v53 }
 0x448   : > { %4092 = vmatprep.subr.bf16.mxu1 %v9424_v0 }
 0x44a   : > { %3972 = vmatmul.mubr.bf16.gmra.mxu1 %v8619_v58 }
 0x44b   : > { %4093 = vmatpush1.bf16.msra.mxu1 %v6701_v37  ;;  %6227 = vmatprep.mubr.msk.bf16.mxu1 %vm453_vm0, %v8481_v30  ;;  %v6705_v30 = vld [vmem:[%s9349_s4 + $0x108] sm:$0xff]  }
 0x44c   : > { %4094 = vmatprep.subr.bf16.mxu1 %v9424_v0 }
 0x44f   : > { %4095 = vmatpush1.bf16.msra.mxu1 %v6702_v41 }
 0x450   : > { %4104 = vmatprep.subr.bf16.mxu1 %v9424_v0 }
 0x453   : > { %4105 = vmatpush2.bf16.msra.mxu1 %v6703_v13 }
 0x454   : > { %4106 = vmatprep.subr.bf16.mxu1 %v9424_v0 }
 0x457   : > { %4107 = vmatpush2.bf16.msra.mxu1 %v6704_v40 }
 0x458   : > { %4108 = vmatprep.subr.bf16.mxu1 %v9424_v0 }
 0x45b   : > { %4109 = vmatpush2.bf16.msra.mxu1 %v6705_v30 }
 0x45c   : > { %4110 = vmatprep.subr.bf16.mxu1 %v9424_v0 }
 0x45f   : > { %4111 = vmatpush2.bf16.msra.mxu1 %v6706_v56 }
 0x460   : > { %4911 = vmatprep.subr.bf16.mxu1 %v9424_v0 }
 0x462   : > { %4113 = vmatmul.mubr.bf16.vlgmr.msra.gmra.mxu1 %v8546_v44 }
 0x463   : > { %6228 = vmatprep.mubr.msk.bf16.mxu1 %vm453_vm0, %v8540_v19 }
 0x46a   : > { %4121 = vmatmul.mubr.bf16.gmra.mxu1 %v8608_v25 }
 0x46b   : > { %6229 = vmatprep.mubr.msk.bf16.mxu1 %vm453_vm0, %v8604_v17 }
 0x472   : > { %4129 = vmatmul.mubr.bf16.gmra.mxu1 %v8619_v58  ;;  %v8713_v58 = vld [vmem:[%s9350_s5] ss:$0 sm:$0xff] }
 0x473   : > { %6230 = vmatprep.mubr.msk.bf16.mxu1 %vm453_vm0, %v8615_v4 }
 0x47a   : > { %4137 = vmatmul.mubr.bf16.gmra.mxu1 %v3598_v47 }
 0x486   : > { %v3800_v27 = vpop.f32.mrf.mxu1 }
 0x488   : > { %v3802_v59 = vpop.f32.mrf.mxu1 }
 0x48a   : > { %v3803_v31 = vpop.f32.mrf.mxu1 }
 0x48c   : > { %v3805_v46 = vpop.f32.mrf.mxu1 }
 0x4bd   : > { %v3808_v24 = vpop.f32.mrf.mxu1 }
 0x4bf   : > { %v3810_v44 = vpop.f32.mrf.mxu1 }
 0x4c1   : > { %v3811_v12 = vpop.f32.mrf.mxu1 }
 0x4c3   : > { %v3813_v2 = vpop.f32.mrf.mxu1 }
 0x4dd   : > { %v3816_v19 = vpop.f32.mrf.mxu1 }
 0x4df   : > { %v3818_v28 = vpop.f32.mrf.mxu1 }
 0x4e1   : > { %v8700_v20 = vpop.f32.mrf.mxu1 }
 0x4e3   : > { %v3821_v54 = vpop.f32.mrf.mxu1 }
 0x4ea   : > { %v8702_v8 = vpop.f32.mrf.mxu1 }
 0x4ec   : > { %v3826_v29 = vpop.f32.mrf.mxu1 }
 0x4ee   : > { %v8704_v17 = vpop.f32.mrf.mxu1 }
 0x4f0   : > { %v3829_v34 = vpop.f32.mrf.mxu1 }
 0x4f2   : > { %v3949_v51 = vpop.f32.mrf.mxu1 }
 0x4f3   : > { %v3950_v57 = vadd.f32 %v3949_v51, %v3800_v27 }
 0x4f4   : > { %v3951_v21 = vpop.f32.mrf.mxu1 }
 0x4f6   : > { %v3952_v6 = vpop.f32.mrf.mxu1 }
 0x4f7   : > { %v3953_v48 = vadd.f32 %v3952_v6, %v3803_v31 }
 0x4f8   : > { %v3954_v25 = vpop.f32.mrf.mxu1 }
 0x4fa   : > { %v3957_v63 = vpop.f32.mrf.mxu1 }
 0x4fb   : > { %v3958_v49 = vadd.f32 %v3957_v63, %v3808_v24 }
 0x4fc   : > { %v3959_v38 = vpop.f32.mrf.mxu1 }
 0x4fe   : > { %v3960_v11 = vpop.f32.mrf.mxu1 }
 0x4ff   : > { %v3961_v42 = vadd.f32 %v3960_v11, %v3811_v12 }
 0x500   : > { %v3962_v50 = vpop.f32.mrf.mxu1 }
 0x502   : > { %v3965_v3 = vpop.f32.mrf.mxu1 }
 0x503   : > { %v3966_v30 = vadd.f32 %v3965_v3, %v3816_v19 }
 0x504   : > { %v3967_v61 = vpop.f32.mrf.mxu1 }
 0x506   : > { %v3968_v16 = vpop.f32.mrf.mxu1 }
 0x507   : > { %v3969_v19 = vadd.f32 %v3968_v16, %v8700_v20 }
 0x508   : > { %v3970_v55 = vpop.f32.mrf.mxu1 }
 0x50a   : > { %v8706_v14 = vpop.f32.mrf.mxu1 }
 0x50b   : > { %v3974_v16 = vadd.f32 %v8706_v14, %v8702_v8 }
 0x50c   : > { %v3975_v4 = vpop.f32.mrf.mxu1 }
 0x50e   : > { %v8708_v52 = vpop.f32.mrf.mxu1 }
 0x510   : > { %v3978_v32 = vpop.f32.mrf.mxu1 }
 0x522   : > { %v4114_v45 = vpop.f32.mrf.mxu1 }
 0x523   : > { %v4145_v35 = vadd.f32 %v4114_v45, %v3950_v57 }
 0x524   : > { %v4116_v18 = vpop.f32.mrf.mxu1 }
 0x525   : > { %v4160_v5 = vadd.f32 %v8713_v58, %v4145_v35  ;;  %v3977_v18 = vadd.f32 %v8708_v52, %v8704_v17 }
 0x526   : > { %v4117_v9 = vpop.f32.mrf.mxu1 }
 0x527   : > { %v4146_v39 = vadd.f32 %v4117_v9, %v3953_v48  ;;  %v4176_v26 = vmul.f32 0.2, %v4160_v5  ;;  %vm4168_vm14 = vcmp.gt.f32.partialorder %v4160_v5, 0.0 }
 0x528   : > { %v4119_v22 = vpop.f32.mrf.mxu1 }
 0x529   : > { %v4161_v33 = vadd.f32 %v8713_v58, %v4146_v39  ;;  %v4184_v23 = vsel %vm4168_vm14, %v4160_v5, %v4176_v26 }
 0x52a   : > { %v4122_v62 = vpop.f32.mrf.mxu1 }
 0x52b   : > { %vm4169_vm15 = vcmp.gt.f32.partialorder %v4161_v33, 0.0  ;;  %v4177_v47 = vmul.f32 0.2, %v4161_v33  ;;  %v4147_v36 = vadd.f32 %v4122_v62, %v3958_v49 }
 0x52c   : > { %v4124_v1 = vpop.f32.mrf.mxu1 }
 0x52d   : > { %v4185_v60 = vsel %vm4169_vm15, %v4161_v33, %v4177_v47  ;;  %v4162_v10 = vadd.f32 %v8713_v58, %v4147_v36 }
 0x52e   : > { %v4192_v43 = vmax.f32 %v4184_v23, %v4185_v60  ;;  %v4125_v53 = vpop.f32.mrf.mxu1 }
 0x52f   : > { %v4148_v37 = vadd.f32 %v4125_v53, %v3961_v42  ;;  %v4178_v56 = vmul.f32 0.2, %v4162_v10  ;;  %vm4170_vm3 = vcmp.gt.f32.partialorder %v4162_v10, 0.0 }
 0x530   : > { %v4200_v41 = vcombine.high %v4192_v43, %v4192_v43  ;;  %v4207_v13 = vrot.slane %v4192_v43, %v7715_v15  ;;  %v4127_v40 = vpop.f32.mrf.mxu1 }
 0x531   : > { %v4163_v27 = vadd.f32 %v8713_v58, %v4148_v37  ;;  %v4186_v51 = vsel %vm4170_vm3, %v4162_v10, %v4178_v56  ;;  %vm540_vm3 = vcmask 519168  }
 0x532   : > { %v4130_v59 = vpop.f32.mrf.mxu1  ;;  %v6232_v31 = vrot.slane %v4207_v13, 9  ;;  %v4215_v46 = vcombine.high %v4207_v13, %v4207_v13  ;;  %v4214_v24 = vrot.slane %v4200_v41, %v7715_v15 }
 0x533   : > { %vm4171_vm5 = vcmp.gt.f32.partialorder %v4163_v27, 0.0  ;;  %v4179_v44 = vmul.f32 0.2, %v4163_v27  ;;  %v4149_v12 = vadd.f32 %v4130_v59, %v3966_v30 }
 0x534   : > { %v4132_v2 = vpop.f32.mrf.mxu1  ;;  %v8721_v28 = vmax.f32 %v4207_v13, %v6232_v31  ;;  %v6233_v54 = vrot.slane %v4215_v46, 9  ;;  %v6234_v29 = vrot.slane %v4214_v24, 9  ;;  %v4216_v34 = vcombine.high %v4214_v24, %v4214_v24 }
 0x535   : > { %v4187_v21 = vsel %vm4171_vm5, %v4163_v27, %v4179_v44  ;;  %v4164_v6 = vadd.f32 %v8713_v58, %v4149_v12  ;;  %vm524_vm5 = vcmask 521216  }
 0x536   : > { %v4193_v25 = vmax.f32 %v4186_v51, %v4187_v21  ;;  %v4133_v63 = vpop.f32.mrf.mxu1  ;;  %4364 = vrot.lane.b32.xlu1 %v8721_v28, %s9427_s20  ;;  %v8727_v38 = vmax.f32 %v4215_v46, %v6233_v54  ;;  %v8729_v50 = vmax.f32 %v4214_v24, %v6234_v29  ;;  %v6235_v20 = vrot.slane %v4216_v34, 9 }
 0x537   : > { %v4150_v11 = vadd.f32 %v4133_v63, %v3969_v19  ;;  %v4180_v55 = vmul.f32 0.2, %v4164_v6  ;;  %vm4172_vm7 = vcmp.gt.f32.partialorder %v4164_v6, 0.0 }
 0x538   : > { %v4217_v3 = vcombine.high %v4193_v25, %v4193_v25  ;;  %v4224_v61 = vrot.slane %v4193_v25, %v7715_v15  ;;  %v4135_v4 = vpop.f32.mrf.mxu1  ;;  %4366 = vrot.lane.b32.xlu0 %v8727_v38, %s9427_s20  ;;  %v8742_v22 = vmax.f32 %v4216_v34, %v6235_v20 }
 0x539   : > { %v4165_v32 = vadd.f32 %v8713_v58, %v4150_v11  ;;  %v4188_v9 = vsel %vm4172_vm7, %v4164_v6, %v4180_v55 }
 0x53a   : > { %v4138_v57 = vpop.f32.mrf.mxu1  ;;  %4368 = vrot.lane.b32.xlu1 %v8729_v50, %s9427_s20  ;;  %v4232_v45 = vcombine.high %v4224_v61, %v4224_v61  ;;  %v4231_v35 = vrot.slane %v4217_v3, %v7715_v15  ;;  %v6236_v14 = vrot.slane %v4224_v61, 9 }
 0x53b   : > { %vm4173_vm12 = vcmp.gt.f32.partialorder %v4165_v32, 0.0  ;;  %v4181_v48 = vmul.f32 0.2, %v4165_v32  ;;  %v4151_v5 = vadd.f32 %v4138_v57, %v3974_v16 }
 0x53c   : > { %v4140_v39 = vpop.f32.mrf.mxu1  ;;  %v6237_v8 = vrot.slane %v4232_v45, 9  ;;  %v6238_v33 = vrot.slane %v4231_v35, 9  ;;  %v4233_v62 = vcombine.high %v4231_v35, %v4231_v35  ;;  %v8752_v60 = vmax.f32 %v4224_v61, %v6236_v14 }
 0x53d   : > { %v4189_v49 = vsel %vm4173_vm12, %v4165_v32, %v4181_v48  ;;  %v4166_v26 = vadd.f32 %v8713_v58, %v4151_v5  ;;  %v9429_v5 = vmov 0.0  }
 0x53e   : > { %v4194_v47 = vmax.f32 %v4188_v9, %v4189_v49  ;;  %v4141_v36 = vpop.f32.mrf.mxu1  ;;  %4370 = vrot.lane.b32.xlu1 %v8742_v22, %s9427_s20  ;;  %v8747_v17 = vmax.f32 %v4232_v45, %v6237_v8  ;;  %v8755_v53 = vmax.f32 %v4231_v35, %v6238_v33  ;;  %v6239_v37 = vrot.slane %v4233_v62, 9  ;;  %541 = vst.msk [vmem:[#allocation5] sm:$0xf] %vm540_vm3, %v9429_v5 }
 0x53f   : > { %v4152_v52 = vadd.f32 %v4141_v36, %v3977_v18  ;;  %v4182_v10 = vmul.f32 0.2, %v4166_v26  ;;  %vm4174_vm14 = vcmp.gt.f32.partialorder %v4166_v26, 0.0  ;;  %543 = vst.msk [vmem:[#allocation5 + $0xc] sm:$0xf] %vm540_vm3, %v9429_v5 }
 0x540   : > { %v4234_v1 = vcombine.high %v4194_v47, %v4194_v47  ;;  %v4241_v42 = vrot.slane %v4194_v47, %v7715_v15  ;;  %v4143_v23 = vpop.f32.mrf.mxu1  ;;  %4374 = vrot.lane.b32.xlu0 %v8747_v17, %s9427_s20  ;;  %v8766_v46 = vmax.f32 %v4233_v62, %v6239_v37  ;;  %544 = vst.msk [vmem:[#allocation5] sm:$0x1] %vm462_vm2, %v9429_v5  ;;  %547 = vst.msk [vmem:[#allocation5 + $0xc] sm:$0x1] %vm462_vm2, %v9429_v5 }
 0x541   : > { %v4167_v43 = vadd.f32 %v8713_v58, %v4152_v52  ;;  %v4190_v58 = vsel %vm4174_vm14, %v4166_v26, %v4182_v10  ;;  %548 = vst.msk [vmem:[#allocation5 + $0x3] sm:$0x1] %vm462_vm2, %v9429_v5  ;;  %551 = vst.msk [vmem:[#allocation5 + $0xf] sm:$0x1] %vm462_vm2, %v9429_v5 }
 0x542   : > { %4372 = vrot.lane.b32.xlu1 %v8752_v60, %s9427_s20  ;;  %v6240_v41 = vrot.slane %v4241_v42, 9  ;;  %v4248_v13 = vrot.slane %v4234_v1, %v7715_v15  ;;  %v4249_v40 = vcombine.high %v4241_v42, %v4241_v42  ;;  %525 = vst.msk [vmem:[#allocation4] sm:$0x3f] %vm524_vm5, %v9429_v5  ;;  %527 = vst.msk [vmem:[#allocation4 + $0x28] sm:$0x3f] %vm524_vm5, %v9429_v5 }
 0x543   : > { %vm4175_vm15 = vcmp.gt.f32.partialorder %v4167_v43, 0.0  ;;  %v4183_v30 = vmul.f32 0.2, %v4167_v43  ;;  %534 = vst.msk [vmem:[#allocation4 + $0x5] sm:$0x1] %vm462_vm2, %v9429_v5 }
 0x544   : > { %4376 = vrot.lane.b32.xlu0 %v8755_v53, %s9427_s20  ;;  %v8762_v56 = vmax.f32 %v4241_v42, %v6240_v41  ;;  %v6242_v27 = vrot.slane %v4248_v13, 9  ;;  %v6241_v24 = vrot.slane %v4249_v40, 9  ;;  %v4250_v54 = vcombine.high %v4248_v13, %v4248_v13  ;;  %528 = vst.msk [vmem:[#allocation4] sm:$0x1] %vm462_vm2, %v9429_v5  ;;  %533 = vst.msk [vmem:[#allocation4 + $0x28] sm:$0x1] %vm462_vm2, %v9429_v5 }
 0x545   : > { %v4191_v59 = vsel %vm4175_vm15, %v4167_v43, %v4183_v30  ;;  %539 = vst.msk [vmem:[#allocation4 + $0x2d] sm:$0x1] %vm462_vm2, %v9429_v5 }
 0x546   : > { %v4195_v31 = vmax.f32 %v4190_v58, %v4191_v59  ;;  %4380 = vrot.lane.b32.xlu1 %v8762_v56, %s9427_s20  ;;  %v8771_v2 = vmax.f32 %v4248_v13, %v6242_v27  ;;  %v8775_v29 = vmax.f32 %v4249_v40, %v6241_v24  ;;  %v6243_v25 = vrot.slane %v4250_v54, 9 }
 0x548   : > { %v4251_v44 = vcombine.high %v4195_v31, %v4195_v31  ;;  %v4258_v12 = vrot.slane %v4195_v31, %v7715_v15  ;;  %4378 = vrot.lane.b32.xlu0 %v8766_v46, %s9427_s20  ;;  %v8788_v61 = vmax.f32 %v4250_v54, %v6243_v25 }
 0x54a   : > { %4384 = vrot.lane.b32.xlu1 %v8771_v2, %s9427_s20  ;;  %v6244_v34 = vrot.slane %v4258_v12, 9  ;;  %v4266_v19 = vcombine.high %v4258_v12, %v4258_v12  ;;  %v4265_v51 = vrot.slane %v4251_v44, %v7715_v15 }
 0x54c   : > { %4382 = vrot.lane.b32.xlu0 %v8775_v29, %s9427_s20  ;;  %v8780_v21 = vmax.f32 %v4258_v12, %v6244_v34  ;;  %v6245_v6 = vrot.slane %v4266_v19, 9  ;;  %v6246_v11 = vrot.slane %v4265_v51, 9  ;;  %v4267_v3 = vcombine.high %v4265_v51, %v4265_v51 }
 0x54e   : > { %4388 = vrot.lane.b32.xlu1 %v8780_v21, %s9427_s20  ;;  %v8784_v63 = vmax.f32 %v4266_v19, %v6245_v6  ;;  %v8792_v55 = vmax.f32 %v4265_v51, %v6246_v11  ;;  %v6247_v4 = vrot.slane %v4267_v3, 9 }
 0x550   : > { %4390 = vrot.lane.b32.xlu0 %v8784_v63, %s9427_s20  ;;  %v8796_v20 = vmax.f32 %v4267_v3, %v6247_v4 }
 0x552   : > { %4386 = vrot.lane.b32.xlu1 %v8788_v61, %s9427_s20 }
 0x554   : > { %4392 = vrot.lane.b32.xlu0 %v8792_v55, %s9427_s20 }
 0x558   : > { %4394 = vrot.lane.b32.xlu0 %v8796_v20, %s9427_s20 }
 0x5a8   : > { %v4365_v16 = vpop.permute.xlu1 %4364 }
 0x5a9   : > { %v4412_v57 = vmax.f32 %v8721_v28, %v4365_v16  ;;  %v6707_v16 = vld [vmem:[%s9351_s6 + $0x98] sm:$0xff]  }
 0x5aa   : > { %v4367_v32 = vpop.permute.xlu0 %4366  ;;  %4796 = vmatpush1.bf16.msra.mxu0 %v6707_v16 }
 0x5ab   : > { %v4413_v45 = vmax.f32 %v8727_v38, %v4367_v32  ;;  %v4447_v9 = vrot.slane %v4412_v57, %v8052_v7  ;;  %4797 = vmatprep.subr.bf16.mxu0 %v9424_v0  ;;  %v6710_v57 = vld [vmem:[%s9351_s6 + $0x90] sm:$0xff]  }
 0x5ac   : > { %v4369_v35 = vpop.permute.xlu1 %4368 }
 0x5ad   : > { %v4451_v18 = vrot.slane %v4413_v45, %v8052_v7  ;;  %v4414_v48 = vmax.f32 %v8729_v50, %v4369_v35  ;;  %v6712_v45 = vld [vmem:[%s9351_s6 + $0x88] sm:$0xff]   ;;  %v6717_v35 = vld [vmem:[%s9351_s6 + $0x38] sm:$0xff]  }
 0x5ae   : > { %4798 = vmatpush1.bf16.msra.mxu0 %v6710_v57  ;;  %4912 = vmatpush1.bf16.msra.mxu1 %v6717_v35 }
 0x5af   : > { %v4455_v28 = vrot.slane %v4414_v48, %v8052_v7  ;;  %v4508_v50 = vsel %vm3199_vm9, %v4451_v18, %v4447_v9  ;;  %4799 = vmatprep.subr.bf16.mxu0 %v9424_v0  ;;  %v6713_v18 = vld [vmem:[%s9351_s6 + $0x80] sm:$0xff]   ;;  %v6719_v48 = vld [vmem:[%s9351_s6 + $0x30] sm:$0xff]   ;;  %4913 = vmatprep.subr.bf16.mxu1 %v9424_v0  ;;  %v6714_v9 = vld [vmem:[%s9351_s6 + $0x78] sm:$0xff]  }
 0x5b0   : > { %v4371_v38 = vpop.permute.xlu1 %4370 }
 0x5b1   : > { %v4415_v39 = vmax.f32 %v8742_v22, %v4371_v38  ;;  %v4509_v49 = vsel %vm3201_vm10, %v4455_v28, %v4508_v50  ;;  %v6720_v28 = vld [vmem:[%s9351_s6 + $0x28] sm:$0xff]   ;;  %v6715_v38 = vld [vmem:[%s9351_s6 + $0x70] sm:$0xff]   ;;  %v6721_v50 = vld [vmem:[%s9351_s6 + $0x20] sm:$0xff]  }
 0x5b2   : > { %v4375_v8 = vpop.permute.xlu0 %4374  ;;  %4800 = vmatpush1.bf16.msra.mxu0 %v6712_v45  ;;  %4914 = vmatpush1.bf16.msra.mxu1 %v6719_v48 }
 0x5b3   : > { %v4459_v14 = vrot.slane %v4415_v39, %v8052_v7  ;;  %v4417_v26 = vmax.f32 %v8747_v17, %v4375_v8  ;;  %4801 = vmatprep.subr.bf16.mxu0 %v9424_v0  ;;  %4915 = vmatprep.subr.bf16.mxu1 %v9424_v0  ;;  %v6716_v39 = vld [vmem:[%s9351_s6 + $0x68] sm:$0xff]   ;;  %v6723_v8 = vld [vmem:[%s9351_s6 + $0x18] sm:$0xff]  }
 0x5b4   : > { %v4373_v22 = vpop.permute.xlu1 %4372 }
 0x5b5   : > { %v4416_v33 = vmax.f32 %v8752_v60, %v4373_v22  ;;  %v8835_v62 = vsel %vm3203_vm11, %v4459_v14, %v4509_v49  ;;  %v4467_v42 = vrot.slane %v4417_v26, %v8052_v7  ;;  %v6718_v14 = vld [vmem:[%s9351_s6 + $0x60] sm:$0xff]   ;;  %v6724_v22 = vld [vmem:[%s9351_s6 + $0x10] sm:$0xff]   ;;  %v6722_v49 = vld [vmem:[%s9351_s6 + $0xb8] sm:$0xff]  }
 0x5b6   : > { %v4377_v47 = vpop.permute.xlu0 %4376  ;;  %4524 = vrot.lane.b32.xlu1 %v8835_v62, %s9427_s20  ;;  %4802 = vmatpush1.bf16.msra.mxu0 %v6713_v18 }
 0x5b7   : > { %v4463_v36 = vrot.slane %v4416_v33, %v8052_v7  ;;  %v4418_v52 = vmax.f32 %v8755_v53, %v4377_v47  ;;  %4803 = vmatprep.subr.bf16.mxu0 %v9424_v0  ;;  %4916 = vmatpush1.bf16.msra.mxu1 %v6720_v28  ;;  %v6725_v47 = vld [vmem:[%s9351_s6 + $0xb0] sm:$0xff]  }
 0x5b8   : > { %v4381_v1 = vpop.permute.xlu1 %4380  ;;  %4917 = vmatprep.subr.bf16.mxu1 %v9424_v0 }
 0x5b9   : > { %v4471_v23 = vrot.slane %v4418_v52, %v8052_v7  ;;  %v4511_v17 = vsel %vm3199_vm9, %v4467_v42, %v4463_v36  ;;  %v4420_v13 = vmax.f32 %v8762_v56, %v4381_v1  ;;  %v6726_v36 = vld [vmem:[%s9351_s6 + $0x8] sm:$0xff]  }
 0x5ba   : > { %v4379_v10 = vpop.permute.xlu0 %4378  ;;  %4536 = vrot.lane.b32.xlu1 %v8835_v62, %s9426_s15  ;;  %4804 = vmatpush1.bf16.msra.mxu0 %v6714_v9  ;;  %v4577_v9 = vld [vmem:[#allocation4] sm:$0xf] }
 0x5bb   : > { %v4419_v60 = vmax.f32 %v8766_v46, %v4379_v10  ;;  %v4512_v53 = vsel %vm3201_vm10, %v4471_v23, %v4511_v17  ;;  %v4479_v46 = vrot.slane %v4420_v13, %v8052_v7  ;;  %4805 = vmatprep.subr.bf16.mxu0 %v9424_v0  ;;  %4918 = vmatpush1.bf16.msra.mxu1 %v6721_v50  ;;  %v6727_v23 = vld [vmem:[%s9351_s6] sm:$0xff]  }
 0x5bc   : > { %v4385_v43 = vpop.permute.xlu1 %4384  ;;  %4919 = vmatprep.subr.bf16.mxu1 %v9424_v0 }
 0x5bd   : > { %v4475_v37 = vrot.slane %v4419_v60, %v8052_v7  ;;  %v4422_v59 = vmax.f32 %v8771_v2, %v4385_v43  ;;  %v6728_v60 = vld [vmem:[%s9351_s6 + $0x58] sm:$0xff]   ;;  %v6729_v43 = vld [vmem:[%s9351_s6 + $0xa8] sm:$0xff]  }
 0x5be   : > { %v4383_v41 = vpop.permute.xlu0 %4382  ;;  %4548 = vrot.lane.b32.xlu1 %v8835_v62, %s9430_s2  ;;  %4806 = vmatpush1.bf16.msra.mxu0 %v6715_v38 }
 0x5bf   : > { %v4421_v40 = vmax.f32 %v8775_v29, %v4383_v41  ;;  %v8854_v30 = vsel %vm3203_vm11, %v4475_v37, %v4512_v53  ;;  %v4487_v54 = vrot.slane %v4422_v59, %v8052_v7  ;;  %4807 = vmatprep.subr.bf16.mxu0 %v9424_v0  ;;  %4920 = vmatpush1.bf16.msra.mxu1 %v6723_v8  ;;  %v6730_v37 = vld [vmem:[%s9351_s6 + $0x50] sm:$0xff]  }
 0x5c0   : > { %4526 = vrot.lane.b32.xlu0 %v8854_v30, %s9427_s20  ;;  %v4389_v27 = vpop.permute.xlu1 %4388  ;;  %4921 = vmatprep.subr.bf16.mxu1 %v9424_v0 }
 0x5c1   : > { %v4483_v58 = vrot.slane %v4421_v40, %v8052_v7  ;;  %v4424_v34 = vmax.f32 %v8780_v21, %v4389_v27 }
 0x5c2   : > { %v4391_v31 = vpop.permute.xlu0 %4390  ;;  %4808 = vmatpush1.bf16.msra.mxu0 %v6716_v39 }
 0x5c3   : > { %v4514_v24 = vsel %vm3199_vm9, %v4483_v58, %v4479_v46  ;;  %v4425_v44 = vmax.f32 %v8784_v63, %v4391_v31  ;;  %v4495_v21 = vrot.slane %v4424_v34, %v8052_v7  ;;  %4809 = vmatprep.subr.bf16.mxu0 %v9424_v0  ;;  %4922 = vmatpush1.bf16.msra.mxu1 %v6724_v22  ;;  %v6732_v46 = vld [vmem:[%s9351_s6 + $0x40] sm:$0xff]  }
 0x5c4   : > { %4538 = vrot.lane.b32.xlu0 %v8854_v30, %s9426_s15  ;;  %v4387_v56 = vpop.permute.xlu1 %4386  ;;  %v4515_v51 = vsel %vm3201_vm10, %v4487_v54, %v4514_v24  ;;  %4923 = vmatprep.subr.bf16.mxu1 %v9424_v0  ;;  %v6733_v34 = vld [vmem:[%s9351_s6 + $0xa0] sm:$0xff]  }
 0x5c5   : > { %v4423_v12 = vmax.f32 %v8788_v61, %v4387_v56  ;;  %v4499_v6 = vrot.slane %v4425_v44, %v8052_v7 }
 0x5c6   : > { %v4393_v29 = vpop.permute.xlu0 %4392  ;;  %4810 = vmatpush1.bf16.msra.mxu0 %v6718_v14 }
 0x5c7   : > { %v4491_v2 = vrot.slane %v4423_v12, %v8052_v7  ;;  %v4426_v19 = vmax.f32 %v8792_v55, %v4393_v29  ;;  %v4517_v61 = vsel %vm3199_vm9, %v4499_v6, %v4495_v21  ;;  %4819 = vmatprep.subr.bf16.mxu0 %v9424_v0  ;;  %4924 = vmatpush1.bf16.msra.mxu1 %v6726_v36  ;;  %v4582_v36 = vld [vmem:[#allocation4 + $0x28] sm:$0xf] }
 0x5c8   : > { %4550 = vrot.lane.b32.xlu0 %v8854_v30, %s9430_s2  ;;  %4925 = vmatprep.subr.bf16.mxu1 %v9424_v0 }
 0x5c9   : > { %v8875_v25 = vsel %vm3203_vm11, %v4491_v2, %v4515_v51  ;;  %v4503_v63 = vrot.slane %v4426_v19, %v8052_v7 }
 0x5ca   : > { %v4395_v11 = vpop.permute.xlu0 %4394  ;;  %4528 = vrot.lane.b32.xlu1 %v8875_v25, %s9427_s20  ;;  %4820 = vmatpush2.bf16.msra.mxu0 %v6722_v49 }
 0x5cb   : > { %v4427_v3 = vmax.f32 %v8796_v20, %v4395_v11  ;;  %v4518_v4 = vsel %vm3201_vm10, %v4503_v63, %v4517_v61  ;;  %v4583_v20 = vld [vmem:[#allocation4 + $0x1] sm:$0xf]  ;;  %4821 = vmatprep.subr.bf16.mxu0 %v9424_v0  ;;  %4926 = vmatpush1.bf16.msra.mxu1 %v6727_v23  ;;  %vm4712_vm10 = vcmask 1045504  }
 0x5cc   : > { %4935 = vmatprep.subr.bf16.mxu1 %v9424_v0 }
 0x5cd   : > { %v4507_v55 = vrot.slane %v4427_v3, %v8052_v7  ;;  %v4588_v3 = vld [vmem:[#allocation4 + $0x29] sm:$0xf] }
 0x5ce   : > { %4540 = vrot.lane.b32.xlu1 %v8875_v25, %s9426_s15  ;;  %4822 = vmatpush2.bf16.msra.mxu0 %v6725_v47 }
 0x5cf   : > { %v8891_v32 = vsel %vm3203_vm11, %v4507_v55, %v4518_v4  ;;  %4823 = vmatprep.subr.bf16.mxu0 %v9424_v0  ;;  %4936 = vmatpush2.bf16.msra.mxu1 %v6728_v60 }
 0x5d0   : > { %4530 = vrot.lane.b32.xlu0 %v8891_v32, %s9427_s20  ;;  %4937 = vmatprep.subr.bf16.mxu1 %v9424_v0 }
 0x5d2   : > { %4552 = vrot.lane.b32.xlu1 %v8875_v25, %s9430_s2  ;;  %4824 = vmatpush2.bf16.msra.mxu0 %v6729_v43 }
 0x5d3   : > { %4825 = vmatprep.subr.bf16.mxu0 %v9424_v0  ;;  %4938 = vmatpush2.bf16.msra.mxu1 %v6730_v37 }
 0x5d4   : > { %4542 = vrot.lane.b32.xlu0 %v8891_v32, %s9426_s15  ;;  %4939 = vmatprep.subr.bf16.mxu1 %v9424_v0 }
 0x5d6   : > { %4601 = vrot.lane.b32.xlu1 %v4583_v20, %s9428_s23  ;;  %4826 = vmatpush2.bf16.msra.mxu0 %v6733_v34 }
 0x5d7   : > { %5059 = vmatprep.subr.bf16.mxu0 %v9424_v0 }
 0x5d8   : > { %4554 = vrot.lane.b32.xlu0 %v8891_v32, %s9430_s2  ;;  %s6786_s2 = sshll.u32 %s6856_s17, 4  ;;  %s6787_s2 = int_to_ptr.vmem [resolvable:$false] %s6786_s2 }
 0x5d9   : > { %s6788_s29 = scalar_lea.vmem %s6787_s2, 32 }
 0x628   : > { %v4525_v26 = vpop.permute.xlu1 %4524 }
 0x629   : > { %v4560_v52 = vsel %vm3447_vm4, %v8835_v62, %v4525_v26 }
 0x62c   : > { %v4537_v33 = vpop.permute.xlu1 %4536 }
 0x62d   : > { %v4564_v1 = vsel %vm3465_vm6, %v4560_v52, %v4537_v33 }
 0x630   : > { %v4549_v42 = vpop.permute.xlu1 %4548 }
 0x631   : > { %v4568_v10 = vsel %vm3483_vm8, %v4564_v1, %v4549_v42 }
 0x632   : > { %4573 = vst.msk [vmem:[#allocation4 + $0x9] sm:$0xf] %vm540_vm3, %v4568_v10  ;;  %v4527_v17 = vpop.permute.xlu0 %4526 }
 0x633   : > { %v4561_v41 = vsel %vm3447_vm4, %v8854_v30, %v4527_v17  ;;  %v6731_v30 = vld [vmem:[%s9351_s6 + $0x48] sm:$0xff]  }
 0x634   : > { %4940 = vmatpush2.bf16.msra.mxu1 %v6731_v30  ;;  %v6739_v30 = vld [vmem:[%s9351_s6 + $0xd0] sm:$0xff]  }
 0x635   : > { %4941 = vmatprep.subr.bf16.mxu1 %v9424_v0 }
 0x636   : > { %v4539_v62 = vpop.permute.xlu0 %4538 }
 0x637   : > { %v4565_v13 = vsel %vm3465_vm6, %v4561_v41, %v4539_v62  ;;  %v6734_v41 = vld [vmem:[%s9351_s6 + $0xf8] sm:$0xff]  }
 0x638   : > { %4942 = vmatpush2.bf16.msra.mxu1 %v6732_v46  ;;  %v6742_v46 = vld [vmem:[%s9351_s6 + $0x118] sm:$0xff]  }
 0x639   : > { %v4584_v53 = vld [vmem:[#allocation4 + $0x9] sm:$0xf]  ;;  %5441 = vmatprep.subr.bf16.mxu1 %v9424_v0 }
 0x63a   : > { %v4551_v40 = vpop.permute.xlu0 %4550  ;;  %4603 = vrot.lane.b32.xlu0 %v4584_v53, %s9428_s23  ;;  %v4578_v28 = vld [vmem:[#allocation4 + $0x8] sm:$0xf] }
 0x63b   : > { %v4569_v27 = vsel %vm3483_vm8, %v4565_v13, %v4551_v40  ;;  %v6735_v13 = vld [vmem:[%s9351_s6 + $0xf0] sm:$0xff]   ;;  %v6736_v40 = vld [vmem:[%s9351_s6 + $0xe8] sm:$0xff]  }
 0x63c   : > { %4574 = vst.msk [vmem:[#allocation4 + $0x11] sm:$0xf] %vm540_vm3, %v4569_v27  ;;  %v4529_v58 = vpop.permute.xlu1 %4528  ;;  %v6737_v27 = vld [vmem:[%s9351_s6 + $0xe0] sm:$0xff]  }
 0x63d   : > { %v4562_v56 = vsel %vm3447_vm4, %v8875_v25, %v4529_v58  ;;  %v6708_v25 = vld [vmem:[#allocation4 + $0x2] ss:$8 sps:$4 sm:$0xff]  }
 0x63e   : > { %v6738_v58 = vld [vmem:[%s9351_s6 + $0xd8] sm:$0xff]  }
 0x640   : > { %v4541_v59 = vpop.permute.xlu1 %4540 }
 0x641   : > { %v4566_v44 = vsel %vm3465_vm6, %v4562_v56, %v4541_v59  ;;  %v6740_v59 = vld [vmem:[%s9351_s6 + $0xc8] sm:$0xff]   ;;  %v6743_v56 = vld [vmem:[%s9351_s6 + $0x110] sm:$0xff]  }
 0x642   : > { %v4531_v31 = vpop.permute.xlu0 %4530 }
 0x643   : > { %v4585_v24 = vld [vmem:[#allocation4 + $0x11] sm:$0xf]  ;;  %v4563_v2 = vsel %vm3447_vm4, %v8891_v32, %v4531_v31 }
 0x644   : > { %4605 = vrot.lane.b32.xlu1 %v4585_v24, %s9428_s23  ;;  %v4553_v12 = vpop.permute.xlu1 %4552  ;;  %v4579_v8 = vld [vmem:[#allocation4 + $0x10] sm:$0xf]  ;;  %v6744_v24 = vld [vmem:[%s9351_s6 + $0x108] sm:$0xff]  }
 0x645   : > { %v4570_v54 = vsel %vm3483_vm8, %v4566_v44, %v4553_v12  ;;  %v6741_v31 = vld [vmem:[%s9351_s6 + $0xc0] sm:$0xff]  }
 0x646   : > { %4575 = vst.msk [vmem:[#allocation4 + $0x19] sm:$0xf] %vm540_vm3, %v4570_v54  ;;  %v4543_v29 = vpop.permute.xlu0 %4542  ;;  %v6745_v44 = vld [vmem:[%s9351_s6 + $0x100] sm:$0xff]  }
 0x647   : > { %v4567_v19 = vsel %vm3465_vm6, %v4563_v2, %v4543_v29 }
 0x648   : > { %v4602_v18 = vpop.permute.xlu1 %4601 }
 0x649   : > { %v4619_v39 = vsel %vm453_vm0, %v4577_v9, %v4602_v18 }
 0x64a   : > { %v4555_v51 = vpop.permute.xlu0 %4554 }
 0x64b   : > { %v4571_v6 = vsel %vm3483_vm8, %v4567_v19, %v4555_v51 }
 0x64c   : > { %4576 = vst.msk [vmem:[#allocation4 + $0x21] sm:$0xf] %vm540_vm3, %v4571_v6 }
 0x64d   : > { %v4586_v63 = vld [vmem:[#allocation4 + $0x19] sm:$0xf] }
 0x64e   : > { %v6709_v11 = vld [vmem:[#allocation4 + $0x12] ss:$8 sps:$4 sm:$0xff]   ;;  %4607 = vrot.lane.b32.xlu0 %v4586_v63, %s9428_s23 }
 0x64f   : > { %v4656_v21 = vpack.c.bf16 %v6709_v11, %v6708_v25  ;;  %v4580_v22 = vld [vmem:[#allocation4 + $0x18] sm:$0xf] }
 0x651   : > { %6303 = vmatprep.mubr.msk.bf16.mxu1 %vm453_vm0, %v4656_v21  ;;  %v4716_v16 = vrot.slane %v4656_v21, 2  ;;  %v4980_v20 = vrot.slane %v4656_v21, 4 }
 0x652   : > { %4611 = vrot.lane.b32.xlu0 %v4588_v3, %s9428_s23 }
 0x653   : > { %v4587_v61 = vld [vmem:[#allocation4 + $0x21] sm:$0xf] }
 0x654   : > { %v6711_v55 = vld [vmem:[#allocation4 + $0x22] ss:$8 sps:$4 sm:$0xff]   ;;  %4609 = vrot.lane.b32.xlu1 %v4587_v61, %s9428_s23  ;;  %v6341_v61 = vld [vmem:[%s9352_s7] ss:$0 sm:$0xff] }
 0x655   : > { %v4658_v4 = vpack.c.bf16 %v6711_v55, %v6711_v55  ;;  %v4581_v23 = vld [vmem:[#allocation4 + $0x20] sm:$0xf] }
 0x657   : > { %v4717_v32 = vrot.slane %v4658_v4, 2  ;;  %v4981_v57 = vrot.slane %v4658_v4, 4 }
 0x659   : > { %v4718_v45 = vsel %vm4712_vm10, %v4716_v16, %v4717_v32  ;;  %v4982_v35 = vsel %vm3659_vm13, %v4980_v20, %v4981_v57 }
 0x65a   : > { %6290 = vmatprep.mubr.msk.bf16.mxu0 %vm453_vm0, %v4718_v45 }
 0x6ac   : > { %v4604_v48 = vpop.permute.xlu0 %4603 }
 0x6ad   : > { %v4620_v50 = vsel %vm453_vm0, %v4578_v28, %v4604_v48 }
 0x6ae   : > { %v6248_v33 = vcombine.low %v4619_v39, %v4620_v50 }
 0x6b6   : > { %v4606_v38 = vpop.permute.xlu1 %4605 }
 0x6b7   : > { %v4621_v49 = vsel %vm453_vm0, %v4579_v8, %v4606_v38 }
 0x6c0   : > { %v4608_v14 = vpop.permute.xlu0 %4607 }
 0x6c1   : > { %v4622_v26 = vsel %vm453_vm0, %v4580_v22, %v4608_v14 }
 0x6c2   : > { %v6250_v47 = vcombine.low %v4621_v49, %v4622_v26 }
 0x6c4   : > { %v4655_v52 = vpack.c.bf16 %v6250_v47, %v6248_v33  ;;  %v4612_v1 = vpop.permute.xlu0 %4611 }
 0x6c5   : > { %v4624_v42 = vsel %vm453_vm0, %v4582_v36, %v4612_v1 }
 0x6c6   : > { %4944 = vmatmul.mubr.bf16.vlgmr.msra.gmra.mxu1 %v4655_v52  ;;  %v4610_v10 = vpop.permute.xlu1 %4609  ;;  %v4713_v43 = vrot.slane %v4655_v52, 2  ;;  %v4977_v54 = vrot.slane %v4655_v52, 4 }
 0x6c7   : > { %v4623_v17 = vsel %vm453_vm0, %v4581_v23, %v4610_v10 }
 0x6c8   : > { %v6252_v62 = vcombine.low %v4623_v17, %v4624_v42 }
 0x6ca   : > { %v4657_v60 = vpack.c.bf16 %v6252_v62, %v6252_v62 }
 0x6cc   : > { %v4714_v37 = vrot.slane %v4657_v60, 2  ;;  %v4978_v12 = vrot.slane %v4657_v60, 4 }
 0x6ce   : > { %v4715_v53 = vsel %vm4712_vm10, %v4713_v43, %v4714_v37  ;;  %v4979_v29 = vsel %vm3659_vm13, %v4977_v54, %v4978_v12  ;;  %v6750_v54 = vld [vmem:[%s9353_s8 + $0x28] sm:$0xff]  }
 0x6cf   : > { %4828 = vmatmul.mubr.bf16.vlgmr.msra.gmra.mxu0 %v4715_v53 }
 0x6d0   : > { %5060 = vmatpush1.bf16.msra.mxu0 %v6734_v41  ;;  %6340 = vmatprep.mubr.msk.bf16.mxu0 %vm453_vm0, %v4982_v35 }
 0x6d1   : > { %5061 = vmatprep.subr.bf16.mxu0 %v9424_v0 }
 0x6d4   : > { %5062 = vmatpush1.bf16.msra.mxu0 %v6735_v13 }
 0x6d5   : > { %5063 = vmatprep.subr.bf16.mxu0 %v9424_v0 }
 0x6d8   : > { %5064 = vmatpush1.bf16.msra.mxu0 %v6736_v40 }
 0x6d9   : > { %5065 = vmatprep.subr.bf16.mxu0 %v9424_v0 }
 0x6dc   : > { %5066 = vmatpush1.bf16.msra.mxu0 %v6737_v27 }
 0x6dd   : > { %5067 = vmatprep.subr.bf16.mxu0 %v9424_v0 }
 0x6e0   : > { %5068 = vmatpush1.bf16.msra.mxu0 %v6738_v58 }
 0x6e1   : > { %5069 = vmatprep.subr.bf16.mxu0 %v9424_v0 }
 0x6e4   : > { %5070 = vmatpush1.bf16.msra.mxu0 %v6739_v30  ;;  %v6746_v30 = vld [vmem:[%s9353_s8 + $0x38] sm:$0xff]  }
 0x6e5   : > { %5071 = vmatprep.subr.bf16.mxu0 %v9424_v0 }
 0x6e8   : > { %5072 = vmatpush1.bf16.msra.mxu0 %v6740_v59  ;;  %v6747_v59 = vld [vmem:[%s9353_s8 + $0x98] sm:$0xff]  }
 0x6e9   : > { %5073 = vmatprep.subr.bf16.mxu0 %v9424_v0  ;;  %5442 = vmatpush1.bf16.msra.mxu1 %v6747_v59 }
 0x6ea   : > { %5443 = vmatprep.subr.bf16.mxu1 %v9424_v0 }
 0x6ec   : > { %5074 = vmatpush1.bf16.msra.mxu0 %v6741_v31 }
 0x6ed   : > { %5083 = vmatprep.subr.bf16.mxu0 %v9424_v0 }
 0x6f0   : > { %5084 = vmatpush2.bf16.msra.mxu0 %v6742_v46 }
 0x6f1   : > { %5085 = vmatprep.subr.bf16.mxu0 %v9424_v0 }
 0x6f4   : > { %5086 = vmatpush2.bf16.msra.mxu0 %v6743_v56  ;;  %v5222_v56 = vld [vmem:[#allocation5 + $0x1] sm:$0x3] }
 0x6f5   : > { %5087 = vmatprep.subr.bf16.mxu0 %v9424_v0 }
 0x6f8   : > { %5088 = vmatpush2.bf16.msra.mxu0 %v6744_v24  ;;  %v6748_v24 = vld [vmem:[%s9353_s8 + $0x30] sm:$0xff]  }
 0x6f9   : > { %5089 = vmatprep.subr.bf16.mxu0 %v9424_v0 }
 0x6fc   : > { %5090 = vmatpush2.bf16.msra.mxu0 %v6745_v44  ;;  %v6749_v44 = vld [vmem:[%s9353_s8 + $0x90] sm:$0xff]  }
 0x6fd   : > { %5556 = vmatprep.subr.bf16.mxu0 %v9424_v0  ;;  %5444 = vmatpush1.bf16.msra.mxu1 %v6749_v44 }
 0x6fe   : > { %5445 = vmatprep.subr.bf16.mxu1 %v9424_v0 }
 0x6ff   : > { %5092 = vmatmul.mubr.bf16.vlgmr.msra.gmra.mxu0 %v4979_v29  ;;  %v6751_v29 = vld [vmem:[%s9353_s8 + $0x88] sm:$0xff]  }
 0x700   : > { %5557 = vmatpush1.bf16.msra.mxu0 %v6746_v30 }
 0x701   : > { %5558 = vmatprep.subr.bf16.mxu0 %v9424_v0  ;;  %5446 = vmatpush1.bf16.msra.mxu1 %v6751_v29  ;;  %v6770_v29 = vld [vmem:[%s9353_s8 + $0xf8] sm:$0xff]  }
 0x702   : > { %5447 = vmatprep.subr.bf16.mxu1 %v9424_v0 }
 0x704   : > { %5559 = vmatpush1.bf16.msra.mxu0 %v6748_v24 }
 0x705   : > { %5560 = vmatprep.subr.bf16.mxu0 %v9424_v0 }
 0x708   : > { %5561 = vmatpush1.bf16.msra.mxu0 %v6750_v54 }
 0x709   : > { %5562 = vmatprep.subr.bf16.mxu0 %v9424_v0 }
 0x786   : > { %v4945_v34 = vpop.f32.mrf.mxu1 }
 0x788   : > { %v4947_v2 = vpop.f32.mrf.mxu1 }
 0x789   : > { %v6753_v2 = vld [vmem:[%s9353_s8 + $0x80] sm:$0xff]  }
 0x78a   : > { %v4948_v19 = vpop.f32.mrf.mxu1  ;;  %5448 = vmatpush1.bf16.msra.mxu1 %v6753_v2  ;;  %v6772_v2 = vld [vmem:[%s9353_s8 + $0xe8] sm:$0xff]  }
 0x78b   : > { %5449 = vmatprep.subr.bf16.mxu1 %v9424_v0 }
 0x78c   : > { %v4950_v51 = vpop.f32.mrf.mxu1 }
 0x78d   : > { %v6755_v51 = vld [vmem:[%s9353_s8 + $0x78] sm:$0xff]  }
 0x78e   : > { %5450 = vmatpush1.bf16.msra.mxu1 %v6755_v51  ;;  %v6774_v51 = vld [vmem:[%s9353_s8 + $0xd8] sm:$0xff]  }
 0x78f   : > { %v4829_v6 = vpop.f32.mrf.mxu0  ;;  %5451 = vmatprep.subr.bf16.mxu1 %v9424_v0 }
 0x790   : > { %v4946_v21 = vadd.f32 %v4945_v34, %v4829_v6  ;;  %v6752_v34 = vld [vmem:[%s9353_s8 + $0x20] sm:$0xff]   ;;  %v6756_v6 = vld [vmem:[%s9353_s8 + $0x10] sm:$0xff]  }
 0x791   : > { %v4831_v25 = vpop.f32.mrf.mxu0  ;;  %5563 = vmatpush1.bf16.msra.mxu0 %v6752_v34 }
 0x792   : > { %5564 = vmatprep.subr.bf16.mxu0 %v9424_v0  ;;  %v6757_v25 = vld [vmem:[%s9353_s8 + $0x70] sm:$0xff]  }
 0x793   : > { %v4832_v63 = vpop.f32.mrf.mxu0  ;;  %5452 = vmatpush1.bf16.msra.mxu1 %v6757_v25  ;;  %v6776_v25 = vld [vmem:[%s9353_s8 + $0xc8] sm:$0xff]  }
 0x794   : > { %v4949_v16 = vadd.f32 %v4948_v19, %v4832_v63  ;;  %v6754_v19 = vld [vmem:[%s9353_s8 + $0x18] sm:$0xff]   ;;  %v6758_v63 = vld [vmem:[%s9353_s8 + $0x8] sm:$0xff]   ;;  %5453 = vmatprep.subr.bf16.mxu1 %v9424_v0 }
 0x795   : > { %v4834_v11 = vpop.f32.mrf.mxu0  ;;  %5565 = vmatpush1.bf16.msra.mxu0 %v6754_v19  ;;  %v6773_v19 = vld [vmem:[%s9353_s8 + $0xe0] sm:$0xff]  }
 0x796   : > { %5566 = vmatprep.subr.bf16.mxu0 %v9424_v0  ;;  %v6759_v11 = vld [vmem:[%s9353_s8 + $0x68] sm:$0xff]  }
 0x797   : > { %5454 = vmatpush1.bf16.msra.mxu1 %v6759_v11  ;;  %v6778_v11 = vld [vmem:[%s9353_s8 + $0x118] sm:$0xff]  }
 0x798   : > { %5455 = vmatprep.subr.bf16.mxu1 %v9424_v0 }
 0x799   : > { %5567 = vmatpush1.bf16.msra.mxu0 %v6756_v6  ;;  %v6775_v6 = vld [vmem:[%s9353_s8 + $0xd0] sm:$0xff]  }
 0x79a   : > { %5568 = vmatprep.subr.bf16.mxu0 %v9424_v0 }
 0x79d   : > { %5569 = vmatpush1.bf16.msra.mxu0 %v6758_v63  ;;  %v6777_v63 = vld [vmem:[%s9353_s8 + $0xc0] sm:$0xff]  }
 0x79e   : > { %5570 = vmatprep.subr.bf16.mxu0 %v9424_v0 }
 0x7bf   : > { %v5093_v3 = vpop.f32.mrf.mxu0 }
 0x7c0   : > { %v5100_v55 = vadd.f32 %v5093_v3, %v4946_v21  ;;  %v6760_v21 = vld [vmem:[%s9353_s8] sm:$0xff]  }
 0x7c1   : > { %v5095_v4 = vpop.f32.mrf.mxu0  ;;  %5571 = vmatpush1.bf16.msra.mxu0 %v6760_v21  ;;  %v6761_v3 = vld [vmem:[%s9353_s8 + $0x60] sm:$0xff]   ;;  %v6779_v21 = vld [vmem:[%s9353_s8 + $0x110] sm:$0xff]  }
 0x7c2   : > { %v5109_v32 = vadd.f32 %v6341_v61, %v5100_v55  ;;  %5580 = vmatprep.subr.bf16.mxu0 %v9424_v0  ;;  %5456 = vmatpush1.bf16.msra.mxu1 %v6761_v3  ;;  %v6763_v55 = vld [vmem:[%s9353_s8 + $0xb8] sm:$0xff]   ;;  %v6780_v3 = vld [vmem:[%s9353_s8 + $0x108] sm:$0xff]  }
 0x7c3   : > { %v5096_v20 = vpop.f32.mrf.mxu0  ;;  %5465 = vmatprep.subr.bf16.mxu1 %v9424_v0 }
 0x7c4   : > { %vm5111_vm11 = vcmp.gt.f32.partialorder %v5109_v32, 0.0  ;;  %v5113_v57 = vmul.f32 0.2, %v5109_v32  ;;  %v5101_v45 = vadd.f32 %v5096_v20, %v4949_v16  ;;  %v6765_v20 = vld [vmem:[%s9353_s8 + $0xb0] sm:$0xff]  }
 0x7c5   : > { %v5098_v35 = vpop.f32.mrf.mxu0 }
 0x7c6   : > { %v5115_v18 = vsel %vm5111_vm11, %v5109_v32, %v5113_v57  ;;  %v5110_v48 = vadd.f32 %v6341_v61, %v5101_v45  ;;  %v6762_v61 = vld [vmem:[%s9353_s8 + $0x58] sm:$0xff]   ;;  %5466 = vmatpush2.bf16.msra.mxu1 %v6763_v55  ;;  %v6764_v32 = vld [vmem:[%s9353_s8 + $0x50] sm:$0xff]   ;;  %v6766_v35 = vld [vmem:[%s9353_s8 + $0x48] sm:$0xff]  }
 0x7c7   : > { %v5119_v9 = vcombine.high %v5115_v18, %v5115_v18  ;;  %5581 = vmatpush2.bf16.msra.mxu0 %v6762_v61  ;;  %5467 = vmatprep.subr.bf16.mxu1 %v9424_v0  ;;  %v6781_v61 = vld [vmem:[%s9353_s8 + $0x100] sm:$0xff]  }
 0x7c8   : > { %vm5112_vm4 = vcmp.gt.f32.partialorder %v5110_v48, 0.0  ;;  %v5114_v28 = vmul.f32 0.2, %v5110_v48  ;;  %5582 = vmatprep.subr.bf16.mxu0 %v9424_v0 }
 0x7c9   : > { %v5123_v38 = vmax.f32 %v5115_v18, %v5119_v9  ;;  %v6767_v18 = vld [vmem:[%s9353_s8 + $0xa8] sm:$0xff]   ;;  %v6768_v9 = vld [vmem:[%s9353_s8 + $0x40] sm:$0xff]  }
 0x7ca   : > { %v5116_v50 = vsel %vm5112_vm4, %v5110_v48, %v5114_v28  ;;  %5468 = vmatpush2.bf16.msra.mxu1 %v6765_v20  ;;  %v5225_v28 = vld [vmem:[#allocation5 + $0xd] sm:$0x3]  ;;  %v5761_v20 = vld [vmem:[%s9355_s10 + $0x18] sm:$0xff] }
 0x7cb   : > { %v5133_v39 = vrot.slane %v5123_v38, %v7715_v15  ;;  %v5120_v8 = vcombine.high %v5116_v50, %v5116_v50  ;;  %5583 = vmatpush2.bf16.msra.mxu0 %v6764_v32  ;;  %5469 = vmatprep.subr.bf16.mxu1 %v9424_v0  ;;  %v6769_v38 = vld [vmem:[%s9353_s8 + $0xa0] sm:$0xff]  }
 0x7cc   : > { %5584 = vmatprep.subr.bf16.mxu0 %v9424_v0  ;;  %v5762_v32 = vld [vmem:[%s9355_s10 + $0x20] sm:$0xff] }
 0x7cd   : > { %v5124_v14 = vmax.f32 %v5116_v50, %v5120_v8  ;;  %v6342_v22 = vrot.slane %v5133_v39, 9  ;;  %v5134_v49 = vcombine.high %v5133_v39, %v5133_v39 }
 0x7ce   : > { %5470 = vmatpush2.bf16.msra.mxu1 %v6767_v18  ;;  %v5766_v18 = vld [vmem:[%s451_s3] sm:$0x1] }
 0x7cf   : > { %v5141_v26 = vrot.slane %v5124_v14, %v7715_v15  ;;  %v5159_v33 = vmax.f32 %v5133_v39, %v6342_v22  ;;  %v6343_v47 = vrot.slane %v5134_v49, 9  ;;  %5585 = vmatpush2.bf16.msra.mxu0 %v6766_v35  ;;  %5471 = vmatprep.subr.bf16.mxu1 %v9424_v0  ;;  %v5218_v39 = vld [vmem:[#allocation5] sm:$0x3]  ;;  %v5226_v14 = vld [vmem:[#allocation5 + $0x2] sm:$0x3] }
 0x7d0   : > { %5586 = vmatprep.subr.bf16.mxu0 %v9424_v0  ;;  %v5758_v35 = vld [vmem:[%s9355_s10] sm:$0xff] }
 0x7d1   : > { %5167 = vrot.lane.b32.xlu1 %v5159_v33, %s9426_s15  ;;  %v5160_v36 = vmax.f32 %v5134_v49, %v6343_v47  ;;  %v6344_v52 = vrot.slane %v5141_v26, 9  ;;  %v5142_v1 = vcombine.high %v5141_v26, %v5141_v26 }
 0x7d2   : > { %5472 = vmatpush2.bf16.msra.mxu1 %v6769_v38 }
 0x7d3   : > { %5169 = vrot.lane.b32.xlu0 %v5160_v36, %s9426_s15  ;;  %v5161_v42 = vmax.f32 %v5141_v26, %v6344_v52  ;;  %v6345_v23 = vrot.slane %v5142_v1, 9  ;;  %5587 = vmatpush2.bf16.msra.mxu0 %v6768_v9 }
 0x7d4   : > { %6448 = vmatprep.subr.mxu0 %v9429_v5  ;;  %5699 = vmatprep.subr.bf16.mxu1 %v9424_v0 }
 0x7d5   : > { %5171 = vrot.lane.b32.xlu1 %v5161_v42, %s9426_s15  ;;  %v5162_v10 = vmax.f32 %v5142_v1, %v6345_v23  ;;  %v5221_v1 = vld [vmem:[#allocation5 + $0xc] sm:$0x3] }
 0x7d7   : > { %5173 = vrot.lane.b32.xlu0 %v5162_v10, %s9426_s15 }
 0x843   : > { %v5168_v17 = vpop.permute.xlu1 %5167 }
 0x844   : > { %v5179_v62 = vmax.f32 %v5159_v33, %v5168_v17 }
 0x845   : > { %v5170_v60 = vpop.permute.xlu0 %5169 }
 0x846   : > { %v5180_v43 = vmax.f32 %v5160_v36, %v5170_v60  ;;  %v5190_v41 = vrot.slane %v5179_v62, %v8052_v7 }
 0x847   : > { %v5172_v37 = vpop.permute.xlu1 %5171 }
 0x848   : > { %v5194_v53 = vrot.slane %v5180_v43, %v8052_v7  ;;  %v5181_v13 = vmax.f32 %v5161_v42, %v5172_v37  ;;  %v5229_v42 = vld [vmem:[#allocation5 + $0xe] sm:$0x3] }
 0x849   : > { %v5174_v40 = vpop.permute.xlu0 %5173 }
 0x84a   : > { %v5182_v27 = vmax.f32 %v5162_v10, %v5174_v40  ;;  %v5203_v58 = vsel %vm3199_vm9, %v5194_v53, %v5190_v41  ;;  %v5198_v31 = vrot.slane %v5181_v13, %v8052_v7 }
 0x84b   : > { %5207 = vrot.lane.b32.xlu1 %v5203_v58, %s9426_s15 }
 0x84c   : > { %v5202_v46 = vrot.slane %v5182_v27, %v8052_v7 }
 0x84e   : > { %v5204_v12 = vsel %vm3199_vm9, %v5202_v46, %v5198_v31 }
 0x84f   : > { %5209 = vrot.lane.b32.xlu0 %v5204_v12, %s9426_s15  ;;  %5234 = vrot.lane.b32.xlu1 %v5222_v56, %s9428_s23  ;;  %s443_s15 = scalar_lea.vmem [#allocation6], %s442_s24 }
 0x850   : > { %s5868_s21 = sshll.u32 %s443_s15, 4  ;;  %s5869_s21 = int_to_ptr.vmem [resolvable:$true] %s5868_s21 }
 0x851   : > { %s6782_s22 = scalar_lea.vmem %s5869_s21, 16  ;;  %p6789_p0 = scmp.lt.s32.totalorder %s5869_s21, %s6787_s2 }
 0x852   : > { %p6783_p11 = scmp.ne.s32.totalorder %s5869_s21, %s6782_s22  ;;  %p6790_p1 = scmp.lt.s32.totalorder %s6788_s29, %s6782_s22 }
 0x854   : > { %p6784_p12 = pnand %p6783_p11, %p6965_p5  ;;  %p6791_p2 = por %p6790_p1, %p6789_p0 }
 0x856   : > { %p6785_p13 = pneg %p6784_p12 }
 0x858   : > { %p6792_p3 = pnand %p6791_p2, %p6785_p13 }
 0x8bd   : > { %v5208_v4 = vpop.permute.xlu1 %5207 }
 0x8be   : > { %v5213_v16 = vsel %vm3465_vm6, %v5203_v58, %v5208_v4  ;;  %v5765_v4 = vld [vmem:[%s9355_s10 + $0x38] sm:$0xff] }
 0x8bf   : > { %5216 = vst.msk [vmem:[#allocation5 + $0x5] sm:$0x3] %vm456_vm1, %v5213_v16  ;;  %v5764_v16 = vld [vmem:[%s9355_s10 + $0x30] sm:$0xff] }
 0x8c1   : > { %v5210_v57 = vpop.permute.xlu0 %5209  ;;  %v5235_v8 = vpop.permute.xlu1 %5234 }
 0x8c2   : > { %v5214_v45 = vsel %vm3465_vm6, %v5204_v12, %v5210_v57  ;;  %v5246_v22 = vsel %vm453_vm0, %v5218_v39, %v5235_v8  ;;  %v5760_v57 = vld [vmem:[%s9355_s10 + $0x10] sm:$0xff] }
 0x8c3   : > { %5217 = vst.msk [vmem:[#allocation5 + $0x9] sm:$0x3] %vm456_vm1, %v5214_v45  ;;  %v5258_v49 = vcombine.low %v5246_v22, %v5226_v14  ;;  %v5759_v45 = vld [vmem:[%s9355_s10 + $0x8] sm:$0xff]  ;;  %vm6855_vm1 = vmmov 0  }
 0x8c5   : > { %v5265_v23 = vrot.slane %v5258_v49, %v7715_v15 }
 0x8c6   : > { %v5223_v48 = vld [vmem:[#allocation5 + $0x5] sm:$0x3] }
 0x8c7   : > { %5236 = vrot.lane.b32.xlu0 %v5223_v48, %s9428_s23  ;;  %v5219_v26 = vld [vmem:[#allocation5 + $0x4] sm:$0x3]  ;;  %v5227_v47 = vld [vmem:[#allocation5 + $0x6] sm:$0x3] }
 0x8ca   : > { %v5224_v50 = vld [vmem:[#allocation5 + $0x9] sm:$0x3] }
 0x8cb   : > { %5240 = vrot.lane.b32.xlu0 %v5225_v28, %s9428_s23  ;;  %5238 = vrot.lane.b32.xlu1 %v5224_v50, %s9428_s23  ;;  %v5220_v62 = vld [vmem:[#allocation5 + $0x8] sm:$0x3]  ;;  %v5228_v43 = vld [vmem:[#allocation5 + $0xa] sm:$0x3]  ;;  %s5856_s23 = scalar_lea.sflag [#allocation7], %s442_s24 }
 0x8cf   : > { %5770 = vperm.xlu1 %6633, %v5766_v18  }
 0x939   : > { %v5237_v33 = vpop.permute.xlu0 %5236 }
 0x93a   : > { %v5247_v36 = vsel %vm453_vm0, %v5219_v26, %v5237_v33 }
 0x93b   : > { %v5266_v52 = vcombine.low %v5247_v36, %v5227_v47 }
 0x93d   : > { %v5273_v10 = vrot.slane %v5266_v52, %v7715_v15  ;;  %v5239_v17 = vpop.permute.xlu1 %5238  ;;  %v5241_v60 = vpop.permute.xlu0 %5240 }
 0x93e   : > { %v5248_v37 = vsel %vm453_vm0, %v5220_v62, %v5239_v17  ;;  %v5249_v41 = vsel %vm453_vm0, %v5221_v1, %v5241_v60 }
 0x93f   : > { %v5274_v53 = vcombine.low %v5248_v37, %v5228_v43  ;;  %v5282_v13 = vcombine.low %v5249_v41, %v5229_v42  ;;  %v5290_v40 = vcombine.low %v5265_v23, %v5273_v10 }
 0x941   : > { %v5281_v27 = vrot.slane %v5274_v53, %v7715_v15  ;;  %v5289_v58 = vrot.slane %v5282_v13, %v7715_v15  ;;  %v5298_v59 = vrot.slane %v5290_v40, %v7715_v15  ;;  %v5767_v13 = vld [vmem:[%s9356_s11] sm:$0x1] }
 0x943   : > { %v5291_v30 = vcombine.low %v5281_v27, %v5289_v58  ;;  %v5851_v58 = vld [vmem:[%s9357_s12] sm:$0x1] }
 0x945   : > { %v5305_v31 = vrot.slane %v5291_v30, %v7715_v15  ;;  %v6771_v15 = vld [vmem:[%s9353_s8 + $0xf0] sm:$0xff]  }
 0x947   : > { %v5306_v46 = vcombine.low %v5298_v59, %v5305_v31  ;;  %v5307_v56 = vcombine.high %v5298_v59, %v5305_v31 }
 0x949   : > { %v5310_v24 = vpack.c.bf16 %v5306_v46, %v5306_v46  ;;  %v5311_v44 = vpack.c.bf16 %v5307_v56, %v5307_v56 }
 0x94a   : > { %v5771_v41 = vpop.permute.xlu1 %5770 }
 0x94b   : > { %6395 = vmatprep.mubr.msk.bf16.mxu0 %vm453_vm0, %v5311_v44  ;;  %v5364_v12 = vrot.slane %v5311_v44, 1  ;;  %v5363_v54 = vrot.slane %v5310_v24, 1  ;;  %v5622_v34 = vrot.slane %v5311_v44, 2  ;;  %v5621_v55 = vrot.slane %v5310_v24, 2 }
 0x94c   : > { %5589 = vmatmul.mubr.bf16.vlgmr.msra.gmra.mxu0 %v5310_v24  ;;  %v5776_v53 = vrot.slane %v5771_v41, %v8052_v7 }
 0x94d   : > { %6382 = vmatprep.mubr.msk.bf16.mxu1 %vm453_vm0, %v5364_v12  ;;  %6449 = vmatpush3.msra.mxu0 %v5765_v4 }
 0x94e   : > { %5474 = vmatmul.mubr.bf16.vlgmr.msra.gmra.mxu1 %v5363_v54  ;;  %6450 = vmatprep.subr.mxu0 %v9429_v5  ;;  %v5777_v40 = vmul.f32 %v5776_v53, %v5767_v13 }
 0x94f   : > { %5700 = vmatpush1.bf16.msra.mxu1 %v6770_v29  ;;  %6432 = vmatprep.mubr.msk.bf16.mxu1 %vm453_vm0, %v5622_v34 }
 0x950   : > { %5701 = vmatprep.subr.bf16.mxu1 %v9424_v0  ;;  %6451 = vmatpush3.msra.mxu0 %v5764_v16 }
 0x951   : > { %6452 = vmatprep.subr.mxu0 %v9429_v5  ;;  %6464 = vmatprep.mubr.msk.f32.mxu0 %vm6855_vm1, %v9429_v5 }
 0x953   : > { %5702 = vmatpush1.bf16.msra.mxu1 %v6771_v15 }
 0x954   : > { %5703 = vmatprep.subr.bf16.mxu1 %v9424_v0 }
 0x957   : > { %5704 = vmatpush1.bf16.msra.mxu1 %v6772_v2 }
 0x958   : > { %5705 = vmatprep.subr.bf16.mxu1 %v9424_v0 }
 0x95b   : > { %5706 = vmatpush1.bf16.msra.mxu1 %v6773_v19 }
 0x95c   : > { %5707 = vmatprep.subr.bf16.mxu1 %v9424_v0 }
 0x95f   : > { %5708 = vmatpush1.bf16.msra.mxu1 %v6774_v51 }
 0x960   : > { %5709 = vmatprep.subr.bf16.mxu1 %v9424_v0 }
 0x963   : > { %5710 = vmatpush1.bf16.msra.mxu1 %v6775_v6 }
 0x964   : > { %5711 = vmatprep.subr.bf16.mxu1 %v9424_v0 }
 0x967   : > { %5712 = vmatpush1.bf16.msra.mxu1 %v6776_v25 }
 0x968   : > { %5713 = vmatprep.subr.bf16.mxu1 %v9424_v0 }
 0x96b   : > { %5714 = vmatpush1.bf16.msra.mxu1 %v6777_v63 }
 0x96c   : > { %5723 = vmatprep.subr.bf16.mxu1 %v9424_v0 }
 0x96f   : > { %5724 = vmatpush2.bf16.msra.mxu1 %v6778_v11 }
 0x970   : > { %5725 = vmatprep.subr.bf16.mxu1 %v9424_v0 }
 0x973   : > { %5726 = vmatpush2.bf16.msra.mxu1 %v6779_v21 }
 0x974   : > { %5727 = vmatprep.subr.bf16.mxu1 %v9424_v0 }
 0x977   : > { %5728 = vmatpush2.bf16.msra.mxu1 %v6780_v3 }
 0x978   : > { %5729 = vmatprep.subr.bf16.mxu1 %v9424_v0  ;;  %v5763_v0 = vld [vmem:[%s9355_s10 + $0x28] sm:$0xff] }
 0x979   : > { %6453 = vmatpush3.msra.mxu0 %v5763_v0 }
 0x97a   : > { %6454 = vmatprep.subr.mxu0 %v9429_v5 }
 0x97b   : > { %5730 = vmatpush2.bf16.msra.mxu1 %v6781_v61  ;;  %6455 = vmatpush3.msra.mxu0 %v5762_v32 }
 0x97c   : > { %6456 = vmatprep.subr.mxu0 %v9429_v5 }
 0x97d   : > { %6457 = vmatpush3.msra.mxu0 %v5761_v20 }
 0x97e   : > { %5732 = vmatmul.mubr.bf16.vlgmr.msra.gmra.mxu1 %v5621_v55  ;;  %6458 = vmatprep.subr.mxu0 %v9429_v5 }
 0x97f   : > { %6459 = vmatpush3.msra.mxu0 %v5760_v57 }
 0x980   : > { %6460 = vmatprep.subr.mxu0 %v9429_v5 }
 0x981   : > { %6461 = vmatpush3.msra.mxu0 %v5759_v45 }
 0x982   : > { %6462 = vmatprep.subr.mxu0 %v9429_v5  ;;  %v6433_v5 = vld [vmem:[%s9354_s9] ss:$0 sm:$0xff] }
 0x983   : > { %6463 = vmatpush3.msra.mxu0 %v5758_v35 }
 0xa0c   : > { %v5590_v48 = vpop.f32.mrf.mxu0 }
 0xa0e   : > { %v5475_v9 = vpop.f32.mrf.mxu1  ;;  %v5592_v28 = vpop.f32.mrf.mxu0 }
 0xa0f   : > { %v5591_v22 = vadd.f32 %v5590_v48, %v5475_v9 }
 0xa10   : > { %v5477_v38 = vpop.f32.mrf.mxu1  ;;  %v5593_v50 = vpop.f32.mrf.mxu0 }
 0xa12   : > { %v5478_v39 = vpop.f32.mrf.mxu1  ;;  %v5594_v8 = vpop.f32.mrf.mxu0 }
 0xa14   : > { %v5479_v14 = vpop.f32.mrf.mxu1 }
 0xa3e   : > { %v5733_v49 = vpop.f32.mrf.mxu1 }
 0xa3f   : > { %v5739_v26 = vadd.f32 %v5733_v49, %v5591_v22 }
 0xa40   : > { %v5735_v33 = vpop.f32.mrf.mxu1 }
 0xa41   : > { %v5747_v47 = vadd.f32 %v6433_v5, %v5739_v26 }
 0xa42   : > { %v5736_v36 = vpop.f32.mrf.mxu1 }
 0xa43   : > { %vm5748_vm9 = vcmp.gt.f32.partialorder %v5747_v47, 0.0  ;;  %v5749_v52 = vmul.f32 0.2, %v5747_v47 }
 0xa44   : > { %v5737_v1 = vpop.f32.mrf.mxu1 }
 0xa45   : > { %v5750_v42 = vsel %vm5748_vm9, %v5747_v47, %v5749_v52 }
 0xa46   : > { %v5751_v23 = vsel %vm540_vm3, %v5750_v42, 0.0 }
 0xa47   : > { %v5752_v10 = vrot.slane %v5751_v23, 4 }
 0xa49   : > { %v5753_v17 = vadd.f32 %v5752_v10, %v5751_v23 }
 0xa4b   : > { %v5754_v62 = vrot.slane %v5753_v17, 2 }
 0xa4d   : > { %v5755_v60 = vadd.f32 %v5754_v62, %v5753_v17 }
 0xa4f   : > { %v5756_v43 = vrot.slane %v5755_v60, 1 }
 0xa51   : > { %v5757_v37 = vadd.f32 %v5756_v43, %v5755_v60 }
 0xa53   : > { %6465 = vmatmul.mubr.msk.f32.vlgmr.msra.gmra.mxu0 %vm453_vm0, %v5757_v37 }
 0xb13   : > { %v5847_v27 = vpop.f32.mrf.mxu0 }
 0xb14   : > { %v5848_v30 = vadd.f32 %v5847_v27, %v5777_v40 }
 0xb15   : > { %v6466_v59 = vpop.f32.mrf.mxu0 }
 0xb16   : > { %v5852_v31 = vadd.f32 %v5851_v58, %v5848_v30 }
 0xb18   : > { %v5853_v46 = vmax.f32 %v5852_v31, 0.0 }
 0xb1a   : > { %5854 = vst.msk [vmem:[%s443_s15] sm:$0x1] %vm462_vm2, %v5853_v46 }
 0xb1b   : > { %6795 = shalt.err (!%p6792_p3)
}
 0xb1c   : > { %s6796_s20 = scalar_lea.hbm %s5866_s30, 16  ;;  %s6800_s15 = scalar_lea.hbm %s9358_s13, 32 }
 0xb1d   : > { %p6797_p4 = scmp.ne.s32.totalorder %s5866_s30, %s6796_s20  ;;  %p6801_p9 = scmp.lt.s32.totalorder %s5866_s30, %s9358_s13 }
 0xb1e   : > { %p6802_p10 = scmp.lt.s32.totalorder %s6800_s15, %s6796_s20 }
 0xb1f   : > { %p6798_p7 = pnand %p6797_p4, %p6965_p5 }
 0xb20   : > { %p6803_p11 = por %p6802_p10, %p6801_p9 }
 0xb21   : > { %p6799_p8 = pneg %p6798_p7 }
 0xb23   : > { %p6804_p12 = pnand %p6803_p11, %p6799_p8 }
 0xb25   : > { %6807 = shalt.err (!%p6804_p12)
}
 0xb26   : > { %6467 = dma.vmem_to_hbm [thread:$0]  (%p6965_p5), %s5869_s21, 16, %s5866_s30, %s5856_s23  }
 0xb27 PF: > { %p6473_p13 = scmp.ge.s32.totalorder %s6842_s28, 2  ;;  %s5880_s22 = sand.u32 1, %s6830_s25  }
 0xb28   : > { %s5881_s17 = scalar_lea.sflag [#allocation7], %s5880_s22 }
 0xb29   : > { %p6470_p0 = pnand %p6473_p13, %p6969_p6 }
 0xb2b   : > { %p6471_p1 = pneg %p6470_p0 }
 0xb2d   : > { %6825 = dma.done.wait (%p6471_p1), %s5881_s17, 16  }
 0xb2e   : > { %6827 = vsyncadd (%p6471_p1), %s5881_s17, 4294967280  ;;  %s9431_s2 = sld [smem:[#allocation9_spill]]  ;;  %p23_p2 = scmp.ge.s32.totalorder %s6952_s14, 4  }
 0xb2f   : > { %s9432_s25 = smov %s6834_s26  ;;  %s9433_s26 = smov %s6838_s27 }
 0xb30   : > { %s9435_s28 = smov %s6952_s14  ;;  %25 = sbr.rel (!%p23_p2) target bundleno = 7 (0x7), region = 126 }
 0xb34   : > { %s9434_s27 = smov %s9431_s2 }
 0xb35   :  { %5885 = vsyncpa [#allocation7], 1 }
 0xb36   :  { %5887 = vsyncpa [#allocation7 + $0x1], 1 }

</bundles_post_ra>
